<compile_context>
chip_gen: v7x
topology: tpu7x:2x2x1
jax: 0.10.0
libtpu: 0.0.40
codegen_flags: <defaults>
</compile_context>

<pallas_src>
import jax
import jax.numpy as jnp
from jax.experimental import pallas as pl
from jax.experimental.pallas import tpu as pltpu

C_IN_SE = 30     # conv2d41 input channels  (x128: [1, 30, 1, 1])
C = 120          # main channel count
H = W = 28
HW = H * W
BN_EPS = 1e-5


def fused_kernel(x128_ref, w41t_ref, b41_ref, x125_ref, w42_ref,
                 gamma_ref, beta_ref, x119_hbm, o_ref,
                 x119_vmem, copy_sem):
    # Kick off the residual (x119) HBM->VMEM copy immediately so its 376 KB
    # transfer overlaps the gate compute, the weight fold and the matmul.
    res_cp = pltpu.make_async_copy(x119_hbm, x119_vmem, copy_sem)
    res_cp.start()

    # --- squeeze-excite gate: 1x1 conv (30 -> 120) on the [1,30,1,1] input ---
    # VPU broadcast-mul + sublane reduce keeps the tiny M=1 matmul off the MXU
    # and yields the gate already lane-major as a (1, 120) row (no transpose).
    prod = w41t_ref[...] * x128_ref[...]                        # (30, 120)
    pre = jnp.sum(prod, axis=0, keepdims=True) + b41_ref[...]   # (1, 120)
    gate = jax.nn.sigmoid(pre)                                  # (1, 120)

    # --- fold the per-input-channel gate into the conv2d42 weights ---
    # y = W42 @ (gate * x125)  ==  (W42 * gate_row) @ x125  (exact reassoc),
    # a 120x120 VPU multiply instead of a 120x784 one.
    w42_g = w42_ref[...] * gate                                 # (120, 120)
    y = jnp.dot(w42_g, x125_ref[...],
                preferred_element_type=jnp.float32)             # (120, 784)

    # --- BatchNorm2d, training-mode batch stats (biased var), single pass ---
    inv_hw = 1.0 / HW
    mean = jnp.sum(y, axis=1, keepdims=True) * inv_hw           # (120, 1)
    ex2 = jnp.sum(y * y, axis=1, keepdims=True) * inv_hw        # (120, 1)
    var = jnp.maximum(ex2 - mean * mean, 0.0)
    scale = gamma_ref[...] * jax.lax.rsqrt(var + BN_EPS)        # (120, 1)
    shift = beta_ref[...] - mean * scale                        # (120, 1)

    # --- fused BN epilogue + residual add: o = y*scale + shift + x119 ---
    res_cp.wait()
    o_ref[...] = y * scale + shift + x119_vmem[...]


def fused_forward(x128, x125, x119, w41, b41, w42, gamma, beta):
    """x128: (1,30,1,1)  x125/x119: (1,120,28,28)  w41: (120,30,1,1)
    w42: (120,120,1,1).  Returns (1,120,28,28)."""
    # Layout-preserving reshapes for the big tensors; only the 14 KB SE weight
    # is transposed (tiny XLA op) so the gate lands lane-major in the kernel.
    x128_col = x128.reshape(C_IN_SE, 1)        # (30, 1)
    w41_t = w41.reshape(C, C_IN_SE).T          # (30, 120)
    b41_row = b41.reshape(1, C)                # (1, 120)
    x125_m = x125.reshape(C, HW)               # (120, 784)
    w42_m = w42.reshape(C, C)                  # (120, 120)  (out, in)
    gamma_m = gamma.reshape(C, 1)
    beta_m = beta.reshape(C, 1)
    x119_m = x119.reshape(C, HW)               # (120, 784)

    vmem = pl.BlockSpec(memory_space=pltpu.MemorySpace.VMEM)
    any_spec = pl.BlockSpec(memory_space=pl.ANY)   # raw HBM ref, manual DMA
    cost = pl.CostEstimate(
        flops=2 * HW * C * C + C * C + 8 * HW * C,   # matmul + fold + epilogue
        transcendentals=2 * C,                       # sigmoid exp + rsqrt
        bytes_accessed=(3 * HW * C + C * C + 2 * C_IN_SE * C) * 4,
    )

    out_m = pl.pallas_call(
        fused_kernel,
        out_shape=jax.ShapeDtypeStruct((C, HW), jnp.float32),
        in_specs=[vmem] * 7 + [any_spec],
        out_specs=vmem,
        scratch_shapes=[
            pltpu.VMEM((C, HW), jnp.float32),    # landing buffer for x119
            pltpu.SemaphoreType.DMA,             # completion semaphore
        ],
        cost_estimate=cost,
    )(x128_col, w41_t, b41_row, x125_m, w42_m, gamma_m, beta_m, x119_m)

    return out_m.reshape(1, C, H, W)


def reference_forward(x128, x125, x119, w41, b41, w42, gamma, beta):
    """Pure-JAX reference mirroring the PyTorch module (training-mode BN)."""
    pre = jnp.einsum('oc,nchw->nohw', w41.reshape(C, C_IN_SE), x128) \
        + b41.reshape(1, C, 1, 1)
    gate = jax.nn.sigmoid(pre)
    xg = gate * x125
    y = jnp.einsum('oc,nchw->nohw', w42.reshape(C, C), xg)
    mean = jnp.mean(y, axis=(0, 2, 3), keepdims=True)
    var = jnp.mean((y - mean) ** 2, axis=(0, 2, 3), keepdims=True)
    bn = (y - mean) * jax.lax.rsqrt(var + BN_EPS) * gamma.reshape(1, C, 1, 1) \
        + beta.reshape(1, C, 1, 1)
    return x119 + bn


if __name__ == "__main__":
    key = jax.random.PRNGKey(0)
    ks = jax.random.split(key, 8)

    # deterministic example inputs (shapes from the module's forward)
    x128 = jax.random.normal(ks[0], (1, C_IN_SE, 1, 1), jnp.float32)
    x125 = jax.random.normal(ks[1], (1, C, H, W), jnp.float32)
    x119 = jax.random.normal(ks[2], (1, C, H, W), jnp.float32)

    # deterministic parameters (shapes from __init__)
    w41 = 0.1 * jax.random.normal(ks[3], (C, C_IN_SE, 1, 1), jnp.float32)
    b41 = 0.1 * jax.random.normal(ks[4], (C,), jnp.float32)
    w42 = 0.1 * jax.random.normal(ks[5], (C, C, 1, 1), jnp.float32)
    gamma = 1.0 + 0.05 * jax.random.normal(ks[6], (C,), jnp.float32)
    beta = 0.05 * jax.random.normal(ks[7], (C,), jnp.float32)

    out = fused_forward(x128, x125, x119, w41, b41, w42, gamma, beta)
    out = jax.block_until_ready(out)

    ref = reference_forward(x128, x125, x119, w41, b41, w42, gamma, beta)
    assert out.shape == (1, C, H, W)
    assert jnp.allclose(out, ref, atol=1e-4, rtol=1e-4), \
        float(jnp.max(jnp.abs(out - ref)))

    # TODO(synk): BatchNorm running_mean/running_var updates are not emitted
    # (only the normalized forward output, matching this module's return).
    print("KERNEL_OK")
</pallas_src>

<mosaic_0001>
module attributes {stable_mosaic.version = 11 : i64} {
  func.func @fused_kernel(%arg0: memref<30x1xf32, #tpu.memory_space<vmem>>, %arg1: memref<30x120xf32, #tpu.memory_space<vmem>>, %arg2: memref<1x120xf32, #tpu.memory_space<vmem>>, %arg3: memref<120x784xf32, #tpu.memory_space<vmem>>, %arg4: memref<120x120xf32, #tpu.memory_space<vmem>>, %arg5: memref<120x1xf32, #tpu.memory_space<vmem>>, %arg6: memref<120x1xf32, #tpu.memory_space<vmem>>, %arg7: memref<120x784xf32, #tpu.memory_space<any>>, %arg8: memref<120x784xf32, #tpu.memory_space<vmem>>, %arg9: memref<120x784xf32, #tpu.memory_space<vmem>>, %arg10: memref<!tpu.dma_semaphore, #tpu.memory_space<semaphore_mem>>) attributes {dimension_semantics = [], scalar_prefetch = 0 : i64, scratch_operands = 2 : i64, tpu.core_type = #tpu.core_type<tc>} {
    tpu.enqueue_dma source(%arg7 : memref<120x784xf32, #tpu.memory_space<any>>) target(%arg9 : memref<120x784xf32, #tpu.memory_space<vmem>>) target_semaphore(%arg10 : memref<!tpu.dma_semaphore, #tpu.memory_space<semaphore_mem>>)
    %c0 = arith.constant 0 : index
    %c0_0 = arith.constant 0 : index
    %0 = vector.load %arg1[%c0, %c0_0] : memref<30x120xf32, #tpu.memory_space<vmem>>, vector<30x120xf32>
    %c0_1 = arith.constant 0 : index
    %c0_2 = arith.constant 0 : index
    %1 = vector.load %arg0[%c0_1, %c0_2] : memref<30x1xf32, #tpu.memory_space<vmem>>, vector<30x1xf32>
    %2 = vector.broadcast %1 : vector<30x1xf32> to vector<30x120xf32>
    %3 = arith.mulf %0, %2 : vector<30x120xf32>
    %cst = arith.constant dense<0.000000e+00> : vector<120xf32>
    %4 = vector.multi_reduction <add>, %3, %cst [0] : vector<30x120xf32> to vector<120xf32>
    %5 = vector.shape_cast %4 : vector<120xf32> to vector<1x120xf32>
    %c0_3 = arith.constant 0 : index
    %c0_4 = arith.constant 0 : index
    %6 = vector.load %arg2[%c0_3, %c0_4] : memref<1x120xf32, #tpu.memory_space<vmem>>, vector<1x120xf32>
    %7 = arith.addf %5, %6 : vector<1x120xf32>
    %8 = arith.negf %7 : vector<1x120xf32>
    %9 = math.exp %8 : vector<1x120xf32>
    %cst_5 = arith.constant 1.000000e+00 : f32
    %10 = vector.broadcast %cst_5 : f32 to vector<1x120xf32>
    %11 = arith.addf %10, %9 : vector<1x120xf32>
    %12 = arith.divf %10, %11 : vector<1x120xf32>
    %c0_6 = arith.constant 0 : index
    %c0_7 = arith.constant 0 : index
    %13 = vector.load %arg4[%c0_6, %c0_7] : memref<120x120xf32, #tpu.memory_space<vmem>>, vector<120x120xf32>
    %14 = vector.broadcast %12 : vector<1x120xf32> to vector<120x120xf32>
    %15 = arith.mulf %13, %14 : vector<120x120xf32>
    %c0_8 = arith.constant 0 : index
    %c0_9 = arith.constant 0 : index
    %16 = vector.load %arg3[%c0_8, %c0_9] : memref<120x784xf32, #tpu.memory_space<vmem>>, vector<120x784xf32>
    %cst_10 = arith.constant dense<0.000000e+00> : vector<120x784xf32>
    %17 = tpu.matmul %15, %16, %cst_10 {dimension_numbers = #tpu.dot_dimension_numbers<[1], [0], [0], [1], [0, 0, 1, 1], [], []>} : vector<120x120xf32>, vector<120x784xf32>, vector<120x784xf32> -> vector<120x784xf32>
    %cst_11 = arith.constant dense<0.000000e+00> : vector<120xf32>
    %18 = vector.multi_reduction <add>, %17, %cst_11 [1] : vector<120x784xf32> to vector<120xf32>
    %19 = vector.shape_cast %18 : vector<120xf32> to vector<120x1xf32>
    %cst_12 = arith.constant 0.00127551018 : f32
    %20 = vector.broadcast %cst_12 : f32 to vector<120x1xf32>
    %21 = arith.mulf %19, %20 : vector<120x1xf32>
    %22 = arith.mulf %17, %17 : vector<120x784xf32>
    %cst_13 = arith.constant dense<0.000000e+00> : vector<120xf32>
    %23 = vector.multi_reduction <add>, %22, %cst_13 [1] : vector<120x784xf32> to vector<120xf32>
    %24 = vector.shape_cast %23 : vector<120xf32> to vector<120x1xf32>
    %cst_14 = arith.constant 0.00127551018 : f32
    %25 = vector.broadcast %cst_14 : f32 to vector<120x1xf32>
    %26 = arith.mulf %24, %25 : vector<120x1xf32>
    %27 = arith.mulf %21, %21 : vector<120x1xf32>
    %28 = arith.subf %26, %27 : vector<120x1xf32>
    %cst_15 = arith.constant 0.000000e+00 : f32
    %29 = vector.broadcast %cst_15 : f32 to vector<120x1xf32>
    %30 = arith.maximumf %28, %29 : vector<120x1xf32>
    %c0_16 = arith.constant 0 : index
    %c0_17 = arith.constant 0 : index
    %31 = vector.load %arg5[%c0_16, %c0_17] : memref<120x1xf32, #tpu.memory_space<vmem>>, vector<120x1xf32>
    %cst_18 = arith.constant 9.99999974E-6 : f32
    %32 = vector.broadcast %cst_18 : f32 to vector<120x1xf32>
    %33 = arith.addf %30, %32 : vector<120x1xf32>
    %34 = math.rsqrt %33 : vector<120x1xf32>
    %35 = arith.mulf %31, %34 : vector<120x1xf32>
    %c0_19 = arith.constant 0 : index
    %c0_20 = arith.constant 0 : index
    %36 = vector.load %arg6[%c0_19, %c0_20] : memref<120x1xf32, #tpu.memory_space<vmem>>, vector<120x1xf32>
    %37 = arith.mulf %21, %35 : vector<120x1xf32>
    %38 = arith.subf %36, %37 : vector<120x1xf32>
    tpu.wait_dma2 semaphore(%arg10 : memref<!tpu.dma_semaphore, #tpu.memory_space<semaphore_mem>>) src(%arg7 : memref<120x784xf32, #tpu.memory_space<any>>) dst(%arg9 : memref<120x784xf32, #tpu.memory_space<vmem>>)
    %39 = vector.broadcast %35 : vector<120x1xf32> to vector<120x784xf32>
    %40 = arith.mulf %17, %39 : vector<120x784xf32>
    %41 = vector.broadcast %38 : vector<120x1xf32> to vector<120x784xf32>
    %42 = arith.addf %40, %41 : vector<120x784xf32>
    %c0_21 = arith.constant 0 : index
    %c0_22 = arith.constant 0 : index
    %43 = vector.load %arg9[%c0_21, %c0_22] : memref<120x784xf32, #tpu.memory_space<vmem>>, vector<120x784xf32>
    %44 = arith.addf %42, %43 : vector<120x784xf32>
    %c0_23 = arith.constant 0 : index
    %c0_24 = arith.constant 0 : index
    %45 = vector.load %arg8[%c0_23, %c0_24] : memref<120x784xf32, #tpu.memory_space<vmem>>, vector<120x784xf32>
    tpu.vector_store %arg8[%c0_23, %c0_24], %44 {strides = array<i32>} : memref<120x784xf32, #tpu.memory_space<vmem>>, vector<120x784xf32>,
    return
  }
}

</mosaic_0001>

<bundles_post_ra>
// kernel: tpu_custom_call.1
= control target key start
LH: loop header
LB: loop body
LE: loop exit
PB: predicated region body
PF: predicated region fallthrough
CT: control target
= control target key end

     0   :  { %s5670_s0 = inlined_call_operand.vmem [shape: f32[30,1], index: 0, kind: input, shape index: {}]   ;;  %s5671_s1 = inlined_call_operand.vmem [shape: f32[30,120], index: 1, kind: input, shape index: {}]   ;;  %s5672_s2 = inlined_call_operand.vmem [shape: f32[1,120], index: 2, kind: input, shape index: {}]   ;;  %s5673_s3 = inlined_call_operand.vmem [shape: f32[120,784], index: 3, kind: input, shape index: {}]   ;;  %s5674_s4 = inlined_call_operand.vmem [shape: f32[120,120], index: 4, kind: input, shape index: {}]   ;;  %s5675_s5 = inlined_call_operand.vmem [shape: f32[120,1], index: 5, kind: input, shape index: {}]   ;;  %s5676_s6 = inlined_call_operand.vmem [shape: f32[120,1], index: 6, kind: input, shape index: {}]   ;;  %s5677_s7 = inlined_call_operand.vmem [shape: f32[120,784], index: 7, kind: input, shape index: {}]   ;;  %s5678_s8 = inlined_call_operand.vmem [shape: f32[120,784], index: 8, kind: output, shape index: {}]  }
   0x1   :  { %v2742_v0 = vld [vmem:[%s5677_s7] sm:$0xff]  ;;  %v2747_v1 = vld [vmem:[%s5677_s7 + $0x8] sm:$0xff]  ;;  %v2752_v2 = vld [vmem:[%s5677_s7 + $0x10] sm:$0xff] }
   0x2   :  { %5777 = vst [vmem:[#allocation6_spill] sm:$0xff] %v2742_v0  ;;  %5778 = vst [vmem:[#allocation7_spill] sm:$0xff] %v2747_v1  ;;  %v2757_v3 = vld [vmem:[%s5677_s7 + $0x18] sm:$0xff]  ;;  %v2762_v4 = vld [vmem:[%s5677_s7 + $0x20] sm:$0xff] }
   0x3   :  { %5779 = vst [vmem:[#allocation8_spill] sm:$0xff] %v2752_v2  ;;  %5780 = vst [vmem:[#allocation9_spill] sm:$0xff] %v2757_v3  ;;  %v2767_v5 = vld [vmem:[%s5677_s7 + $0x28] sm:$0xff]  ;;  %v2772_v6 = vld [vmem:[%s5677_s7 + $0x30] sm:$0xff] }
   0x4   :  { %5781 = vst [vmem:[#allocation10_spill] sm:$0xff] %v2762_v4  ;;  %5782 = vst [vmem:[#allocation11_spill] sm:$0xff] %v2767_v5  ;;  %v2777_v7 = vld [vmem:[%s5677_s7 + $0x38] sm:$0xff]  ;;  %v2782_v8 = vld [vmem:[%s5677_s7 + $0x40] sm:$0xff] }
   0x5   :  { %5783 = vst [vmem:[#allocation12_spill] sm:$0xff] %v2772_v6  ;;  %5784 = vst [vmem:[#allocation13_spill] sm:$0xff] %v2777_v7  ;;  %v2787_v9 = vld [vmem:[%s5677_s7 + $0x48] sm:$0xff]  ;;  %v2792_v10 = vld [vmem:[%s5677_s7 + $0x50] sm:$0xff] }
   0x6   :  { %5785 = vst [vmem:[#allocation14_spill] sm:$0xff] %v2782_v8  ;;  %5786 = vst [vmem:[#allocation15_spill] sm:$0xff] %v2787_v9  ;;  %v2797_v11 = vld [vmem:[%s5677_s7 + $0x58] sm:$0xff]  ;;  %v2802_v12 = vld [vmem:[%s5677_s7 + $0x60] sm:$0xff] }
   0x7   :  { %5787 = vst [vmem:[#allocation16_spill] sm:$0xff] %v2792_v10  ;;  %5788 = vst [vmem:[#allocation17_spill] sm:$0xff] %v2797_v11  ;;  %v2807_v13 = vld [vmem:[%s5677_s7 + $0x68] sm:$0xff]  ;;  %v2812_v14 = vld [vmem:[%s5677_s7 + $0x70] sm:$0xff] }
   0x8   :  { %5789 = vst [vmem:[#allocation18_spill] sm:$0xff] %v2802_v12  ;;  %5790 = vst [vmem:[#allocation19_spill] sm:$0xff] %v2807_v13  ;;  %v2817_v15 = vld [vmem:[%s5677_s7 + $0x78] sm:$0xff]  ;;  %v2822_v16 = vld [vmem:[%s5677_s7 + $0x80] sm:$0xff] }
   0x9   :  { %5791 = vst [vmem:[#allocation20_spill] sm:$0xff] %v2812_v14  ;;  %5792 = vst [vmem:[#allocation21_spill] sm:$0xff] %v2817_v15  ;;  %v2827_v17 = vld [vmem:[%s5677_s7 + $0x88] sm:$0xff]  ;;  %v2832_v18 = vld [vmem:[%s5677_s7 + $0x90] sm:$0xff] }
   0xa   :  { %5793 = vst [vmem:[#allocation22_spill] sm:$0xff] %v2822_v16  ;;  %5794 = vst [vmem:[#allocation23_spill] sm:$0xff] %v2827_v17  ;;  %v2837_v19 = vld [vmem:[%s5677_s7 + $0x98] sm:$0xff]  ;;  %v2842_v20 = vld [vmem:[%s5677_s7 + $0xa0] sm:$0xff] }
   0xb   :  { %5795 = vst [vmem:[#allocation24_spill] sm:$0xff] %v2832_v18  ;;  %5796 = vst [vmem:[#allocation25_spill] sm:$0xff] %v2837_v19  ;;  %v2847_v21 = vld [vmem:[%s5677_s7 + $0xa8] sm:$0xff]  ;;  %v2852_v22 = vld [vmem:[%s5677_s7 + $0xb0] sm:$0xff] }
   0xc   :  { %5797 = vst [vmem:[#allocation26_spill] sm:$0xff] %v2842_v20  ;;  %5798 = vst [vmem:[#allocation27_spill] sm:$0xff] %v2847_v21  ;;  %v2857_v23 = vld [vmem:[%s5677_s7 + $0xb8] sm:$0xff]  ;;  %v2862_v24 = vld [vmem:[%s5677_s7 + $0xc0] sm:$0xff] }
   0xd   :  { %5799 = vst [vmem:[#allocation28_spill] sm:$0xff] %v2852_v22  ;;  %5800 = vst [vmem:[#allocation29_spill] sm:$0xff] %v2857_v23  ;;  %v2867_v25 = vld [vmem:[%s5677_s7 + $0xc8] sm:$0xff]  ;;  %v2872_v26 = vld [vmem:[%s5677_s7 + $0xd0] sm:$0xff] }
   0xe   :  { %5801 = vst [vmem:[#allocation30_spill] sm:$0xff] %v2862_v24  ;;  %5802 = vst [vmem:[#allocation31_spill] sm:$0xff] %v2867_v25  ;;  %v2877_v27 = vld [vmem:[%s5677_s7 + $0xd8] sm:$0xff]  ;;  %v2882_v28 = vld [vmem:[%s5677_s7 + $0xe0] sm:$0xff] }
   0xf   :  { %5803 = vst [vmem:[#allocation32_spill] sm:$0xff] %v2872_v26  ;;  %5804 = vst [vmem:[#allocation33_spill] sm:$0xff] %v2877_v27  ;;  %v2887_v29 = vld [vmem:[%s5677_s7 + $0xe8] sm:$0xff]  ;;  %v2892_v30 = vld [vmem:[%s5677_s7 + $0xf0] sm:$0xff] }
  0x10   :  { %5805 = vst [vmem:[#allocation34_spill] sm:$0xff] %v2882_v28  ;;  %5806 = vst [vmem:[#allocation35_spill] sm:$0xff] %v2887_v29  ;;  %v2897_v31 = vld [vmem:[%s5677_s7 + $0xf8] sm:$0xff]  ;;  %v2902_v32 = vld [vmem:[%s5677_s7 + $0x100] sm:$0xff] }
  0x11   :  { %5807 = vst [vmem:[#allocation36_spill] sm:$0xff] %v2892_v30  ;;  %5808 = vst [vmem:[#allocation37_spill] sm:$0xff] %v2897_v31  ;;  %v2907_v33 = vld [vmem:[%s5677_s7 + $0x108] sm:$0xff]  ;;  %v2912_v34 = vld [vmem:[%s5677_s7 + $0x110] sm:$0xff] }
  0x12   :  { %5809 = vst [vmem:[#allocation38_spill] sm:$0xff] %v2902_v32  ;;  %5810 = vst [vmem:[#allocation39_spill] sm:$0xff] %v2907_v33  ;;  %v2917_v35 = vld [vmem:[%s5677_s7 + $0x118] sm:$0xff]  ;;  %v2922_v36 = vld [vmem:[%s5677_s7 + $0x120] sm:$0xff] }
  0x13   :  { %5811 = vst [vmem:[#allocation40_spill] sm:$0xff] %v2912_v34  ;;  %5812 = vst [vmem:[#allocation41_spill] sm:$0xff] %v2917_v35  ;;  %v2927_v37 = vld [vmem:[%s5677_s7 + $0x128] sm:$0xff]  ;;  %v2932_v38 = vld [vmem:[%s5677_s7 + $0x130] sm:$0xff] }
  0x14   :  { %5813 = vst [vmem:[#allocation42_spill] sm:$0xff] %v2922_v36  ;;  %5814 = vst [vmem:[#allocation43_spill] sm:$0xff] %v2927_v37  ;;  %v2937_v39 = vld [vmem:[%s5677_s7 + $0x138] sm:$0xff]  ;;  %v2942_v40 = vld [vmem:[%s5677_s7 + $0x140] sm:$0xff] }
  0x15   :  { %5815 = vst [vmem:[#allocation44_spill] sm:$0xff] %v2932_v38  ;;  %5816 = vst [vmem:[#allocation45_spill] sm:$0xff] %v2937_v39  ;;  %v2947_v41 = vld [vmem:[%s5677_s7 + $0x148] sm:$0xff]  ;;  %v2952_v42 = vld [vmem:[%s5677_s7 + $0x150] sm:$0xff] }
  0x16   :  { %5817 = vst [vmem:[#allocation46_spill] sm:$0xff] %v2942_v40  ;;  %5818 = vst [vmem:[#allocation47_spill] sm:$0xff] %v2947_v41  ;;  %v2957_v43 = vld [vmem:[%s5677_s7 + $0x158] sm:$0xff]  ;;  %v2962_v44 = vld [vmem:[%s5677_s7 + $0x160] sm:$0xff] }
  0x17   :  { %5819 = vst [vmem:[#allocation48_spill] sm:$0xff] %v2952_v42  ;;  %5820 = vst [vmem:[#allocation49_spill] sm:$0xff] %v2957_v43  ;;  %v2967_v45 = vld [vmem:[%s5677_s7 + $0x168] sm:$0xff]  ;;  %v2972_v46 = vld [vmem:[%s5677_s7 + $0x170] sm:$0xff] }
  0x18   :  { %5821 = vst [vmem:[#allocation50_spill] sm:$0xff] %v2962_v44  ;;  %5822 = vst [vmem:[#allocation51_spill] sm:$0xff] %v2967_v45  ;;  %v2977_v47 = vld [vmem:[%s5677_s7 + $0x178] sm:$0xff]  ;;  %v2982_v48 = vld [vmem:[%s5677_s7 + $0x180] sm:$0xff] }
  0x19   :  { %5823 = vst [vmem:[#allocation52_spill] sm:$0xff] %v2972_v46  ;;  %5824 = vst [vmem:[#allocation53_spill] sm:$0xff] %v2977_v47  ;;  %v2987_v49 = vld [vmem:[%s5677_s7 + $0x188] sm:$0xff]  ;;  %v2992_v50 = vld [vmem:[%s5677_s7 + $0x190] sm:$0xff] }
  0x1a   :  { %5825 = vst [vmem:[#allocation54_spill] sm:$0xff] %v2982_v48  ;;  %5826 = vst [vmem:[#allocation55_spill] sm:$0xff] %v2987_v49  ;;  %v2997_v51 = vld [vmem:[%s5677_s7 + $0x198] sm:$0xff]  ;;  %v3002_v52 = vld [vmem:[%s5677_s7 + $0x1a0] sm:$0xff] }
  0x1b   :  { %5827 = vst [vmem:[#allocation56_spill] sm:$0xff] %v2992_v50  ;;  %5828 = vst [vmem:[#allocation57_spill] sm:$0xff] %v2997_v51  ;;  %v3007_v53 = vld [vmem:[%s5677_s7 + $0x1a8] sm:$0xff]  ;;  %v3012_v54 = vld [vmem:[%s5677_s7 + $0x1b0] sm:$0xff]  ;;  %v5679_v51 = vmov 0  }
  0x1c   :  { %5829 = vst [vmem:[#allocation58_spill] sm:$0xff] %v3002_v52  ;;  %5830 = vst [vmem:[#allocation59_spill] sm:$0xff] %v3007_v53  ;;  %v3017_v55 = vld [vmem:[%s5677_s7 + $0x1b8] sm:$0xff]  ;;  %v3022_v56 = vld [vmem:[%s5677_s7 + $0x1c0] sm:$0xff]  ;;  %2651 = vset.pattern.permute.xlu1 %v5679_v51  ;;  %2650 = vset.pattern.permute.xlu0 %v5679_v51 }
  0x1d   :  { %5831 = vst [vmem:[#allocation60_spill] sm:$0xff] %v3012_v54  ;;  %5832 = vst [vmem:[#allocation61_spill] sm:$0xff] %v3017_v55  ;;  %v3027_v57 = vld [vmem:[%s5677_s7 + $0x1c8] sm:$0xff]  ;;  %v3032_v58 = vld [vmem:[%s5677_s7 + $0x1d0] sm:$0xff] }
  0x1e   :  { %5833 = vst [vmem:[#allocation62_spill] sm:$0xff] %v3022_v56  ;;  %5834 = vst [vmem:[#allocation63_spill] sm:$0xff] %v3027_v57  ;;  %v3037_v59 = vld [vmem:[%s5677_s7 + $0x1d8] sm:$0xff]  ;;  %v3042_v60 = vld [vmem:[%s5677_s7 + $0x1e0] sm:$0xff] }
  0x1f   :  { %5835 = vst [vmem:[#allocation64_spill] sm:$0xff] %v3032_v58  ;;  %5836 = vst [vmem:[#allocation65_spill] sm:$0xff] %v3037_v59  ;;  %v3047_v61 = vld [vmem:[%s5677_s7 + $0x1e8] sm:$0xff]  ;;  %v3052_v62 = vld [vmem:[%s5677_s7 + $0x1f0] sm:$0xff] }
  0x20   :  { %5837 = vst [vmem:[#allocation66_spill] sm:$0xff] %v3042_v60  ;;  %5838 = vst [vmem:[#allocation67_spill] sm:$0xff] %v3047_v61  ;;  %v3057_v63 = vld [vmem:[%s5677_s7 + $0x1f8] sm:$0xff]  ;;  %v3062_v55 = vld [vmem:[%s5677_s7 + $0x200] sm:$0xff] }
  0x21   :  { %5839 = vst [vmem:[#allocation68_spill] sm:$0xff] %v3052_v62  ;;  %5840 = vst [vmem:[#allocation69_spill] sm:$0xff] %v3057_v63  ;;  %v3067_v54 = vld [vmem:[%s5677_s7 + $0x208] sm:$0xff]  ;;  %v3072_v53 = vld [vmem:[%s5677_s7 + $0x210] sm:$0xff] }
  0x22   :  { %5841 = vst [vmem:[#allocation70_spill] sm:$0xff] %v3062_v55  ;;  %5842 = vst [vmem:[#allocation71_spill] sm:$0xff] %v3067_v54  ;;  %v3077_v52 = vld [vmem:[%s5677_s7 + $0x218] sm:$0xff]  ;;  %v3082_v63 = vld [vmem:[%s5677_s7 + $0x220] sm:$0xff] }
  0x23   :  { %5843 = vst [vmem:[#allocation72_spill] sm:$0xff] %v3072_v53  ;;  %5844 = vst [vmem:[#allocation73_spill] sm:$0xff] %v3077_v52  ;;  %v3087_v55 = vld [vmem:[%s5677_s7 + $0x228] sm:$0xff]  ;;  %v3092_v54 = vld [vmem:[%s5677_s7 + $0x230] sm:$0xff] }
  0x24   :  { %5845 = vst [vmem:[#allocation74_spill] sm:$0xff] %v3082_v63  ;;  %5846 = vst [vmem:[#allocation75_spill] sm:$0xff] %v3087_v55  ;;  %v3097_v53 = vld [vmem:[%s5677_s7 + $0x238] sm:$0xff]  ;;  %v3102_v52 = vld [vmem:[%s5677_s7 + $0x240] sm:$0xff] }
  0x25   :  { %5847 = vst [vmem:[#allocation76_spill] sm:$0xff] %v3092_v54  ;;  %5848 = vst [vmem:[#allocation77_spill] sm:$0xff] %v3097_v53  ;;  %v3107_v63 = vld [vmem:[%s5677_s7 + $0x248] sm:$0xff]  ;;  %v3112_v55 = vld [vmem:[%s5677_s7 + $0x250] sm:$0xff] }
  0x26   :  { %5849 = vst [vmem:[#allocation78_spill] sm:$0xff] %v3102_v52  ;;  %5850 = vst [vmem:[#allocation79_spill] sm:$0xff] %v3107_v63  ;;  %v3117_v54 = vld [vmem:[%s5677_s7 + $0x258] sm:$0xff]  ;;  %v3122_v53 = vld [vmem:[%s5677_s7 + $0x260] sm:$0xff] }
  0x27   :  { %5851 = vst [vmem:[#allocation80_spill] sm:$0xff] %v3112_v55  ;;  %5852 = vst [vmem:[#allocation81_spill] sm:$0xff] %v3117_v54  ;;  %v3127_v52 = vld [vmem:[%s5677_s7 + $0x268] sm:$0xff]  ;;  %v3132_v63 = vld [vmem:[%s5677_s7 + $0x270] sm:$0xff] }
  0x28   :  { %5853 = vst [vmem:[#allocation82_spill] sm:$0xff] %v3122_v53  ;;  %5854 = vst [vmem:[#allocation83_spill] sm:$0xff] %v3127_v52  ;;  %v3137_v55 = vld [vmem:[%s5677_s7 + $0x278] sm:$0xff]  ;;  %v3142_v54 = vld [vmem:[%s5677_s7 + $0x280] sm:$0xff] }
  0x29   :  { %5855 = vst [vmem:[#allocation84_spill] sm:$0xff] %v3132_v63  ;;  %5856 = vst [vmem:[#allocation85_spill] sm:$0xff] %v3137_v55  ;;  %v3147_v53 = vld [vmem:[%s5677_s7 + $0x288] sm:$0xff]  ;;  %v3152_v52 = vld [vmem:[%s5677_s7 + $0x290] sm:$0xff] }
  0x2a   :  { %5857 = vst [vmem:[#allocation86_spill] sm:$0xff] %v3142_v54  ;;  %5858 = vst [vmem:[#allocation87_spill] sm:$0xff] %v3147_v53  ;;  %v3157_v63 = vld [vmem:[%s5677_s7 + $0x298] sm:$0xff]  ;;  %v3162_v55 = vld [vmem:[%s5677_s7 + $0x2a0] sm:$0xff] }
  0x2b   :  { %5859 = vst [vmem:[#allocation88_spill] sm:$0xff] %v3152_v52  ;;  %5860 = vst [vmem:[#allocation89_spill] sm:$0xff] %v3157_v63  ;;  %v3167_v54 = vld [vmem:[%s5677_s7 + $0x2a8] sm:$0xff]  ;;  %v3172_v53 = vld [vmem:[%s5677_s7 + $0x2b0] sm:$0xff] }
  0x2c   :  { %5861 = vst [vmem:[#allocation90_spill] sm:$0xff] %v3162_v55  ;;  %5862 = vst [vmem:[#allocation91_spill] sm:$0xff] %v3167_v54  ;;  %v3177_v52 = vld [vmem:[%s5677_s7 + $0x2b8] sm:$0xff]  ;;  %v3182_v63 = vld [vmem:[%s5677_s7 + $0x2c0] sm:$0xff] }
  0x2d   :  { %5863 = vst [vmem:[#allocation92_spill] sm:$0xff] %v3172_v53  ;;  %5864 = vst [vmem:[#allocation93_spill] sm:$0xff] %v3177_v52  ;;  %v3187_v55 = vld [vmem:[%s5677_s7 + $0x2c8] sm:$0xff]  ;;  %v3192_v54 = vld [vmem:[%s5677_s7 + $0x2d0] sm:$0xff] }
  0x2e   :  { %5865 = vst [vmem:[#allocation94_spill] sm:$0xff] %v3182_v63  ;;  %5866 = vst [vmem:[#allocation95_spill] sm:$0xff] %v3187_v55  ;;  %v3197_v53 = vld [vmem:[%s5677_s7 + $0x2d8] sm:$0xff]  ;;  %v3202_v52 = vld [vmem:[%s5677_s7 + $0x2e0] sm:$0xff] }
  0x2f   :  { %5867 = vst [vmem:[#allocation96_spill] sm:$0xff] %v3192_v54  ;;  %5868 = vst [vmem:[#allocation97_spill] sm:$0xff] %v3197_v53  ;;  %v3207_v63 = vld [vmem:[%s5677_s7 + $0x2e8] sm:$0xff]  ;;  %v3212_v55 = vld [vmem:[%s5677_s7 + $0x2f0] sm:$0xff] }
  0x30   :  { %5869 = vst [vmem:[#allocation98_spill] sm:$0xff] %v3202_v52  ;;  %5870 = vst [vmem:[#allocation99_spill] sm:$0xff] %v3207_v63  ;;  %v3217_v54 = vld [vmem:[%s5677_s7 + $0x2f8] sm:$0xff]  ;;  %v3222_v53 = vld [vmem:[%s5677_s7 + $0x300] sm:$0xff] }
  0x31   :  { %5871 = vst [vmem:[#allocation100_spill] sm:$0xff] %v3212_v55  ;;  %5872 = vst [vmem:[#allocation101_spill] sm:$0xff] %v3217_v54  ;;  %v3227_v52 = vld [vmem:[%s5677_s7 + $0x308] sm:$0xff]  ;;  %v3232_v63 = vld [vmem:[%s5677_s7 + $0x310] sm:$0xff] }
  0x32   :  { %5873 = vst [vmem:[#allocation102_spill] sm:$0xff] %v3222_v53  ;;  %5874 = vst [vmem:[#allocation103_spill] sm:$0xff] %v3227_v52  ;;  %v3237_v55 = vld [vmem:[%s5677_s7 + $0x318] sm:$0xff]  ;;  %v3242_v54 = vld [vmem:[%s5677_s7 + $0x320] sm:$0xff] }
  0x33   :  { %5875 = vst [vmem:[#allocation104_spill] sm:$0xff] %v3232_v63  ;;  %5876 = vst [vmem:[#allocation105_spill] sm:$0xff] %v3237_v55  ;;  %v3247_v53 = vld [vmem:[%s5677_s7 + $0x328] sm:$0xff]  ;;  %v3252_v52 = vld [vmem:[%s5677_s7 + $0x330] sm:$0xff] }
  0x34   :  { %5877 = vst [vmem:[#allocation106_spill] sm:$0xff] %v3242_v54  ;;  %5878 = vst [vmem:[#allocation107_spill] sm:$0xff] %v3247_v53  ;;  %v3257_v63 = vld [vmem:[%s5677_s7 + $0x338] sm:$0xff]  ;;  %v3262_v55 = vld [vmem:[%s5677_s7 + $0x340] sm:$0xff] }
  0x35   :  { %5879 = vst [vmem:[#allocation108_spill] sm:$0xff] %v3252_v52  ;;  %5880 = vst [vmem:[#allocation109_spill] sm:$0xff] %v3257_v63  ;;  %v283_v54 = vld [vmem:[%s5670_s0 + $0x10] sm:$0xff]  ;;  %v281_v53 = vld [vmem:[%s5670_s0] sm:$0xff] }
  0x36   :  { %5881 = vst [vmem:[#allocation110_spill] sm:$0xff] %v3262_v55  ;;  %297 = vperm.xlu1 %2651, %v283_v54   ;;  %287 = vperm.xlu0 %2650, %v281_v53  }
  0x37   :  { %276 = vsyncadd [#allocation3], 13440  ;;  %v284_v55 = vld [vmem:[%s5670_s0 + $0x18] sm:$0x3f]  ;;  %v282_v63 = vld [vmem:[%s5670_s0 + $0x8] sm:$0xff]  ;;  %vm309_vm0 = vcmask 982016  }
  0x38   :  { %v367_v52 = vld [vmem:[%s5673_s3 + $0x8] sm:$0xff]  ;;  %v374_v54 = vld [vmem:[%s5673_s3 + $0x40] sm:$0xff]  ;;  %v369_v53 = vld [vmem:[%s5673_s3 + $0x18] sm:$0xff]  ;;  %vm315_vm1 = vcmask 979968   ;;  %vm2693_vm2 = vmmov 0   ;;  %vm1126_vm3 = vcmask 130048  }
  0x39   :  { %v2541_v51 = vpack.c.bf16 %v374_v54, %v367_v52  ;;  %v366_v50 = vld [vmem:[%s5673_s3] sm:$0xff]  ;;  %v368_v61 = vld [vmem:[%s5673_s3 + $0x10] sm:$0xff]  ;;  %v375_v52 = vld [vmem:[%s5673_s3 + $0x48] sm:$0xff] }
  0x3a   :  { %302 = vperm.xlu1 %2651, %v284_v55   ;;  %292 = vperm.xlu0 %2650, %v282_v63   ;;  %v373_v55 = vld [vmem:[%s5673_s3 + $0x38] sm:$0xff]  ;;  %v376_v63 = vld [vmem:[%s5673_s3 + $0x50] sm:$0xff]  ;;  %v2571_v54 = vpack.c.bf16 %v375_v52, %v368_v61  ;;  %v390_v61 = vld [vmem:[%s5673_s3 + $0xc0] sm:$0xff] }
  0x3b   :  { %v2543_v49 = vpack.c.bf16 %v373_v55, %v366_v50  ;;  %v2569_v62 = vpack.c.bf16 %v376_v63, %v369_v53  ;;  %2542 = vmatprep.subr.bf16.mxu0 %v2541_v51  ;;  %v381_v60 = vld [vmem:[%s5673_s3 + $0x78] sm:$0xff]  ;;  %v388_v50 = vld [vmem:[%s5673_s3 + $0xb0] sm:$0xff]  ;;  %v383_v53 = vld [vmem:[%s5673_s3 + $0x88] sm:$0xff] }
  0x3c   :  { %v2545_v55 = vpack.c.bf16 %v388_v50, %v381_v60  ;;  %v380_v51 = vld [vmem:[%s5673_s3 + $0x70] sm:$0xff]  ;;  %v2573_v63 = vpack.c.bf16 %v390_v61, %v383_v53  ;;  %v382_v52 = vld [vmem:[%s5673_s3 + $0x80] sm:$0xff]  ;;  %v389_v60 = vld [vmem:[%s5673_s3 + $0xb8] sm:$0xff] }
  0x3d   :  { %2544 = vmatpush1.bf16.msra.mxu0 %v2543_v49  ;;  %2570 = vmatprep.subr.bf16.mxu1 %v2569_v62  ;;  %v387_v49 = vld [vmem:[%s5673_s3 + $0xa8] sm:$0xff]  ;;  %v402_v53 = vld [vmem:[%s5673_s3 + $0x120] sm:$0xff]  ;;  %v401_v61 = vld [vmem:[%s5673_s3 + $0x118] sm:$0xff] }
  0x3e   :  { %2572 = vmatpush1.bf16.msra.mxu1 %v2571_v54  ;;  %v2547_v62 = vpack.c.bf16 %v387_v49, %v380_v51  ;;  %2546 = vmatprep.subr.bf16.mxu0 %v2545_v55  ;;  %v2575_v54 = vpack.c.bf16 %v389_v60, %v382_v52  ;;  %v395_v50 = vld [vmem:[%s5673_s3 + $0xe8] sm:$0xff]  ;;  %v397_v51 = vld [vmem:[%s5673_s3 + $0xf8] sm:$0xff]  ;;  %v394_v55 = vld [vmem:[%s5673_s3 + $0xe0] sm:$0xff] }
  0x3f   :  { %2574 = vmatprep.subr.bf16.mxu1 %v2573_v63  ;;  %v2549_v49 = vpack.c.bf16 %v402_v53, %v395_v50  ;;  %v2551_v63 = vpack.c.bf16 %v401_v61, %v394_v55  ;;  %v396_v60 = vld [vmem:[%s5673_s3 + $0xf0] sm:$0xff]  ;;  %v409_v53 = vld [vmem:[%s5673_s3 + $0x158] sm:$0xff]  ;;  %v411_v55 = vld [vmem:[%s5673_s3 + $0x168] sm:$0xff] }
  0x40   :  { %v442_v47 = vld [vmem:[%s5673_s3 + $0x260] sm:$0xff]  ;;  %v456_v46 = vld [vmem:[%s5673_s3 + $0x2d0] sm:$0xff] }
  0x41   :  { %2548 = vmatpush1.bf16.msra.mxu0 %v2547_v62  ;;  %v404_v62 = vld [vmem:[%s5673_s3 + $0x130] sm:$0xff] }
  0x42   :  { %2576 = vmatpush1.bf16.msra.mxu1 %v2575_v54  ;;  %v2577_v52 = vpack.c.bf16 %v404_v62, %v397_v51  ;;  %v403_v54 = vld [vmem:[%s5673_s3 + $0x128] sm:$0xff]  ;;  %2550 = vmatprep.subr.bf16.mxu0 %v2549_v49  ;;  %v416_v51 = vld [vmem:[%s5673_s3 + $0x190] sm:$0xff] }
  0x43   :  { %v2579_v50 = vpack.c.bf16 %v403_v54, %v396_v60  ;;  %v2553_v61 = vpack.c.bf16 %v416_v51, %v409_v53  ;;  %v408_v49 = vld [vmem:[%s5673_s3 + $0x150] sm:$0xff]  ;;  %v415_v62 = vld [vmem:[%s5673_s3 + $0x188] sm:$0xff]  ;;  %v410_v54 = vld [vmem:[%s5673_s3 + $0x160] sm:$0xff] }
  0x44   :  { %2578 = vmatprep.subr.bf16.mxu1 %v2577_v52  ;;  %v2555_v52 = vpack.c.bf16 %v415_v62, %v408_v49  ;;  %v423_v51 = vld [vmem:[%s5673_s3 + $0x1c8] sm:$0xff]  ;;  %v425_v49 = vld [vmem:[%s5673_s3 + $0x1d8] sm:$0xff] }
  0x45   :  { %2552 = vmatpush1.bf16.msra.mxu0 %v2551_v63  ;;  %v418_v63 = vld [vmem:[%s5673_s3 + $0x1a0] sm:$0xff] }
  0x46   :  { %2580 = vmatpush1.bf16.msra.mxu1 %v2579_v50  ;;  %v2581_v60 = vpack.c.bf16 %v418_v63, %v411_v55  ;;  %v417_v50 = vld [vmem:[%s5673_s3 + $0x198] sm:$0xff]  ;;  %2554 = vmatprep.subr.bf16.mxu0 %v2553_v61  ;;  %v430_v55 = vld [vmem:[%s5673_s3 + $0x200] sm:$0xff] }
  0x47   :  { %v2583_v53 = vpack.c.bf16 %v417_v50, %v410_v54  ;;  %v2557_v62 = vpack.c.bf16 %v430_v55, %v423_v51  ;;  %v422_v61 = vld [vmem:[%s5673_s3 + $0x1c0] sm:$0xff]  ;;  %v429_v63 = vld [vmem:[%s5673_s3 + $0x1f8] sm:$0xff]  ;;  %v424_v50 = vld [vmem:[%s5673_s3 + $0x1d0] sm:$0xff] }
  0x48   :  { %2582 = vmatprep.subr.bf16.mxu1 %v2581_v60  ;;  %v2559_v60 = vpack.c.bf16 %v429_v63, %v422_v61  ;;  %v437_v55 = vld [vmem:[%s5673_s3 + $0x238] sm:$0xff]  ;;  %v439_v61 = vld [vmem:[%s5673_s3 + $0x248] sm:$0xff] }
  0x49   :  { %2556 = vmatpush1.bf16.msra.mxu0 %v2555_v52  ;;  %v432_v52 = vld [vmem:[%s5673_s3 + $0x210] sm:$0xff] }
  0x4a   :  { %2584 = vmatpush1.bf16.msra.mxu1 %v2583_v53  ;;  %v2585_v54 = vpack.c.bf16 %v432_v52, %v425_v49  ;;  %v431_v53 = vld [vmem:[%s5673_s3 + $0x208] sm:$0xff]  ;;  %2558 = vmatprep.subr.bf16.mxu0 %v2557_v62  ;;  %v444_v49 = vld [vmem:[%s5673_s3 + $0x270] sm:$0xff] }
  0x4b   :  { %v2587_v51 = vpack.c.bf16 %v431_v53, %v424_v50  ;;  %v2561_v63 = vpack.c.bf16 %v444_v49, %v437_v55  ;;  %v436_v62 = vld [vmem:[%s5673_s3 + $0x230] sm:$0xff]  ;;  %v443_v52 = vld [vmem:[%s5673_s3 + $0x268] sm:$0xff]  ;;  %v438_v53 = vld [vmem:[%s5673_s3 + $0x240] sm:$0xff] }
  0x4c   :  { %2586 = vmatprep.subr.bf16.mxu1 %v2585_v54  ;;  %v2563_v54 = vpack.c.bf16 %v443_v52, %v436_v62  ;;  %v451_v49 = vld [vmem:[%s5673_s3 + $0x2a8] sm:$0xff]  ;;  %v453_v62 = vld [vmem:[%s5673_s3 + $0x2b8] sm:$0xff] }
  0x4d   :  { %2560 = vmatpush1.bf16.msra.mxu0 %v2559_v60  ;;  %v446_v60 = vld [vmem:[%s5673_s3 + $0x280] sm:$0xff] }
  0x4e   :  { %2588 = vmatpush1.bf16.msra.mxu1 %v2587_v51  ;;  %v2589_v50 = vpack.c.bf16 %v446_v60, %v439_v61  ;;  %v445_v51 = vld [vmem:[%s5673_s3 + $0x278] sm:$0xff]  ;;  %2562 = vmatprep.subr.bf16.mxu0 %v2561_v63  ;;  %v458_v61 = vld [vmem:[%s5673_s3 + $0x2e0] sm:$0xff] }
  0x4f   :  { %v2591_v55 = vpack.c.bf16 %v445_v51, %v438_v53  ;;  %v2565_v52 = vpack.c.bf16 %v458_v61, %v451_v49  ;;  %v450_v63 = vld [vmem:[%s5673_s3 + $0x2a0] sm:$0xff]  ;;  %v457_v60 = vld [vmem:[%s5673_s3 + $0x2d8] sm:$0xff]  ;;  %v452_v51 = vld [vmem:[%s5673_s3 + $0x2b0] sm:$0xff] }
  0x50   :  { %2590 = vmatprep.subr.bf16.mxu1 %v2589_v50  ;;  %v2567_v50 = vpack.c.bf16 %v457_v60, %v450_v63  ;;  %v465_v61 = vld [vmem:[%s5673_s3 + $0x318] sm:$0xff]  ;;  %v467_v63 = vld [vmem:[%s5673_s3 + $0x328] sm:$0xff] }
  0x51   :  { %2564 = vmatpush1.bf16.msra.mxu0 %v2563_v54  ;;  %v460_v54 = vld [vmem:[%s5673_s3 + $0x2f0] sm:$0xff]  ;;  %v371_v60 = vld [vmem:[%s5673_s3 + $0x28] sm:$0xff] }
  0x52   :  { %2592 = vmatpush1.bf16.msra.mxu1 %v2591_v55  ;;  %v2593_v53 = vpack.c.bf16 %v460_v54, %v453_v62  ;;  %v459_v55 = vld [vmem:[%s5673_s3 + $0x2e8] sm:$0xff]  ;;  %2566 = vmatprep.subr.bf16.mxu0 %v2565_v52  ;;  %v464_v62 = vld [vmem:[%s5673_s3 + $0x310] sm:$0xff]  ;;  %v466_v52 = vld [vmem:[%s5673_s3 + $0x320] sm:$0xff] }
  0x53   :  { %v2595_v49 = vpack.c.bf16 %v459_v55, %v452_v51  ;;  %v378_v54 = vld [vmem:[%s5673_s3 + $0x60] sm:$0xff]  ;;  %v5681_v51 = vmov 0.0|0.0  }
  0x54   :  { %2594 = vmatprep.subr.bf16.mxu1 %v2593_v53  ;;  %v2597_v53 = vpack.c.bf16 %v378_v54, %v371_v60  ;;  %v278_v60 = vld [vmem:[%s5671_s1 + $0x8] sm:$0xff]  ;;  %v280_v54 = vld [vmem:[%s5671_s1 + $0x18] sm:$0x3f] }
  0x55   :  { %2568 = vmatpush1.bf16.msra.mxu0 %v2567_v50  ;;  %v5683_v50 = vmov 0.0  }
  0x56   :  { %2596 = vmatpush1.bf16.msra.mxu1 %v2595_v49  ;;  %544 = vmatprep.subr.mxu0 %v465_v61  ;;  %v277_v61 = vld [vmem:[%s5671_s1] sm:$0xff] }
  0x57   :  { %699 = vmatprep.subr.mxu1 %v467_v63  ;;  %580 = vmatprep.mubr.f32.mxu0 %v5683_v50  ;;  %v279_v63 = vld [vmem:[%s5671_s1 + $0x10] sm:$0xff] }
  0x58   :  { %735 = vmatprep.mubr.f32.mxu1 %v5683_v50 }
  0x59   :  { %545 = vmatpush1.msra.mxu0 %v464_v62 }
  0x5a   :  { %700 = vmatpush1.msra.mxu1 %v466_v52  ;;  %2598 = vmatprep.subr.bf16.mxu0 %v2597_v53 }
  0x5b   :  { %2625 = vmatprep.subr.bf16.mxu1 %v5681_v51 }
  0xb5   :  { %v298_v55 = vpop.permute.xlu1 %297  ;;  %v288_v49 = vpop.permute.xlu0 %287 }
  0xb6   :  { %v305_v62 = vmul.f32 %v288_v49, %v277_v61  ;;  %v307_v51 = vmul.f32 %v298_v55, %v279_v63  ;;  %v324_v55 = vld [vmem:[%s5672_s2] sm:$0x1] }
  0xb8   :  { %v310_v59 = vsel %vm309_vm0, %v305_v62, 0.0  ;;  %v313_v41 = vsel %vm309_vm0, %v307_v51, 0.0  ;;  %v385_v51 = vld [vmem:[%s5673_s3 + $0x98] sm:$0xff] }
  0xb9   :  { %v303_v52 = vpop.permute.xlu1 %302  ;;  %v293_v53 = vpop.permute.xlu0 %292 }
  0xba   :  { %v306_v50 = vmul.f32 %v293_v53, %v278_v60  ;;  %v308_v58 = vmul.f32 %v303_v52, %v280_v54  ;;  %v392_v52 = vld [vmem:[%s5673_s3 + $0xd0] sm:$0xff] }
  0xbc   :  { %v311_v57 = vsel %vm309_vm0, %v306_v50, 0.0  ;;  %v316_v49 = vsel %vm315_vm1, %v308_v58, 0.0 }
  0xbd   :  { %v312_v56 = vadd.f32 %v311_v57, %v310_v59  ;;  %v347_v59 = vlaneseq }
  0xbf   :  { %v314_v40 = vadd.f32 %v313_v41, %v312_v56  ;;  %v348_v41 = vshrl.u32 %v347_v59, 7  ;;  %v406_v59 = vld [vmem:[%s5673_s3 + $0x140] sm:$0xff] }
  0xc1   :  { %v317_v61 = vadd.f32 %v316_v49, %v314_v40  ;;  %v349_v56 = vsub.s32 0, %v348_v41  ;;  %v379_v40 = vld [vmem:[%s5673_s3 + $0x68] sm:$0xff]  ;;  %v5882_v41 = vmov 0.0  }
  0xc3   :  { %v318_v39 = vrot.slane %v317_v61, 4 }
  0xc5   :  { %v319_v38 = vadd.f32 %v318_v39, %v317_v61  ;;  %v370_v39 = vld [vmem:[%s5673_s3 + $0x20] sm:$0xff]  ;;  %v333_v61 = vld [vmem:[%s5674_s4 + $0x8] sm:$0xff] }
  0xc7   :  { %v320_v37 = vrot.slane %v319_v38, 2 }
  0xc9   :  { %v321_v36 = vadd.f32 %v320_v37, %v319_v38  ;;  %v377_v37 = vld [vmem:[%s5673_s3 + $0x58] sm:$0xff] }
  0xca   :  { %v2599_v54 = vpack.c.bf16 %v377_v37, %v370_v39  ;;  %v334_v39 = vld [vmem:[%s5674_s4 + $0x10] sm:$0xff] }
  0xcb   :  { %v322_v35 = vrot.slane %v321_v36, 1 }
  0xcd   :  { %v323_v63 = vadd.f32 %v322_v35, %v321_v36  ;;  %v332_v35 = vld [vmem:[%s5674_s4] sm:$0xff]  ;;  %v372_v36 = vld [vmem:[%s5673_s3 + $0x30] sm:$0xff] }
  0xce   :  { %v2626_v49 = vpack.c.bf16 %v379_v40, %v372_v36  ;;  %v5883_v36 = vmov 0.0|0.0  }
  0xcf   :  { %v325_v60 = vadd.f32 %v324_v55, %v323_v63  ;;  %v384_v55 = vld [vmem:[%s5673_s3 + $0x90] sm:$0xff]  ;;  %v2601_v63 = vpack.c.bf16 %v392_v52, %v385_v51  ;;  %v405_v51 = vld [vmem:[%s5673_s3 + $0x138] sm:$0xff] }
  0xd0   :  { %v400_v52 = vld [vmem:[%s5673_s3 + $0x110] sm:$0xff] }
  0xd1   :  { %v2374_v62 = vmul.f32 -1.442695, %v325_v60  ;;  %v391_v60 = vld [vmem:[%s5673_s3 + $0xc8] sm:$0xff] }
  0xd2   :  { %v2603_v37 = vpack.c.bf16 %v391_v60, %v384_v55 }
  0xd3   :  { %2652 = vpow2.f32 %v2374_v62  ;;  %v386_v62 = vld [vmem:[%s5673_s3 + $0xa0] sm:$0xff] }
  0xdd   :  { %v2653_v50 = vpop.eup %2652 }
  0xde   :  { %v329_v57 = vadd.f32 1.0, %v2653_v50  ;;  %v393_v50 = vld [vmem:[%s5673_s3 + $0xd8] sm:$0xff] }
  0xe0   :  { %2654 = vrcp.f32 %v329_v57  ;;  %v399_v57 = vld [vmem:[%s5673_s3 + $0x108] sm:$0xff] }
  0xe1   :  { %v2605_v40 = vpack.c.bf16 %v406_v59, %v399_v57  ;;  %v419_v59 = vld [vmem:[%s5673_s3 + $0x1a8] sm:$0xff] }
  0xea   :  { %v2655_v38 = vpop.eup %2654 }
  0xeb   :  { %v3500_v58 = vrot.slane %v2655_v38, %v349_v56  ;;  %v2629_v38 = vpack.c.bf16 %v393_v50, %v386_v62  ;;  %v412_v50 = vld [vmem:[%s5673_s3 + $0x170] sm:$0xff] }
  0xed   :  { %v3509_v53 = vmul.f32 %v3500_v58, %v332_v35  ;;  %v3539_v56 = vmul.f32 %v3500_v58, %v333_v61  ;;  %v398_v35 = vld [vmem:[%s5673_s3 + $0x100] sm:$0xff]  ;;  %v420_v61 = vld [vmem:[%s5673_s3 + $0x1b0] sm:$0xff]  ;;  %v3570_v55 = vmul.f32 %v3500_v58, %v334_v39 }
  0xee   :  { %v2607_v60 = vpack.c.bf16 %v405_v51, %v398_v35  ;;  %v414_v39 = vld [vmem:[%s5673_s3 + $0x180] sm:$0xff] }
  0xef   :  { %2375 = vmatmul.mubr.msk.f32.vlgmr.msra.gmra.mrb[0].mxu0 %vm309_vm0, %v3509_v53  ;;  %2390 = vmatmul.mubr.msk.f32.vlgmr.msra.gmra.mrb[0].mxu1 %vm309_vm0, %v3509_v53  ;;  %v434_v35 = vld [vmem:[%s5673_s3 + $0x220] sm:$0xff] }
  0xf0   :  { %2600 = vmatpush1.bf16.msra.mxu0 %v2599_v54  ;;  %586 = vmatprep.mubr.f32.mxu0 %v5882_v41  ;;  %v407_v54 = vld [vmem:[%s5673_s3 + $0x148] sm:$0xff]  ;;  %v336_v51 = vld [vmem:[%s5674_s4 + $0x20] sm:$0xff] }
  0xf1   :  { %741 = vmatprep.mubr.f32.mxu1 %v5882_v41  ;;  %2627 = vmatpush3.bf16.msra.mxu1 %v2626_v49  ;;  %v413_v49 = vld [vmem:[%s5673_s3 + $0x178] sm:$0xff]  ;;  %v2632_v62 = vpack.c.bf16 %v407_v54, %v400_v52  ;;  %v2611_v52 = vpack.c.bf16 %v419_v59, %v412_v50  ;;  %v3632_v59 = vmul.f32 %v3500_v58, %v336_v51  ;;  %v447_v51 = vld [vmem:[%s5673_s3 + $0x288] sm:$0xff] }
  0xf2   :  { %2602 = vmatprep.subr.bf16.mxu0 %v2601_v63  ;;  %2628 = vmatprep.subr.bf16.mxu1 %v5883_v36  ;;  %v335_v63 = vld [vmem:[%s5674_s4 + $0x18] sm:$0xff]  ;;  %v2609_v57 = vpack.c.bf16 %v420_v61, %v413_v49  ;;  %v426_v49 = vld [vmem:[%s5673_s3 + $0x1e0] sm:$0xff] }
  0xf3   :  { %2376 = vmatmul.mubr.msk.f32.gmra.mrb[2].mxu0 %vm309_vm0, %v3539_v56  ;;  %2391 = vmatmul.mubr.msk.f32.gmra.mrb[2].mxu1 %vm309_vm0, %v3539_v56  ;;  %v441_v50 = vld [vmem:[%s5673_s3 + $0x258] sm:$0xff] }
  0xf4   :  { %592 = vmatprep.mubr.f32.mxu0 %v5882_v41  ;;  %747 = vmatprep.mubr.f32.mxu1 %v5882_v41 }
  0xf5   :  { %2604 = vmatpush1.bf16.msra.mxu0 %v2603_v37  ;;  %2630 = vmatpush3.bf16.msra.mxu1 %v2629_v38  ;;  %v421_v37 = vld [vmem:[%s5673_s3 + $0x1b8] sm:$0xff]  ;;  %v427_v38 = vld [vmem:[%s5673_s3 + $0x1e8] sm:$0xff] }
  0xf6   :  { %2606 = vmatprep.subr.bf16.mxu0 %v2605_v40  ;;  %2631 = vmatprep.subr.bf16.mxu1 %v5883_v36  ;;  %v3601_v40 = vmul.f32 %v3500_v58, %v335_v63  ;;  %v2635_v54 = vpack.c.bf16 %v421_v37, %v414_v39  ;;  %v2613_v61 = vpack.c.bf16 %v434_v35, %v427_v38  ;;  %v433_v63 = vld [vmem:[%s5673_s3 + $0x218] sm:$0xff]  ;;  %v337_v39 = vld [vmem:[%s5674_s4 + $0x28] sm:$0xff]  ;;  %v440_v35 = vld [vmem:[%s5673_s3 + $0x250] sm:$0xff] }
  0xf7   :  { %2377 = vmatmul.mubr.msk.f32.gmra.mrb[4].mxu0 %vm309_vm0, %v3570_v55  ;;  %2392 = vmatmul.mubr.msk.f32.gmra.mrb[4].mxu1 %vm309_vm0, %v3570_v55  ;;  %v2615_v37 = vpack.c.bf16 %v433_v63, %v426_v49  ;;  %v462_v49 = vld [vmem:[%s5673_s3 + $0x300] sm:$0xff]  ;;  %v338_v63 = vld [vmem:[%s5674_s4 + $0x30] sm:$0xff] }
  0xf8   :  { %598 = vmatprep.mubr.f32.mxu0 %v5882_v41  ;;  %753 = vmatprep.mubr.f32.mxu1 %v5882_v41 }
  0xf9   :  { %2608 = vmatpush1.bf16.msra.mxu0 %v2607_v60  ;;  %2633 = vmatpush3.bf16.msra.mxu1 %v2632_v62  ;;  %v428_v60 = vld [vmem:[%s5673_s3 + $0x1f0] sm:$0xff]  ;;  %v435_v62 = vld [vmem:[%s5673_s3 + $0x228] sm:$0xff] }
  0xfa   :  { %2610 = vmatprep.subr.bf16.mxu0 %v2609_v57  ;;  %2634 = vmatprep.subr.bf16.mxu1 %v5883_v36  ;;  %v448_v57 = vld [vmem:[%s5673_s3 + $0x290] sm:$0xff]  ;;  %v2638_v38 = vpack.c.bf16 %v435_v62, %v428_v60  ;;  %v2619_v60 = vpack.c.bf16 %v447_v51, %v440_v35  ;;  %v339_v35 = vld [vmem:[%s5674_s4 + $0x38] sm:$0xff] }
  0xfb   :  { %2378 = vmatmul.mubr.msk.f32.gmra.mrb[6].mxu0 %vm309_vm0, %v3601_v40  ;;  %2393 = vmatmul.mubr.msk.f32.gmra.mrb[6].mxu1 %vm309_vm0, %v3601_v40  ;;  %v2617_v48 = vpack.c.bf16 %v448_v57, %v441_v50  ;;  %v454_v50 = vld [vmem:[%s5673_s3 + $0x2c0] sm:$0xff]  ;;  %v469_v51 = vld [vmem:[%s5673_s3 + $0x338] sm:$0xff] }
  0xfc   :  { %604 = vmatprep.mubr.f32.mxu0 %v5882_v41  ;;  %759 = vmatprep.mubr.f32.mxu1 %v5882_v41 }
  0xfd   :  { %2612 = vmatpush1.bf16.msra.mxu0 %v2611_v52  ;;  %2636 = vmatpush3.bf16.msra.mxu1 %v2635_v54  ;;  %v449_v52 = vld [vmem:[%s5673_s3 + $0x298] sm:$0xff]  ;;  %v455_v54 = vld [vmem:[%s5673_s3 + $0x2c8] sm:$0xff] }
  0xfe   :  { %2614 = vmatprep.subr.bf16.mxu0 %v2613_v61  ;;  %2637 = vmatprep.subr.bf16.mxu1 %v5883_v36  ;;  %v3663_v61 = vmul.f32 %v3500_v58, %v337_v39  ;;  %v2641_v62 = vpack.c.bf16 %v449_v52, %v442_v47  ;;  %v2621_v57 = vpack.c.bf16 %v462_v49, %v455_v54  ;;  %v461_v39 = vld [vmem:[%s5673_s3 + $0x2f8] sm:$0xff]  ;;  %v463_v47 = vld [vmem:[%s5673_s3 + $0x308] sm:$0xff]  ;;  %v468_v52 = vld [vmem:[%s5673_s3 + $0x330] sm:$0xff] }
  0xff   :  { %2379 = vmatmul.mubr.msk.f32.gmra.mrb[8].mxu0 %vm309_vm0, %v3632_v59  ;;  %2394 = vmatmul.mubr.msk.f32.gmra.mrb[8].mxu1 %vm309_vm0, %v3632_v59  ;;  %v470_v54 = vld [vmem:[%s5673_s3 + $0x340] sm:$0xff] }
 0x100   :  { %610 = vmatprep.mubr.f32.mxu0 %v5882_v41  ;;  %765 = vmatprep.mubr.f32.mxu1 %v5882_v41 }
 0x101   :  { %2616 = vmatpush1.bf16.msra.mxu0 %v2615_v37  ;;  %2639 = vmatpush3.bf16.msra.mxu1 %v2638_v38  ;;  %v2623_v37 = vpack.c.bf16 %v461_v39, %v454_v50  ;;  %v2644_v38 = vpack.c.bf16 %v463_v47, %v456_v46  ;;  %v3704_v46 = vmul.f32 %v3500_v58, %v339_v35  ;;  %v344_v47 = vld [vmem:[%s5674_s4 + $0x60] sm:$0xff] }
 0x102   :  { %2618 = vmatprep.subr.bf16.mxu0 %v2617_v48  ;;  %2640 = vmatprep.subr.bf16.mxu1 %v5883_v36  ;;  %v3688_v48 = vmul.f32 %v3500_v58, %v338_v63  ;;  %v341_v63 = vld [vmem:[%s5674_s4 + $0x48] sm:$0xff] }
 0x103   :  { %2380 = vmatmul.mubr.msk.f32.gmra.mrb[10].mxu0 %vm309_vm0, %v3663_v61  ;;  %2395 = vmatmul.mubr.msk.f32.gmra.mrb[10].mxu1 %vm309_vm0, %v3663_v61 }
 0x104   :  { %616 = vmatprep.mubr.f32.mxu0 %v5882_v41  ;;  %771 = vmatprep.mubr.f32.mxu1 %v5882_v41 }
 0x105   :  { %2620 = vmatpush1.bf16.msra.mxu0 %v2619_v60  ;;  %2642 = vmatpush3.bf16.msra.mxu1 %v2641_v62  ;;  %v3735_v60 = vmul.f32 %v3500_v58, %v341_v63  ;;  %v342_v62 = vld [vmem:[%s5674_s4 + $0x50] sm:$0xff] }
 0x106   :  { %2622 = vmatprep.subr.bf16.mxu0 %v2621_v57  ;;  %2643 = vmatprep.subr.bf16.mxu1 %v5883_v36  ;;  %v340_v36 = vld [vmem:[%s5674_s4 + $0x40] sm:$0xff]  ;;  %v3747_v50 = vmul.f32 %v3500_v58, %v342_v62  ;;  %v343_v57 = vld [vmem:[%s5674_s4 + $0x58] sm:$0xff] }
 0x107   :  { %2381 = vmatmul.mubr.msk.f32.gmra.mrb[12].mxu0 %vm309_vm0, %v3688_v48  ;;  %2396 = vmatmul.mubr.msk.f32.gmra.mrb[12].mxu1 %vm309_vm0, %v3688_v48  ;;  %v3723_v49 = vmul.f32 %v3500_v58, %v340_v36  ;;  %v3759_v39 = vmul.f32 %v3500_v58, %v343_v57 }
 0x108   :  { %622 = vmatprep.mubr.f32.mxu0 %v5882_v41  ;;  %777 = vmatprep.mubr.f32.mxu1 %v5882_v41 }
 0x109   :  { %2624 = vmatpush1.bf16.msra.mxu0 %v2623_v37  ;;  %2645 = vmatpush3.bf16.msra.mxu1 %v2644_v38  ;;  %v3771_v37 = vmul.f32 %v3500_v58, %v344_v47  ;;  %v345_v38 = vld [vmem:[%s5674_s4 + $0x68] sm:$0xff] }
 0x10a   :  { %854 = vmatprep.subr.mxu0 %v469_v51  ;;  %2494 = vmatprep.subr.mxu1 %v5882_v41  ;;  %v3783_v35 = vmul.f32 %v3500_v58, %v345_v38  ;;  %v346_v51 = vld [vmem:[%s5674_s4 + $0x70] sm:$0xff] }
 0x10b   :  { %2382 = vmatmul.mubr.msk.f32.gmra.mrb[14].mxu0 %vm309_vm0, %v3704_v46  ;;  %2397 = vmatmul.mubr.msk.f32.gmra.mrb[14].mxu1 %vm309_vm0, %v3704_v46  ;;  %v3795_v36 = vmul.f32 %v3500_v58, %v346_v51 }
 0x10c   :  { %628 = vmatprep.mubr.f32.mxu0 %v5882_v41  ;;  %783 = vmatprep.mubr.f32.mxu1 %v5882_v41 }
 0x10d   :  { %855 = vmatpush1.msra.mxu0 %v468_v52  ;;  %2495 = vmatpush3.msra.mxu1 %v470_v54 }
 0x10f   :  { %2383 = vmatmul.mubr.msk.f32.gmra.mrb[16].mxu0 %vm309_vm0, %v3723_v49  ;;  %2398 = vmatmul.mubr.msk.f32.gmra.mrb[16].mxu1 %vm309_vm0, %v3723_v49 }
 0x110   :  { %634 = vmatprep.mubr.f32.mxu0 %v5882_v41  ;;  %789 = vmatprep.mubr.f32.mxu1 %v5882_v41 }
 0x113   :  { %2384 = vmatmul.mubr.msk.f32.gmra.mrb[18].mxu0 %vm309_vm0, %v3735_v60  ;;  %2399 = vmatmul.mubr.msk.f32.gmra.mrb[18].mxu1 %vm309_vm0, %v3735_v60 }
 0x114   :  { %640 = vmatprep.mubr.f32.mxu0 %v5882_v41  ;;  %795 = vmatprep.mubr.f32.mxu1 %v5882_v41 }
 0x117   :  { %2385 = vmatmul.mubr.msk.f32.gmra.mrb[20].mxu0 %vm309_vm0, %v3747_v50  ;;  %2400 = vmatmul.mubr.msk.f32.gmra.mrb[20].mxu1 %vm309_vm0, %v3747_v50 }
 0x118   :  { %646 = vmatprep.mubr.f32.mxu0 %v5882_v41  ;;  %801 = vmatprep.mubr.f32.mxu1 %v5882_v41 }
 0x11b   :  { %2386 = vmatmul.mubr.msk.f32.gmra.mrb[22].mxu0 %vm309_vm0, %v3759_v39  ;;  %2401 = vmatmul.mubr.msk.f32.gmra.mrb[22].mxu1 %vm309_vm0, %v3759_v39 }
 0x11c   :  { %652 = vmatprep.mubr.f32.mxu0 %v5882_v41  ;;  %807 = vmatprep.mubr.f32.mxu1 %v5882_v41 }
 0x11f   :  { %2387 = vmatmul.mubr.msk.f32.gmra.mrb[24].mxu0 %vm309_vm0, %v3771_v37  ;;  %2402 = vmatmul.mubr.msk.f32.gmra.mrb[24].mxu1 %vm309_vm0, %v3771_v37 }
 0x120   :  { %658 = vmatprep.mubr.f32.mxu0 %v5882_v41  ;;  %813 = vmatprep.mubr.f32.mxu1 %v5882_v41 }
 0x123   :  { %2388 = vmatmul.mubr.msk.f32.gmra.mrb[26].mxu0 %vm309_vm0, %v3783_v35  ;;  %2403 = vmatmul.mubr.msk.f32.gmra.mrb[26].mxu1 %vm309_vm0, %v3783_v35 }
 0x124   :  { %664 = vmatprep.mubr.f32.mxu0 %v5882_v41  ;;  %819 = vmatprep.mubr.f32.mxu1 %v5882_v41 }
 0x127   :  { %2389 = vmatmul.mubr.msk.f32.gmra.mrb[28].mxu0 %vm309_vm0, %v3795_v36  ;;  %2404 = vmatmul.mubr.msk.f32.gmra.mrb[28].mxu1 %vm309_vm0, %v3795_v36 }
 0x128   :  { %890 = vmatprep.mubr.f32.mxu0 %v5882_v41  ;;  %2496 = vmatprep.mubr.msk.f32.mxu1 %vm2693_vm2, %v5882_v41 }
 0x12b   :  { %2405 = vmatmul.mubr.msk.f32.vlgmr.msra.gmra.mrb[30].mxu0 %vm309_vm0, %v3509_v53  ;;  %2497 = vmatmul.mubr.msk.f32.vlgmr.msra.gmra.mrb[30].mxu1 %vm309_vm0, %v3509_v53 }
 0x12c   :  { %896 = vmatprep.mubr.f32.mxu0 %v5882_v41  ;;  %2499 = vmatprep.mubr.msk.f32.mxu1 %vm2693_vm2, %v5882_v41 }
 0x12f   :  { %2406 = vmatmul.mubr.msk.f32.gmra.mrb[32].mxu0 %vm309_vm0, %v3539_v56  ;;  %2500 = vmatmul.mubr.msk.f32.gmra.mrb[32].mxu1 %vm309_vm0, %v3539_v56 }
 0x130   :  { %902 = vmatprep.mubr.f32.mxu0 %v5882_v41  ;;  %2502 = vmatprep.mubr.msk.f32.mxu1 %vm2693_vm2, %v5882_v41 }
 0x133   :  { %2407 = vmatmul.mubr.msk.f32.gmra.mrb[34].mxu0 %vm309_vm0, %v3570_v55  ;;  %2503 = vmatmul.mubr.msk.f32.gmra.mrb[34].mxu1 %vm309_vm0, %v3570_v55 }
 0x134   :  { %908 = vmatprep.mubr.f32.mxu0 %v5882_v41  ;;  %2505 = vmatprep.mubr.msk.f32.mxu1 %vm2693_vm2, %v5882_v41 }
 0x137   :  { %2408 = vmatmul.mubr.msk.f32.gmra.mrb[36].mxu0 %vm309_vm0, %v3601_v40  ;;  %2506 = vmatmul.mubr.msk.f32.gmra.mrb[36].mxu1 %vm309_vm0, %v3601_v40 }
 0x138   :  { %914 = vmatprep.mubr.f32.mxu0 %v5882_v41  ;;  %2508 = vmatprep.mubr.msk.f32.mxu1 %vm2693_vm2, %v5882_v41 }
 0x13b   :  { %2409 = vmatmul.mubr.msk.f32.gmra.mrb[38].mxu0 %vm309_vm0, %v3632_v59  ;;  %2509 = vmatmul.mubr.msk.f32.gmra.mrb[38].mxu1 %vm309_vm0, %v3632_v59 }
 0x13c   :  { %920 = vmatprep.mubr.f32.mxu0 %v5882_v41  ;;  %2511 = vmatprep.mubr.msk.f32.mxu1 %vm2693_vm2, %v5882_v41 }
 0x13f   :  { %2410 = vmatmul.mubr.msk.f32.gmra.mrb[40].mxu0 %vm309_vm0, %v3663_v61  ;;  %2512 = vmatmul.mubr.msk.f32.gmra.mrb[40].mxu1 %vm309_vm0, %v3663_v61 }
 0x140   :  { %926 = vmatprep.mubr.f32.mxu0 %v5882_v41  ;;  %2514 = vmatprep.mubr.msk.f32.mxu1 %vm2693_vm2, %v5882_v41 }
 0x143   :  { %2411 = vmatmul.mubr.msk.f32.gmra.mrb[42].mxu0 %vm309_vm0, %v3688_v48  ;;  %2515 = vmatmul.mubr.msk.f32.gmra.mrb[42].mxu1 %vm309_vm0, %v3688_v48 }
 0x144   :  { %932 = vmatprep.mubr.f32.mxu0 %v5882_v41  ;;  %2517 = vmatprep.mubr.msk.f32.mxu1 %vm2693_vm2, %v5882_v41 }
 0x147   :  { %2412 = vmatmul.mubr.msk.f32.gmra.mrb[44].mxu0 %vm309_vm0, %v3704_v46  ;;  %2518 = vmatmul.mubr.msk.f32.gmra.mrb[44].mxu1 %vm309_vm0, %v3704_v46 }
 0x148   :  { %938 = vmatprep.mubr.f32.mxu0 %v5882_v41  ;;  %2520 = vmatprep.mubr.msk.f32.mxu1 %vm2693_vm2, %v5882_v41 }
 0x14b   :  { %2413 = vmatmul.mubr.msk.f32.gmra.mrb[46].mxu0 %vm309_vm0, %v3723_v49  ;;  %2521 = vmatmul.mubr.msk.f32.gmra.mrb[46].mxu1 %vm309_vm0, %v3723_v49 }
 0x14c   :  { %944 = vmatprep.mubr.f32.mxu0 %v5882_v41  ;;  %2523 = vmatprep.mubr.msk.f32.mxu1 %vm2693_vm2, %v5882_v41 }
 0x14f   :  { %2414 = vmatmul.mubr.msk.f32.gmra.mrb[48].mxu0 %vm309_vm0, %v3735_v60  ;;  %2524 = vmatmul.mubr.msk.f32.gmra.mrb[48].mxu1 %vm309_vm0, %v3735_v60 }
 0x150   :  { %950 = vmatprep.mubr.f32.mxu0 %v5882_v41  ;;  %2526 = vmatprep.mubr.msk.f32.mxu1 %vm2693_vm2, %v5882_v41 }
 0x153   :  { %2415 = vmatmul.mubr.msk.f32.gmra.mrb[50].mxu0 %vm309_vm0, %v3747_v50  ;;  %2527 = vmatmul.mubr.msk.f32.gmra.mrb[50].mxu1 %vm309_vm0, %v3747_v50 }
 0x154   :  { %956 = vmatprep.mubr.f32.mxu0 %v5882_v41  ;;  %2529 = vmatprep.mubr.msk.f32.mxu1 %vm2693_vm2, %v5882_v41 }
 0x157   :  { %2416 = vmatmul.mubr.msk.f32.gmra.mrb[52].mxu0 %vm309_vm0, %v3759_v39  ;;  %2530 = vmatmul.mubr.msk.f32.gmra.mrb[52].mxu1 %vm309_vm0, %v3759_v39 }
 0x158   :  { %962 = vmatprep.mubr.f32.mxu0 %v5882_v41  ;;  %2532 = vmatprep.mubr.msk.f32.mxu1 %vm2693_vm2, %v5882_v41 }
 0x15b   :  { %2417 = vmatmul.mubr.msk.f32.gmra.mrb[54].mxu0 %vm309_vm0, %v3771_v37  ;;  %2533 = vmatmul.mubr.msk.f32.gmra.mrb[54].mxu1 %vm309_vm0, %v3771_v37 }
 0x15c   :  { %968 = vmatprep.mubr.f32.mxu0 %v5882_v41  ;;  %2535 = vmatprep.mubr.msk.f32.mxu1 %vm2693_vm2, %v5882_v41 }
 0x15f   :  { %2418 = vmatmul.mubr.msk.f32.gmra.mrb[56].mxu0 %vm309_vm0, %v3783_v35  ;;  %2536 = vmatmul.mubr.msk.f32.gmra.mrb[56].mxu1 %vm309_vm0, %v3783_v35 }
 0x160   :  { %974 = vmatprep.mubr.f32.mxu0 %v5882_v41  ;;  %2538 = vmatprep.mubr.msk.f32.mxu1 %vm2693_vm2, %v5882_v41 }
 0x163   :  { %2419 = vmatmul.mubr.msk.f32.gmra.mrb[58].mxu0 %vm309_vm0, %v3795_v36  ;;  %2539 = vmatmul.mubr.msk.f32.gmra.mrb[58].mxu1 %vm309_vm0, %v3795_v36 }
 0x1c2   :  { %v3906_v58 = vpop.f32.mrb[0].mxu0  ;;  %v3908_v53 = vpop.f32.mrb[0].mxu1 }
 0x1c3   :  { %v1272_v56 = vmul.f32 %v3906_v58, %v3906_v58  ;;  %v3912_v55 = vpop.f32.mrb[1].mxu0  ;;  %v3914_v40 = vpop.f32.mrb[1].mxu1  ;;  %v1274_v61 = vmul.f32 %v3908_v53, %v3908_v53 }
 0x1c4   :  { %v1121_v41 = vadd.f32 %v3912_v55, %v3906_v58  ;;  %v1273_v59 = vmul.f32 %v3912_v55, %v3912_v55  ;;  %v1275_v49 = vmul.f32 %v3914_v40, %v3914_v40 }
 0x1c6   :  { %v1377_v48 = vadd.f32 %v1273_v59, %v1272_v56  ;;  %v1122_v46 = vadd.f32 %v1121_v41, %v3908_v53  ;;  %v3923_v52 = vpop.f32.mrb[2].mxu0  ;;  %v3925_v54 = vpop.f32.mrb[2].mxu1 }
 0x1c7   :  { %5884 = vst [vmem:[#allocation111_spill] sm:$0xff] %v3923_v52  ;;  %5885 = vst [vmem:[#allocation112_spill] sm:$0xff] %v3925_v54  ;;  %v1279_v63 = vmul.f32 %v3923_v52, %v3923_v52  ;;  %v3931_v60 = vpop.f32.mrb[3].mxu0  ;;  %v3933_v62 = vpop.f32.mrb[3].mxu1  ;;  %v1281_v38 = vmul.f32 %v3925_v54, %v3925_v54 }
 0x1c8   :  { %5886 = vst [vmem:[#allocation113_spill] sm:$0xff] %v3931_v60  ;;  %5887 = vst [vmem:[#allocation114_spill] sm:$0xff] %v3933_v62  ;;  %v3936_v50 = vadd.f32 %v1122_v46, %v3914_v40  ;;  %v1378_v57 = vadd.f32 %v1377_v48, %v1274_v61  ;;  %v1131_v39 = vadd.f32 %v3931_v60, %v3923_v52 }
 0x1c9   :  { %v1280_v47 = vmul.f32 %v3931_v60, %v3931_v60  ;;  %v1282_v41 = vmul.f32 %v3933_v62, %v3933_v62 }
 0x1ca   :  { %v3942_v37 = vadd.f32 %v1378_v57, %v1275_v49  ;;  %v1132_v51 = vadd.f32 %v1131_v39, %v3925_v54  ;;  %v3947_v36 = vpop.f32.mrb[4].mxu0  ;;  %v3949_v56 = vpop.f32.mrb[4].mxu1 }
 0x1cb   :  { %v1386_v35 = vadd.f32 %v1280_v47, %v1279_v63  ;;  %v1286_v59 = vmul.f32 %v3947_v36, %v3947_v36  ;;  %v3955_v61 = vpop.f32.mrb[5].mxu0  ;;  %v3957_v48 = vpop.f32.mrb[5].mxu1  ;;  %v1288_v47 = vmul.f32 %v3949_v56, %v3949_v56 }
 0x1cc   :  { %v3960_v46 = vadd.f32 %v1132_v51, %v3933_v62  ;;  %v1140_v63 = vadd.f32 %v3955_v61, %v3947_v36  ;;  %v1287_v57 = vmul.f32 %v3955_v61, %v3955_v61 }
 0x1cd   :  { %v1387_v49 = vadd.f32 %v1386_v35, %v1281_v38  ;;  %v1289_v38 = vmul.f32 %v3957_v48, %v3957_v48 }
 0x1ce   :  { %v1395_v45 = vadd.f32 %v1287_v57, %v1286_v59  ;;  %v1141_v44 = vadd.f32 %v1140_v63, %v3949_v56  ;;  %v3971_v43 = vpop.f32.mrb[6].mxu0  ;;  %v3973_v42 = vpop.f32.mrb[6].mxu1 }
 0x1cf   :  { %v3966_v39 = vadd.f32 %v1387_v49, %v1282_v41  ;;  %5888 = vst [vmem:[#allocation115_spill] sm:$0xff] %v3971_v43  ;;  %5889 = vst [vmem:[#allocation116_spill] sm:$0xff] %v3973_v42  ;;  %v1293_v35 = vmul.f32 %v3971_v43, %v3971_v43  ;;  %v3979_v51 = vpop.f32.mrb[7].mxu0  ;;  %v3981_v41 = vpop.f32.mrb[7].mxu1  ;;  %v1295_v26 = vmul.f32 %v3973_v42, %v3973_v42 }
 0x1d0   :  { %5890 = vst [vmem:[#allocation117_spill] sm:$0xff] %v3979_v51  ;;  %5891 = vst [vmem:[#allocation118_spill] sm:$0xff] %v3981_v41  ;;  %v3984_v49 = vadd.f32 %v1141_v44, %v3957_v48  ;;  %v1396_v59 = vadd.f32 %v1395_v45, %v1288_v47  ;;  %v1149_v63 = vadd.f32 %v3979_v51, %v3971_v43 }
 0x1d1   :  { %v1294_v57 = vmul.f32 %v3979_v51, %v3979_v51  ;;  %v1296_v44 = vmul.f32 %v3981_v41, %v3981_v41 }
 0x1d2   :  { %v3990_v27 = vadd.f32 %v1396_v59, %v1289_v38  ;;  %v1150_v24 = vadd.f32 %v1149_v63, %v3973_v42  ;;  %v3995_v23 = vpop.f32.mrb[8].mxu0  ;;  %v3997_v22 = vpop.f32.mrb[8].mxu1 }
 0x1d3   :  { %v1404_v25 = vadd.f32 %v1294_v57, %v1293_v35  ;;  %5892 = vst [vmem:[#allocation119_spill] sm:$0xff] %v3995_v23  ;;  %5893 = vst [vmem:[#allocation120_spill] sm:$0xff] %v3997_v22  ;;  %v1300_v45 = vmul.f32 %v3995_v23, %v3995_v23  ;;  %v4003_v47 = vpop.f32.mrb[9].mxu0  ;;  %v4005_v38 = vpop.f32.mrb[9].mxu1  ;;  %v1302_v34 = vmul.f32 %v3997_v22, %v3997_v22 }
 0x1d4   :  { %5894 = vst [vmem:[#allocation121_spill] sm:$0xff] %v4003_v47  ;;  %5895 = vst [vmem:[#allocation122_spill] sm:$0xff] %v4005_v38  ;;  %v4008_v59 = vadd.f32 %v1150_v24, %v3981_v41  ;;  %v1158_v63 = vadd.f32 %v4003_v47, %v3995_v23  ;;  %v1301_v57 = vmul.f32 %v4003_v47, %v4003_v47 }
 0x1d5   :  { %v1405_v35 = vadd.f32 %v1404_v25, %v1295_v26  ;;  %v1303_v24 = vmul.f32 %v4005_v38, %v4005_v38 }
 0x1d6   :  { %v1413_v33 = vadd.f32 %v1301_v57, %v1300_v45  ;;  %v1159_v32 = vadd.f32 %v1158_v63, %v3997_v22  ;;  %v4019_v31 = vpop.f32.mrb[10].mxu0  ;;  %v4021_v30 = vpop.f32.mrb[10].mxu1 }
 0x1d7   :  { %v4014_v21 = vadd.f32 %v1405_v35, %v1296_v44  ;;  %5896 = vst [vmem:[#allocation123_spill] sm:$0xff] %v4019_v31  ;;  %5897 = vst [vmem:[#allocation124_spill] sm:$0xff] %v4021_v30  ;;  %v1307_v25 = vmul.f32 %v4019_v31, %v4019_v31  ;;  %v4027_v26 = vpop.f32.mrb[11].mxu0  ;;  %v4029_v44 = vpop.f32.mrb[11].mxu1  ;;  %v1309_v28 = vmul.f32 %v4021_v30, %v4021_v30 }
 0x1d8   :  { %5898 = vst [vmem:[#allocation125_spill] sm:$0xff] %v4027_v26  ;;  %5899 = vst [vmem:[#allocation126_spill] sm:$0xff] %v4029_v44  ;;  %v4032_v35 = vadd.f32 %v1159_v32, %v4005_v38  ;;  %v1414_v45 = vadd.f32 %v1413_v33, %v1302_v34  ;;  %v1167_v63 = vadd.f32 %v4027_v26, %v4019_v31 }
 0x1d9   :  { %v1308_v57 = vmul.f32 %v4027_v26, %v4027_v26  ;;  %v1310_v32 = vmul.f32 %v4029_v44, %v4029_v44 }
 0x1da   :  { %v4038_v29 = vadd.f32 %v1414_v45, %v1303_v24  ;;  %v1168_v12 = vadd.f32 %v1167_v63, %v4021_v30  ;;  %v4043_v11 = vpop.f32.mrb[12].mxu0  ;;  %v4045_v10 = vpop.f32.mrb[12].mxu1 }
 0x1db   :  { %v1422_v13 = vadd.f32 %v1308_v57, %v1307_v25  ;;  %5900 = vst [vmem:[#allocation127_spill] sm:$0xff] %v4043_v11  ;;  %5901 = vst [vmem:[#allocation128_spill] sm:$0xff] %v4045_v10  ;;  %v1314_v33 = vmul.f32 %v4043_v11, %v4043_v11  ;;  %v4051_v34 = vpop.f32.mrb[13].mxu0  ;;  %v4053_v24 = vpop.f32.mrb[13].mxu1  ;;  %v1316_v8 = vmul.f32 %v4045_v10, %v4045_v10 }
 0x1dc   :  { %5902 = vst [vmem:[#allocation129_spill] sm:$0xff] %v4051_v34  ;;  %5903 = vst [vmem:[#allocation130_spill] sm:$0xff] %v4053_v24  ;;  %v4056_v45 = vadd.f32 %v1168_v12, %v4029_v44  ;;  %v1176_v63 = vadd.f32 %v4051_v34, %v4043_v11  ;;  %v1315_v57 = vmul.f32 %v4051_v34, %v4051_v34 }
 0x1dd   :  { %v1423_v25 = vadd.f32 %v1422_v13, %v1309_v28  ;;  %v1317_v12 = vmul.f32 %v4053_v24, %v4053_v24 }
 0x1de   :  { %v1431_v7 = vadd.f32 %v1315_v57, %v1314_v33  ;;  %v1177_v20 = vadd.f32 %v1176_v63, %v4045_v10  ;;  %v4067_v19 = vpop.f32.mrb[14].mxu0  ;;  %v4069_v18 = vpop.f32.mrb[14].mxu1 }
 0x1df   :  { %v4062_v9 = vadd.f32 %v1423_v25, %v1310_v32  ;;  %5904 = vst [vmem:[#allocation131_spill] sm:$0xff] %v4067_v19  ;;  %5905 = vst [vmem:[#allocation132_spill] sm:$0xff] %v4069_v18  ;;  %v1321_v13 = vmul.f32 %v4067_v19, %v4067_v19  ;;  %v4075_v28 = vpop.f32.mrb[15].mxu0  ;;  %v4077_v32 = vpop.f32.mrb[15].mxu1  ;;  %v1323_v16 = vmul.f32 %v4069_v18, %v4069_v18 }
 0x1e0   :  { %5906 = vst [vmem:[#allocation133_spill] sm:$0xff] %v4075_v28  ;;  %5907 = vst [vmem:[#allocation134_spill] sm:$0xff] %v4077_v32  ;;  %v4080_v25 = vadd.f32 %v1177_v20, %v4053_v24  ;;  %v1432_v33 = vadd.f32 %v1431_v7, %v1316_v8  ;;  %v1185_v63 = vadd.f32 %v4075_v28, %v4067_v19 }
 0x1e1   :  { %v1322_v57 = vmul.f32 %v4075_v28, %v4075_v28  ;;  %v1324_v7 = vmul.f32 %v4077_v32, %v4077_v32 }
 0x1e2   :  { %v4086_v17 = vadd.f32 %v1432_v33, %v1317_v12  ;;  %v1186_v14 = vadd.f32 %v1185_v63, %v4069_v18  ;;  %v4091_v6 = vpop.f32.mrb[16].mxu0  ;;  %v4093_v5 = vpop.f32.mrb[16].mxu1 }
 0x1e3   :  { %v1440_v15 = vadd.f32 %v1322_v57, %v1321_v13  ;;  %5908 = vst [vmem:[#allocation135_spill] sm:$0xff] %v4091_v6  ;;  %5909 = vst [vmem:[#allocation136_spill] sm:$0xff] %v4093_v5  ;;  %v1328_v8 = vmul.f32 %v4091_v6, %v4091_v6  ;;  %v4099_v20 = vpop.f32.mrb[17].mxu0  ;;  %v4101_v12 = vpop.f32.mrb[17].mxu1  ;;  %v1330_v3 = vmul.f32 %v4093_v5, %v4093_v5 }
 0x1e4   :  { %5910 = vst [vmem:[#allocation137_spill] sm:$0xff] %v4099_v20  ;;  %5911 = vst [vmem:[#allocation138_spill] sm:$0xff] %v4101_v12  ;;  %v4104_v33 = vadd.f32 %v1186_v14, %v4077_v32  ;;  %v1194_v63 = vadd.f32 %v4099_v20, %v4091_v6  ;;  %v1329_v57 = vmul.f32 %v4099_v20, %v4099_v20 }
 0x1e5   :  { %v1441_v13 = vadd.f32 %v1440_v15, %v1323_v16  ;;  %v1331_v14 = vmul.f32 %v4101_v12, %v4101_v12 }
 0x1e6   :  { %v1449_v2 = vadd.f32 %v1329_v57, %v1328_v8  ;;  %v1195_v1 = vadd.f32 %v1194_v63, %v4093_v5  ;;  %v4115_v0 = vpop.f32.mrb[18].mxu0  ;;  %v4117_v24 = vpop.f32.mrb[18].mxu1 }
 0x1e7   :  { %v4110_v4 = vadd.f32 %v1441_v13, %v1324_v7  ;;  %5912 = vst [vmem:[#allocation139_spill] sm:$0xff] %v4115_v0  ;;  %5913 = vst [vmem:[#allocation140_spill] sm:$0xff] %v4117_v24  ;;  %v1335_v15 = vmul.f32 %v4115_v0, %v4115_v0  ;;  %v4123_v16 = vpop.f32.mrb[19].mxu0  ;;  %v4125_v7 = vpop.f32.mrb[19].mxu1  ;;  %v1337_v20 = vmul.f32 %v4117_v24, %v4117_v24 }
 0x1e8   :  { %5914 = vst [vmem:[#allocation141_spill] sm:$0xff] %v4123_v16  ;;  %5915 = vst [vmem:[#allocation142_spill] sm:$0xff] %v4125_v7  ;;  %v4128_v13 = vadd.f32 %v1195_v1, %v4101_v12  ;;  %v1450_v8 = vadd.f32 %v1449_v2, %v1330_v3  ;;  %v1203_v63 = vadd.f32 %v4123_v16, %v4115_v0 }
 0x1e9   :  { %v1336_v57 = vmul.f32 %v4123_v16, %v4123_v16  ;;  %v1338_v1 = vmul.f32 %v4125_v7, %v4125_v7 }
 0x1ea   :  { %v4134_v5 = vadd.f32 %v1450_v8, %v1331_v14  ;;  %v1204_v10 = vadd.f32 %v1203_v63, %v4117_v24  ;;  %v4139_v34 = vpop.f32.mrb[20].mxu0  ;;  %v4141_v11 = vpop.f32.mrb[20].mxu1 }
 0x1eb   :  { %v1458_v6 = vadd.f32 %v1336_v57, %v1335_v15  ;;  %5916 = vst [vmem:[#allocation143_spill] sm:$0xff] %v4139_v34  ;;  %5917 = vst [vmem:[#allocation144_spill] sm:$0xff] %v4141_v11  ;;  %v1342_v2 = vmul.f32 %v4139_v34, %v4139_v34  ;;  %v4147_v3 = vpop.f32.mrb[21].mxu0  ;;  %v4149_v14 = vpop.f32.mrb[21].mxu1  ;;  %v1344_v24 = vmul.f32 %v4141_v11, %v4141_v11 }
 0x1ec   :  { %5918 = vst [vmem:[#allocation145_spill] sm:$0xff] %v4147_v3  ;;  %5919 = vst [vmem:[#allocation146_spill] sm:$0xff] %v4149_v14  ;;  %v4152_v8 = vadd.f32 %v1204_v10, %v4125_v7  ;;  %v1212_v63 = vadd.f32 %v4147_v3, %v4139_v34  ;;  %v1343_v57 = vmul.f32 %v4147_v3, %v4147_v3 }
 0x1ed   :  { %v1459_v15 = vadd.f32 %v1458_v6, %v1337_v20  ;;  %v1345_v6 = vmul.f32 %v4149_v14, %v4149_v14 }
 0x1ee   :  { %v1467_v16 = vadd.f32 %v1343_v57, %v1342_v2  ;;  %v1213_v0 = vadd.f32 %v1212_v63, %v4141_v11  ;;  %v4163_v32 = vpop.f32.mrb[22].mxu0  ;;  %v4165_v18 = vpop.f32.mrb[22].mxu1 }
 0x1ef   :  { %v4158_v12 = vadd.f32 %v1459_v15, %v1338_v1  ;;  %5920 = vst [vmem:[#allocation147_spill] sm:$0xff] %v4163_v32  ;;  %5921 = vst [vmem:[#allocation148_spill] sm:$0xff] %v4165_v18  ;;  %v1349_v10 = vmul.f32 %v4163_v32, %v4163_v32  ;;  %v4171_v20 = vpop.f32.mrb[23].mxu0  ;;  %v4173_v1 = vpop.f32.mrb[23].mxu1  ;;  %v1351_v3 = vmul.f32 %v4165_v18, %v4165_v18 }
 0x1f0   :  { %5922 = vst [vmem:[#allocation149_spill] sm:$0xff] %v4171_v20  ;;  %5923 = vst [vmem:[#allocation150_spill] sm:$0xff] %v4173_v1  ;;  %v4176_v15 = vadd.f32 %v1213_v0, %v4149_v14  ;;  %v1468_v2 = vadd.f32 %v1467_v16, %v1344_v24  ;;  %v1221_v63 = vadd.f32 %v4171_v20, %v4163_v32 }
 0x1f1   :  { %v1350_v57 = vmul.f32 %v4171_v20, %v4171_v20  ;;  %v1352_v0 = vmul.f32 %v4173_v1, %v4173_v1 }
 0x1f2   :  { %v4182_v11 = vadd.f32 %v1468_v2, %v1345_v6  ;;  %v1222_v7 = vadd.f32 %v1221_v63, %v4165_v18  ;;  %v4187_v28 = vpop.f32.mrb[24].mxu0  ;;  %v4189_v19 = vpop.f32.mrb[24].mxu1 }
 0x1f3   :  { %v1476_v34 = vadd.f32 %v1350_v57, %v1349_v10  ;;  %5924 = vst [vmem:[#allocation151_spill] sm:$0xff] %v4187_v28  ;;  %5925 = vst [vmem:[#allocation152_spill] sm:$0xff] %v4189_v19  ;;  %v1356_v24 = vmul.f32 %v4187_v28, %v4187_v28  ;;  %v4195_v16 = vpop.f32.mrb[25].mxu0  ;;  %v4197_v6 = vpop.f32.mrb[25].mxu1  ;;  %v1358_v18 = vmul.f32 %v4189_v19, %v4189_v19 }
 0x1f4   :  { %5926 = vst [vmem:[#allocation153_spill] sm:$0xff] %v4195_v16  ;;  %5927 = vst [vmem:[#allocation154_spill] sm:$0xff] %v4197_v6  ;;  %v4200_v2 = vadd.f32 %v1222_v7, %v4173_v1  ;;  %v1230_v63 = vadd.f32 %v4195_v16, %v4187_v28  ;;  %v1357_v57 = vmul.f32 %v4195_v16, %v4195_v16 }
 0x1f5   :  { %v1477_v10 = vadd.f32 %v1476_v34, %v1351_v3  ;;  %v1359_v34 = vmul.f32 %v4197_v6, %v4197_v6 }
 0x1f6   :  { %v1485_v20 = vadd.f32 %v1357_v57, %v1356_v24  ;;  %v1231_v32 = vadd.f32 %v1230_v63, %v4189_v19  ;;  %v4211_v38 = vpop.f32.mrb[26].mxu0  ;;  %v4213_v22 = vpop.f32.mrb[26].mxu1 }
 0x1f7   :  { %v4206_v14 = vadd.f32 %v1477_v10, %v1352_v0  ;;  %5928 = vst [vmem:[#allocation155_spill] sm:$0xff] %v4211_v38  ;;  %5929 = vst [vmem:[#allocation156_spill] sm:$0xff] %v4213_v22  ;;  %v1363_v7 = vmul.f32 %v4211_v38, %v4211_v38  ;;  %v4219_v3 = vpop.f32.mrb[27].mxu0  ;;  %v4221_v0 = vpop.f32.mrb[27].mxu1  ;;  %v1365_v16 = vmul.f32 %v4213_v22, %v4213_v22 }
 0x1f8   :  { %5930 = vst [vmem:[#allocation157_spill] sm:$0xff] %v4219_v3  ;;  %5931 = vst [vmem:[#allocation158_spill] sm:$0xff] %v4221_v0  ;;  %v4224_v10 = vadd.f32 %v1231_v32, %v4197_v6  ;;  %v1486_v24 = vadd.f32 %v1485_v20, %v1358_v18  ;;  %v1239_v63 = vadd.f32 %v4219_v3, %v4211_v38 }
 0x1f9   :  { %v1364_v57 = vmul.f32 %v4219_v3, %v4219_v3  ;;  %v1366_v18 = vmul.f32 %v4221_v0, %v4221_v0 }
 0x1fa   :  { %v4230_v19 = vadd.f32 %v1486_v24, %v1359_v34  ;;  %v1240_v1 = vadd.f32 %v1239_v63, %v4213_v22  ;;  %v4235_v47 = vpop.f32.mrb[28].mxu0  ;;  %v4237_v23 = vpop.f32.mrb[28].mxu1 }
 0x1fb   :  { %v1494_v28 = vadd.f32 %v1364_v57, %v1363_v7  ;;  %5932 = vst [vmem:[#allocation159_spill] sm:$0xff] %v4235_v47  ;;  %5933 = vst [vmem:[#allocation160_spill] sm:$0xff] %v4237_v23  ;;  %v1370_v32 = vmul.f32 %v4235_v47, %v4235_v47  ;;  %v4243_v20 = vpop.f32.mrb[29].mxu0  ;;  %v4245_v34 = vpop.f32.mrb[29].mxu1  ;;  %v1372_v3 = vmul.f32 %v4237_v23, %v4237_v23 }
 0x1fc   :  { %5934 = vst [vmem:[#allocation161_spill] sm:$0xff] %v4243_v20  ;;  %5935 = vst [vmem:[#allocation162_spill] sm:$0xff] %v4245_v34  ;;  %v4248_v24 = vadd.f32 %v1240_v1, %v4221_v0  ;;  %v1248_v63 = vadd.f32 %v4243_v20, %v4235_v47  ;;  %v1371_v57 = vmul.f32 %v4243_v20, %v4243_v20 }
 0x1fd   :  { %v1495_v7 = vadd.f32 %v1494_v28, %v1365_v16 }
 0x1fe   :  { %v1503_v38 = vadd.f32 %v1371_v57, %v1370_v32  ;;  %v1249_v6 = vadd.f32 %v1248_v63, %v4237_v23  ;;  %v4259_v44 = vpop.f32.mrb[30].mxu0  ;;  %v4261_v30 = vpop.f32.mrb[30].mxu1  ;;  %v1373_v32 = vmul.f32 %v4245_v34, %v4245_v34 }
 0x1ff   :  { %v4254_v22 = vadd.f32 %v1495_v7, %v1366_v18  ;;  %5936 = vst [vmem:[#allocation163_spill] sm:$0xff] %v4261_v30  ;;  %v1124_v28 = vadd.f32 %v3936_v50, %v4259_v44  ;;  %v1276_v1 = vmul.f32 %v4259_v44, %v4259_v44  ;;  %v4267_v16 = vpop.f32.mrb[31].mxu0  ;;  %v2498_v18 = vpop.f32.mrb[31].mxu1  ;;  %v1278_v50 = vmul.f32 %v4261_v30, %v4261_v30 }
 0x200   :  { %v4270_v7 = vadd.f32 %v1249_v6, %v4245_v34  ;;  %v1504_v63 = vadd.f32 %v1503_v38, %v1372_v3  ;;  %v1277_v57 = vmul.f32 %v4267_v16, %v4267_v16  ;;  %v1127_v34 = vsel %vm1126_vm3, %v4261_v30, 0.0 }
 0x201   :  { %v1380_v23 = vadd.f32 %v3942_v37, %v1276_v1  ;;  %v1125_v20 = vadd.f32 %v1124_v28, %v4267_v16 }
 0x202   :  { %v4280_v47 = vadd.f32 %v1504_v63, %v1373_v32  ;;  %v4282_v18 = vpop.f32.mrb[32].mxu0  ;;  %v4284_v6 = vpop.f32.mrb[32].mxu1 }
 0x203   :  { %5937 = vst [vmem:[#allocation164_spill] sm:$0xff] %v4282_v18  ;;  %5938 = vst [vmem:[#allocation165_spill] sm:$0xff] %v4284_v6  ;;  %v1134_v38 = vadd.f32 %v3960_v46, %v4282_v18  ;;  %v1283_v37 = vmul.f32 %v4282_v18, %v4282_v18  ;;  %v4292_v3 = vpop.f32.mrb[33].mxu0  ;;  %v2501_v1 = vpop.f32.mrb[33].mxu1  ;;  %v1128_v32 = vadd.f32 %v1127_v34, %v1125_v20  ;;  %v1382_v46 = vsel %vm1126_vm3, %v1278_v50, 0.0 }
 0x204   :  { %5939 = vst [vmem:[#allocation166_spill] sm:$0xff] %v4292_v3  ;;  %v1284_v28 = vmul.f32 %v4292_v3, %v4292_v3  ;;  %v1381_v63 = vadd.f32 %v1380_v23, %v1277_v57  ;;  %v1285_v26 = vmul.f32 %v4284_v6, %v4284_v6  ;;  %v1136_v54 = vsel %vm1126_vm3, %v4284_v6, 0.0 }
 0x205   :  { %v1389_v0 = vadd.f32 %v3966_v39, %v1283_v37  ;;  %v1135_v31 = vadd.f32 %v1134_v38, %v4292_v3  ;;  %1129 = vadd.xlane.f32.xlu0 %v1128_v32 }
 0x206   :  { %v4301_v62 = vpop.f32.mrb[34].mxu0  ;;  %v4303_v18 = vpop.f32.mrb[34].mxu1  ;;  %v1383_v1 = vadd.f32 %v1382_v46, %v1381_v63 }
 0x207   :  { %v1143_v23 = vadd.f32 %v3984_v49, %v4301_v62  ;;  %v1290_v39 = vmul.f32 %v4301_v62, %v4301_v62  ;;  %v4311_v20 = vpop.f32.mrb[35].mxu0  ;;  %v2504_v34 = vpop.f32.mrb[35].mxu1  ;;  %v1137_v50 = vadd.f32 %v1136_v54, %v1135_v31  ;;  %v1390_v38 = vadd.f32 %v1389_v0, %v1284_v28 }
 0x208   :  { %v1291_v57 = vmul.f32 %v4311_v20, %v4311_v20  ;;  %v1292_v32 = vmul.f32 %v4303_v18, %v4303_v18  ;;  %v1391_v49 = vsel %vm1126_vm3, %v1285_v26, 0.0  ;;  %v1145_v31 = vsel %vm1126_vm3, %v4303_v18, 0.0 }
 0x209   :  { %v1398_v37 = vadd.f32 %v3990_v27, %v1290_v39  ;;  %v1144_v63 = vadd.f32 %v1143_v23, %v4311_v20  ;;  %1384 = vadd.xlane.f32.xlu0 %v1383_v1  ;;  %1138 = vadd.xlane.f32.xlu1 %v1137_v50  ;;  %v1392_v34 = vadd.f32 %v1391_v49, %v1390_v38 }
 0x20a   :  { %v4320_v46 = vpop.f32.mrb[36].mxu0  ;;  %v4322_v6 = vpop.f32.mrb[36].mxu1 }
 0x20b   :  { %5940 = vst [vmem:[#allocation167_spill] sm:$0xff] %v4320_v46  ;;  %5941 = vst [vmem:[#allocation168_spill] sm:$0xff] %v4322_v6  ;;  %v1152_v27 = vadd.f32 %v4008_v59, %v4320_v46  ;;  %v1297_v54 = vmul.f32 %v4320_v46, %v4320_v46  ;;  %v4330_v0 = vpop.f32.mrb[37].mxu0  ;;  %v2507_v28 = vpop.f32.mrb[37].mxu1  ;;  %v1146_v1 = vadd.f32 %v1145_v31, %v1144_v63  ;;  %v1400_v59 = vsel %vm1126_vm3, %v1292_v32, 0.0 }
 0x20c   :  { %5942 = vst [vmem:[#allocation169_spill] sm:$0xff] %v4330_v0  ;;  %v1298_v26 = vmul.f32 %v4330_v0, %v4330_v0  ;;  %v1399_v23 = vadd.f32 %v1398_v37, %v1291_v57  ;;  %v1299_v50 = vmul.f32 %v4322_v6, %v4322_v6  ;;  %v1154_v63 = vsel %vm1126_vm3, %v4322_v6, 0.0 }
 0x20d   :  { %v1407_v39 = vadd.f32 %v4014_v21, %v1297_v54  ;;  %v1153_v38 = vadd.f32 %v1152_v27, %v4330_v0  ;;  %1393 = vadd.xlane.f32.xlu1 %v1392_v34  ;;  %1147 = vadd.xlane.f32.xlu0 %v1146_v1 }
 0x20e   :  { %v4339_v49 = vpop.f32.mrb[38].mxu0  ;;  %v4341_v3 = vpop.f32.mrb[38].mxu1  ;;  %v1401_v28 = vadd.f32 %v1400_v59, %v1399_v23 }
 0x20f   :  { %5943 = vst [vmem:[#allocation170_spill] sm:$0xff] %v4339_v49  ;;  %5944 = vst [vmem:[#allocation171_spill] sm:$0xff] %v4341_v3  ;;  %v1161_v21 = vadd.f32 %v4032_v35, %v4339_v49  ;;  %v1304_v57 = vmul.f32 %v4339_v49, %v4339_v49  ;;  %v4349_v37 = vpop.f32.mrb[39].mxu0  ;;  %v2510_v31 = vpop.f32.mrb[39].mxu1  ;;  %v1408_v34 = vadd.f32 %v1407_v39, %v1298_v26  ;;  %v1409_v35 = vsel %vm1126_vm3, %v1299_v50, 0.0 }
 0x210   :  { %5945 = vst [vmem:[#allocation172_spill] sm:$0xff] %v4349_v37  ;;  %v1305_v32 = vmul.f32 %v4349_v37, %v4349_v37  ;;  %v1155_v27 = vadd.f32 %v1154_v63, %v1153_v38  ;;  %v1306_v1 = vmul.f32 %v4341_v3, %v4341_v3  ;;  %v1163_v60 = vsel %vm1126_vm3, %v4341_v3, 0.0 }
 0x211   :  { %v1416_v54 = vadd.f32 %v4038_v29, %v1304_v57  ;;  %v1162_v23 = vadd.f32 %v1161_v21, %v4349_v37  ;;  %1402 = vadd.xlane.f32.xlu0 %v1401_v28  ;;  %v1410_v31 = vadd.f32 %v1409_v35, %v1408_v34 }
 0x212   :  { %v4358_v59 = vpop.f32.mrb[40].mxu0  ;;  %v4360_v49 = vpop.f32.mrb[40].mxu1 }
 0x213   :  { %5946 = vst [vmem:[#allocation173_spill] sm:$0xff] %v4358_v59  ;;  %5947 = vst [vmem:[#allocation174_spill] sm:$0xff] %v4360_v49  ;;  %v1170_v26 = vadd.f32 %v4056_v45, %v4358_v59  ;;  %v1311_v29 = vmul.f32 %v4358_v59, %v4358_v59  ;;  %v2513_v39 = vpop.f32.mrb[41].mxu1  ;;  %v4368_v38 = vpop.f32.mrb[41].mxu0  ;;  %1411 = vadd.xlane.f32.xlu1 %v1410_v31  ;;  %v1164_v28 = vadd.f32 %v1163_v60, %v1162_v23 }
 0x214   :  { %5948 = vst [vmem:[#allocation175_spill] sm:$0xff] %v4368_v38  ;;  %v1312_v50 = vmul.f32 %v4368_v38, %v4368_v38  ;;  %v1417_v63 = vadd.f32 %v1416_v54, %v1305_v32  ;;  %v1313_v57 = vmul.f32 %v4360_v49, %v4360_v49  ;;  %v1418_v45 = vsel %vm1126_vm3, %v1306_v1, 0.0 }
 0x215   :  { %v1425_v21 = vadd.f32 %v4062_v9, %v1311_v29  ;;  %v1171_v34 = vadd.f32 %v1170_v26, %v4368_v38  ;;  %1156 = vadd.xlane.f32.xlu0 %v1155_v27  ;;  %v1172_v3 = vsel %vm1126_vm3, %v4360_v49, 0.0 }
 0x216   :  { %v4377_v35 = vpop.f32.mrb[42].mxu0  ;;  %v4379_v39 = vpop.f32.mrb[42].mxu1  ;;  %v1419_v31 = vadd.f32 %v1418_v45, %v1417_v63 }
 0x217   :  { %5949 = vst [vmem:[#allocation176_spill] sm:$0xff] %v4377_v35  ;;  %5950 = vst [vmem:[#allocation177_spill] sm:$0xff] %v4379_v39  ;;  %v1179_v60 = vadd.f32 %v4080_v25, %v4377_v35  ;;  %v1318_v9 = vmul.f32 %v4377_v35, %v4377_v35  ;;  %v2516_v32 = vpop.f32.mrb[43].mxu1  ;;  %v4387_v54 = vpop.f32.mrb[43].mxu0  ;;  %1165 = vadd.xlane.f32.xlu1 %v1164_v28  ;;  %v1426_v1 = vadd.f32 %v1425_v21, %v1312_v50 }
 0x218   :  { %5951 = vst [vmem:[#allocation178_spill] sm:$0xff] %v4387_v54  ;;  %v1319_v27 = vmul.f32 %v4387_v54, %v4387_v54  ;;  %v1173_v23 = vadd.f32 %v1172_v3, %v1171_v34  ;;  %v1320_v29 = vmul.f32 %v4379_v39, %v4379_v39  ;;  %v1427_v25 = vsel %vm1126_vm3, %v1313_v57, 0.0 }
 0x219   :  { %v1434_v26 = vadd.f32 %v4086_v17, %v1318_v9  ;;  %v1180_v63 = vadd.f32 %v1179_v60, %v4387_v54  ;;  %1420 = vadd.xlane.f32.xlu0 %v1419_v31  ;;  %v1428_v28 = vadd.f32 %v1427_v25, %v1426_v1  ;;  %v1181_v35 = vsel %vm1126_vm3, %v4379_v39, 0.0 }
 0x21a   :  { %v4396_v45 = vpop.f32.mrb[44].mxu0  ;;  %v4398_v32 = vpop.f32.mrb[44].mxu1 }
 0x21b   :  { %5952 = vst [vmem:[#allocation179_spill] sm:$0xff] %v4396_v45  ;;  %5953 = vst [vmem:[#allocation180_spill] sm:$0xff] %v4398_v32  ;;  %v1188_v3 = vadd.f32 %v4104_v33, %v4396_v45  ;;  %v1325_v17 = vmul.f32 %v4396_v45, %v4396_v45  ;;  %v2519_v50 = vpop.f32.mrb[45].mxu1  ;;  %v4406_v21 = vpop.f32.mrb[45].mxu0  ;;  %1429 = vadd.xlane.f32.xlu1 %v1428_v28  ;;  %v1182_v34 = vadd.f32 %v1181_v35, %v1180_v63 }
 0x21c   :  { %5954 = vst [vmem:[#allocation181_spill] sm:$0xff] %v4406_v21  ;;  %v1326_v57 = vmul.f32 %v4406_v21, %v4406_v21  ;;  %v1435_v31 = vadd.f32 %v1434_v26, %v1319_v27  ;;  %v1327_v9 = vmul.f32 %v4398_v32, %v4398_v32  ;;  %v1436_v33 = vsel %vm1126_vm3, %v1320_v29, 0.0 }
 0x21d   :  { %v1443_v60 = vadd.f32 %v4110_v4, %v1325_v17  ;;  %v1189_v1 = vadd.f32 %v1188_v3, %v4406_v21  ;;  %1174 = vadd.xlane.f32.xlu0 %v1173_v23  ;;  %v1190_v39 = vsel %vm1126_vm3, %v4398_v32, 0.0 }
 0x21e   :  { %v4415_v25 = vpop.f32.mrb[46].mxu0  ;;  %v4417_v50 = vpop.f32.mrb[46].mxu1  ;;  %v1437_v28 = vadd.f32 %v1436_v33, %v1435_v31 }
 0x21f   :  { %5955 = vst [vmem:[#allocation182_spill] sm:$0xff] %v4415_v25  ;;  %5956 = vst [vmem:[#allocation183_spill] sm:$0xff] %v4417_v50  ;;  %v1197_v35 = vadd.f32 %v4128_v13, %v4415_v25  ;;  %v1332_v4 = vmul.f32 %v4415_v25, %v4415_v25  ;;  %v2522_v27 = vpop.f32.mrb[47].mxu1  ;;  %v4425_v26 = vpop.f32.mrb[47].mxu0  ;;  %1183 = vadd.xlane.f32.xlu1 %v1182_v34  ;;  %v1444_v29 = vadd.f32 %v1443_v60, %v1326_v57 }
 0x220   :  { %5957 = vst [vmem:[#allocation184_spill] sm:$0xff] %v4425_v26  ;;  %v1333_v23 = vmul.f32 %v4425_v26, %v4425_v26  ;;  %v1191_v63 = vadd.f32 %v1190_v39, %v1189_v1  ;;  %v1334_v17 = vmul.f32 %v4417_v50, %v4417_v50  ;;  %v1445_v13 = vsel %vm1126_vm3, %v1327_v9, 0.0 }
 0x221   :  { %v1452_v3 = vadd.f32 %v4134_v5, %v1332_v4  ;;  %v1198_v31 = vadd.f32 %v1197_v35, %v4425_v26  ;;  %1438 = vadd.xlane.f32.xlu0 %v1437_v28  ;;  %v1446_v34 = vadd.f32 %v1445_v13, %v1444_v29  ;;  %v1199_v25 = vsel %vm1126_vm3, %v4417_v50, 0.0 }
 0x222   :  { %v4434_v33 = vpop.f32.mrb[48].mxu0  ;;  %v4436_v27 = vpop.f32.mrb[48].mxu1 }
 0x223   :  { %5958 = vst [vmem:[#allocation185_spill] sm:$0xff] %v4434_v33  ;;  %5959 = vst [vmem:[#allocation186_spill] sm:$0xff] %v4436_v27  ;;  %v1206_v39 = vadd.f32 %v4152_v8, %v4434_v33  ;;  %v1339_v5 = vmul.f32 %v4434_v33, %v4434_v33  ;;  %v2525_v57 = vpop.f32.mrb[49].mxu1  ;;  %v4444_v60 = vpop.f32.mrb[49].mxu0  ;;  %1447 = vadd.xlane.f32.xlu1 %v1446_v34  ;;  %v1200_v1 = vadd.f32 %v1199_v25, %v1198_v31 }
 0x224   :  { %5960 = vst [vmem:[#allocation187_spill] sm:$0xff] %v4444_v60  ;;  %v1340_v9 = vmul.f32 %v4444_v60, %v4444_v60  ;;  %v1453_v28 = vadd.f32 %v1452_v3, %v1333_v23  ;;  %v1341_v4 = vmul.f32 %v4436_v27, %v4436_v27  ;;  %v1454_v8 = vsel %vm1126_vm3, %v1334_v17, 0.0 }
 0x225   :  { %v1461_v35 = vadd.f32 %v4158_v12, %v1339_v5  ;;  %v1207_v29 = vadd.f32 %v1206_v39, %v4444_v60  ;;  %1192 = vadd.xlane.f32.xlu0 %v1191_v63  ;;  %v1208_v50 = vsel %vm1126_vm3, %v4436_v27, 0.0 }
 0x226   :  { %v4453_v13 = vpop.f32.mrb[50].mxu0  ;;  %v4455_v57 = vpop.f32.mrb[50].mxu1  ;;  %v1455_v34 = vadd.f32 %v1454_v8, %v1453_v28 }
 0x227   :  { %5961 = vst [vmem:[#allocation188_spill] sm:$0xff] %v4453_v13  ;;  %5962 = vst [vmem:[#allocation189_spill] sm:$0xff] %v4455_v57  ;;  %v1215_v25 = vadd.f32 %v4176_v15, %v4453_v13  ;;  %v1346_v12 = vmul.f32 %v4453_v13, %v4453_v13  ;;  %v2528_v23 = vpop.f32.mrb[51].mxu1  ;;  %v4463_v3 = vpop.f32.mrb[51].mxu0  ;;  %1201 = vadd.xlane.f32.xlu1 %v1200_v1  ;;  %v1462_v17 = vadd.f32 %v1461_v35, %v1340_v9 }
 0x228   :  { %5963 = vst [vmem:[#allocation190_spill] sm:$0xff] %v4463_v3  ;;  %v1347_v63 = vmul.f32 %v4463_v3, %v4463_v3  ;;  %v1209_v31 = vadd.f32 %v1208_v50, %v1207_v29  ;;  %v1348_v5 = vmul.f32 %v4455_v57, %v4455_v57  ;;  %v1463_v15 = vsel %vm1126_vm3, %v1341_v4, 0.0 }
 0x229   :  { %v1470_v39 = vadd.f32 %v4182_v11, %v1346_v12  ;;  %v1216_v28 = vadd.f32 %v1215_v25, %v4463_v3  ;;  %1456 = vadd.xlane.f32.xlu0 %v1455_v34  ;;  %v1464_v1 = vadd.f32 %v1463_v15, %v1462_v17  ;;  %v1217_v13 = vsel %vm1126_vm3, %v4455_v57, 0.0 }
 0x22a   :  { %v4472_v8 = vpop.f32.mrb[52].mxu0  ;;  %v4474_v23 = vpop.f32.mrb[52].mxu1 }
 0x22b   :  { %5964 = vst [vmem:[#allocation191_spill] sm:$0xff] %v4472_v8  ;;  %5965 = vst [vmem:[#allocation192_spill] sm:$0xff] %v4474_v23  ;;  %v1224_v50 = vadd.f32 %v4200_v2, %v4472_v8  ;;  %v1353_v11 = vmul.f32 %v4472_v8, %v4472_v8  ;;  %v2531_v9 = vpop.f32.mrb[53].mxu1  ;;  %v4482_v35 = vpop.f32.mrb[53].mxu0  ;;  %1465 = vadd.xlane.f32.xlu1 %v1464_v1  ;;  %v1218_v29 = vadd.f32 %v1217_v13, %v1216_v28 }
 0x22c   :  { %5966 = vst [vmem:[#allocation193_spill] sm:$0xff] %v4482_v35  ;;  %v1354_v4 = vmul.f32 %v4482_v35, %v4482_v35  ;;  %v1471_v34 = vadd.f32 %v1470_v39, %v1347_v63  ;;  %v1355_v12 = vmul.f32 %v4474_v23, %v4474_v23  ;;  %v1472_v2 = vsel %vm1126_vm3, %v1348_v5, 0.0 }
 0x22d   :  { %v1479_v25 = vadd.f32 %v4206_v14, %v1353_v11  ;;  %v1225_v17 = vadd.f32 %v1224_v50, %v4482_v35  ;;  %1210 = vadd.xlane.f32.xlu0 %v1209_v31  ;;  %v1226_v57 = vsel %vm1126_vm3, %v4474_v23, 0.0 }
 0x22e   :  { %v4491_v15 = vpop.f32.mrb[54].mxu0  ;;  %v4493_v9 = vpop.f32.mrb[54].mxu1  ;;  %v1473_v1 = vadd.f32 %v1472_v2, %v1471_v34 }
 0x22f   :  { %5967 = vst [vmem:[#allocation194_spill] sm:$0xff] %v4491_v15  ;;  %5968 = vst [vmem:[#allocation195_spill] sm:$0xff] %v4493_v9  ;;  %v1233_v13 = vadd.f32 %v4224_v10, %v4491_v15  ;;  %v1360_v14 = vmul.f32 %v4491_v15, %v4491_v15  ;;  %v2534_v63 = vpop.f32.mrb[55].mxu1  ;;  %v4501_v39 = vpop.f32.mrb[55].mxu0  ;;  %1219 = vadd.xlane.f32.xlu1 %v1218_v29  ;;  %v1480_v5 = vadd.f32 %v1479_v25, %v1354_v4 }
 0x230   :  { %5969 = vst [vmem:[#allocation196_spill] sm:$0xff] %v4501_v39  ;;  %v1361_v31 = vmul.f32 %v4501_v39, %v4501_v39  ;;  %v1227_v28 = vadd.f32 %v1226_v57, %v1225_v17  ;;  %v1362_v11 = vmul.f32 %v4493_v9, %v4493_v9  ;;  %v1481_v10 = vsel %vm1126_vm3, %v1355_v12, 0.0 }
 0x231   :  { %v1488_v50 = vadd.f32 %v4230_v19, %v1360_v14  ;;  %v1234_v34 = vadd.f32 %v1233_v13, %v4501_v39  ;;  %1474 = vadd.xlane.f32.xlu0 %v1473_v1  ;;  %v1482_v29 = vadd.f32 %v1481_v10, %v1480_v5  ;;  %v1235_v15 = vsel %vm1126_vm3, %v4493_v9, 0.0 }
 0x232   :  { %v4510_v2 = vpop.f32.mrb[56].mxu0  ;;  %v4512_v63 = vpop.f32.mrb[56].mxu1 }
 0x233   :  { %5970 = vst [vmem:[#allocation197_spill] sm:$0xff] %v4510_v2  ;;  %5971 = vst [vmem:[#allocation198_spill] sm:$0xff] %v4512_v63  ;;  %v1242_v57 = vadd.f32 %v4248_v24, %v4510_v2  ;;  %v1367_v19 = vmul.f32 %v4510_v2, %v4510_v2  ;;  %v2537_v4 = vpop.f32.mrb[57].mxu1  ;;  %v4520_v25 = vpop.f32.mrb[57].mxu0  ;;  %1483 = vadd.xlane.f32.xlu1 %v1482_v29  ;;  %v1236_v17 = vadd.f32 %v1235_v15, %v1234_v34 }
 0x234   :  { %5972 = vst [vmem:[#allocation199_spill] sm:$0xff] %v4520_v25  ;;  %v1368_v12 = vmul.f32 %v4520_v25, %v4520_v25  ;;  %v1489_v1 = vadd.f32 %v1488_v50, %v1361_v31  ;;  %v1369_v14 = vmul.f32 %v4512_v63, %v4512_v63  ;;  %v1490_v24 = vsel %vm1126_vm3, %v1362_v11, 0.0 }
 0x235   :  { %v1497_v13 = vadd.f32 %v4254_v22, %v1367_v19  ;;  %v1243_v5 = vadd.f32 %v1242_v57, %v4520_v25  ;;  %1228 = vadd.xlane.f32.xlu0 %v1227_v28  ;;  %v1244_v2 = vsel %vm1126_vm3, %v4512_v63, 0.0 }
 0x236   :  { %v4529_v10 = vpop.f32.mrb[58].mxu0  ;;  %v4531_v4 = vpop.f32.mrb[58].mxu1  ;;  %v1491_v29 = vadd.f32 %v1490_v24, %v1489_v1 }
 0x237   :  { %5973 = vst [vmem:[#allocation200_spill] sm:$0xff] %v4529_v10  ;;  %5974 = vst [vmem:[#allocation201_spill] sm:$0xff] %v4531_v4  ;;  %v1251_v15 = vadd.f32 %v4270_v7, %v4529_v10  ;;  %v1374_v22 = vmul.f32 %v4529_v10, %v4529_v10  ;;  %v2540_v31 = vpop.f32.mrb[59].mxu1  ;;  %v4539_v50 = vpop.f32.mrb[59].mxu0  ;;  %v1376_v28 = vmul.f32 %v4531_v4, %v4531_v4  ;;  %1237 = vadd.xlane.f32.xlu1 %v1236_v17 }
 0x238   :  { %5975 = vst [vmem:[#allocation202_spill] sm:$0xff] %v4539_v50  ;;  %v1375_v11 = vmul.f32 %v4539_v50, %v4539_v50  ;;  %v1245_v34 = vadd.f32 %v1244_v2, %v1243_v5  ;;  %v1498_v57 = vadd.f32 %v1497_v13, %v1368_v12  ;;  %v1499_v7 = vsel %vm1126_vm3, %v1369_v14, 0.0 }
 0x239   :  { %v1506_v19 = vadd.f32 %v4280_v47, %v1374_v22  ;;  %v1252_v1 = vadd.f32 %v1251_v15, %v4539_v50  ;;  %v1253_v24 = vsel %vm1126_vm3, %v4531_v4, 0.0  ;;  %1492 = vadd.xlane.f32.xlu0 %v1491_v29  ;;  %v1508_v17 = vsel %vm1126_vm3, %v1376_v28, 0.0 }
 0x23a   :  { %v1500_v31 = vadd.f32 %v1499_v7, %v1498_v57 }
 0x23b   :  { %v1507_v10 = vadd.f32 %v1506_v19, %v1375_v11  ;;  %v1254_v63 = vadd.f32 %v1253_v24, %v1252_v1 }
 0x23d   :  { %1255 = vadd.xlane.f32.xlu1 %v1254_v63  ;;  %v1509_v25 = vadd.f32 %v1508_v17, %v1507_v10  ;;  %1246 = vadd.xlane.f32.xlu0 %v1245_v34 }
 0x241   :  { %1501 = vadd.xlane.f32.xlu1 %v1500_v31  ;;  %1510 = vadd.xlane.f32.xlu0 %v1509_v25 }
 0x292   :  { %v1130_v2 = vpop.xlane.xlu0 %1129 }
 0x293   :  { %v1257_v47 = vmul.f32 0.0012755102, %v1130_v2 }
 0x295   :  { %v1527_v5 = vmul.f32 %v1257_v47, %v1257_v47 }
 0x296   :  { %v1385_v12 = vpop.xlane.xlu0 %1384  ;;  %v1139_v13 = vpop.xlane.xlu1 %1138 }
 0x297   :  { %v1512_v14 = vmul.f32 0.0012755102, %v1385_v12  ;;  %v1258_v15 = vmul.f32 0.0012755102, %v1139_v13 }
 0x299   :  { %v1542_v22 = vsub.f32 %v1512_v14, %v1527_v5  ;;  %v1528_v11 = vmul.f32 %v1258_v15, %v1258_v15 }
 0x29a   :  { %v1394_v4 = vpop.xlane.xlu1 %1393  ;;  %v1148_v29 = vpop.xlane.xlu0 %1147 }
 0x29b   :  { %v1557_v57 = vmax.f32 %v1542_v22, 0.0  ;;  %v1513_v19 = vmul.f32 0.0012755102, %v1394_v4  ;;  %v4551_v1 = vmul.f32 0.0012755102, %v1148_v29 }
 0x29d   :  { %v1587_v63 = vadd.f32 1e-05, %v1557_v57  ;;  %v1543_v10 = vsub.f32 %v1513_v19, %v1528_v11  ;;  %v1529_v34 = vmul.f32 %v4551_v1, %v4551_v1  ;;  %v1572_v11 = vld [vmem:[%s5675_s5] sm:$0xff] }
 0x29e   :  { %v1403_v28 = vpop.xlane.xlu0 %1402 }
 0x29f   :  { %2656 = vrsqrt.f32 %v1587_v63  ;;  %v1558_v25 = vmax.f32 %v1543_v10, 0.0  ;;  %v1514_v7 = vmul.f32 0.0012755102, %v1403_v28 }
 0x2a0   :  { %v1412_v24 = vpop.xlane.xlu1 %1411 }
 0x2a1   :  { %v1588_v31 = vadd.f32 1e-05, %v1558_v25  ;;  %v1544_v17 = vsub.f32 %v1514_v7, %v1529_v34  ;;  %v1515_v14 = vmul.f32 0.0012755102, %v1412_v24  ;;  %v4569_v24 = vld [vmem:[%s5676_s6] sm:$0xff] }
 0x2a2   :  { %v1157_v2 = vpop.xlane.xlu0 %1156 }
 0x2a3   :  { %2658 = vrsqrt.f32 %v1588_v31  ;;  %v1559_v12 = vmax.f32 %v1544_v17, 0.0  ;;  %v4555_v13 = vmul.f32 0.0012755102, %v1157_v2  ;;  %v1573_v2 = vld [vmem:[%s5675_s5 + $0x8] sm:$0xff] }
 0x2a4   :  { %v1166_v4 = vpop.xlane.xlu1 %1165 }
 0x2a5   :  { %v1589_v5 = vadd.f32 1e-05, %v1559_v12  ;;  %v1530_v22 = vmul.f32 %v4555_v13, %v4555_v13  ;;  %v4559_v29 = vmul.f32 0.0012755102, %v1166_v4 }
 0x2a6   :  { %v1421_v57 = vpop.xlane.xlu0 %1420 }
 0x2a7   :  { %2660 = vrsqrt.f32 %v1589_v5  ;;  %v1545_v19 = vsub.f32 %v1515_v14, %v1530_v22  ;;  %v1531_v63 = vmul.f32 %v4559_v29, %v4559_v29  ;;  %v1516_v10 = vmul.f32 0.0012755102, %v1421_v57 }
 0x2a8   :  { %v1430_v28 = vpop.xlane.xlu1 %1429 }
 0x2a9   :  { %v2657_v25 = vpop.eup %2656  ;;  %v1560_v34 = vmax.f32 %v1545_v19, 0.0  ;;  %v1546_v7 = vsub.f32 %v1516_v10, %v1531_v63  ;;  %v1517_v22 = vmul.f32 0.0012755102, %v1430_v28  ;;  %v1574_v28 = vld [vmem:[%s5675_s5 + $0x10] sm:$0xff] }
 0x2aa   :  { %v4571_v31 = vmul.f32 %v2657_v25, %v1572_v11  ;;  %v1175_v17 = vpop.xlane.xlu0 %1174 }
 0x2ab   :  { %v1590_v12 = vadd.f32 1e-05, %v1560_v34  ;;  %v1561_v4 = vmax.f32 %v1546_v7, 0.0  ;;  %v4576_v5 = vmul.f32 0.0012755102, %v1175_v17 }
 0x2ac   :  { %v4579_v14 = vmul.f32 %v4571_v31, %v1257_v47  ;;  %v1184_v57 = vpop.xlane.xlu1 %1183  ;;  %v4592_v47 = vld [vmem:[%s5676_s6 + $0x8] sm:$0xff] }
 0x2ad   :  { %v2659_v19 = vpop.eup %2658  ;;  %2662 = vrsqrt.f32 %v1590_v12  ;;  %v1591_v63 = vadd.f32 1e-05, %v1561_v4  ;;  %v1532_v11 = vmul.f32 %v4576_v5, %v4576_v5  ;;  %v4583_v10 = vmul.f32 0.0012755102, %v1184_v57 }
 0x2ae   :  { %v4587_v34 = vmul.f32 %v2659_v19, %v1573_v2  ;;  %v1439_v7 = vpop.xlane.xlu0 %1438 }
 0x2af   :  { %2664 = vrsqrt.f32 %v1591_v63  ;;  %v1547_v17 = vsub.f32 %v1517_v22, %v1532_v11  ;;  %v1533_v12 = vmul.f32 %v4583_v10, %v4583_v10  ;;  %v1518_v4 = vmul.f32 0.0012755102, %v1439_v7  ;;  %v4609_v22 = vld [vmem:[%s5676_s6 + $0x10] sm:$0xff] }
 0x2b0   :  { %v4600_v57 = vmul.f32 %v4587_v34, %v1258_v15  ;;  %v1448_v2 = vpop.xlane.xlu1 %1447 }
 0x2b1   :  { %v2661_v19 = vpop.eup %2660  ;;  %v1562_v25 = vmax.f32 %v1547_v17, 0.0  ;;  %v1548_v50 = vsub.f32 %v1518_v4, %v1533_v12  ;;  %v1519_v17 = vmul.f32 0.0012755102, %v1448_v2 }
 0x2b2   :  { %v4604_v39 = vmul.f32 %v2661_v19, %v1574_v28  ;;  %v1193_v3 = vpop.xlane.xlu0 %1192  ;;  %v1575_v28 = vld [vmem:[%s5675_s5 + $0x18] sm:$0xff] }
 0x2b3   :  { %v1592_v63 = vadd.f32 1e-05, %v1562_v25  ;;  %v1563_v11 = vmax.f32 %v1548_v50, 0.0  ;;  %v4611_v7 = vmul.f32 0.0012755102, %v1193_v3  ;;  %v4636_v3 = vld [vmem:[%s5676_s6 + $0x18] sm:$0xff] }
 0x2b4   :  { %v4615_v15 = vmul.f32 %v4604_v39, %v4551_v1  ;;  %v1202_v12 = vpop.xlane.xlu1 %1201  ;;  %v1576_v1 = vld [vmem:[%s5675_s5 + $0x20] sm:$0xff] }
 0x2b5   :  { %2666 = vrsqrt.f32 %v1592_v63  ;;  %v1593_v4 = vadd.f32 1e-05, %v1563_v11  ;;  %v1534_v19 = vmul.f32 %v4611_v7, %v4611_v7  ;;  %v4622_v9 = vmul.f32 0.0012755102, %v1202_v12 }
 0x2b6   :  { %v1457_v50 = vpop.xlane.xlu0 %1456 }
 0x2b7   :  { %v2663_v25 = vpop.eup %2662  ;;  %2668 = vrsqrt.f32 %v1593_v4  ;;  %v1549_v2 = vsub.f32 %v1519_v17, %v1534_v19  ;;  %v1535_v63 = vmul.f32 %v4622_v9, %v4622_v9  ;;  %v1520_v11 = vmul.f32 0.0012755102, %v1457_v50 }
 0x2b8   :  { %v4631_v23 = vmul.f32 %v2663_v25, %v1575_v28  ;;  %v1466_v35 = vpop.xlane.xlu1 %1465  ;;  %v4647_v28 = vld [vmem:[%s5676_s6 + $0x20] sm:$0xff] }
 0x2b9   :  { %v2665_v12 = vpop.eup %2664  ;;  %v1564_v8 = vmax.f32 %v1549_v2, 0.0  ;;  %v1550_v26 = vsub.f32 %v1520_v11, %v1535_v63  ;;  %v1577_v11 = vld [vmem:[%s5675_s5 + $0x28] sm:$0xff] }
 0x2ba   :  { %v4640_v27 = vmul.f32 %v4631_v23, %v4555_v13  ;;  %v4642_v17 = vmul.f32 %v2665_v12, %v1576_v1  ;;  %v1211_v4 = vpop.xlane.xlu0 %1210  ;;  %v1521_v13 = vmul.f32 0.0012755102, %v1466_v35  ;;  %v1578_v35 = vld [vmem:[%s5675_s5 + $0x30] sm:$0xff] }
 0x2bb   :  { %v1594_v19 = vadd.f32 1e-05, %v1564_v8  ;;  %v1565_v50 = vmax.f32 %v1550_v26, 0.0  ;;  %v4649_v25 = vmul.f32 0.0012755102, %v1211_v4  ;;  %v4676_v4 = vld [vmem:[%s5676_s6 + $0x28] sm:$0xff] }
 0x2bc   :  { %v4655_v63 = vmul.f32 %v4642_v17, %v4559_v29  ;;  %v1220_v1 = vpop.xlane.xlu1 %1219 }
 0x2bd   :  { %2670 = vrsqrt.f32 %v1594_v19  ;;  %v1595_v12 = vadd.f32 1e-05, %v1565_v50  ;;  %v1536_v26 = vmul.f32 %v4649_v25, %v4649_v25  ;;  %v4662_v8 = vmul.f32 0.0012755102, %v1220_v1 }
 0x2be   :  { %v1475_v2 = vpop.xlane.xlu0 %1474 }
 0x2bf   :  { %v2667_v60 = vpop.eup %2666  ;;  %2672 = vrsqrt.f32 %v1595_v12  ;;  %v1551_v29 = vsub.f32 %v1521_v13, %v1536_v26  ;;  %v1537_v19 = vmul.f32 %v4662_v8, %v4662_v8  ;;  %v1522_v50 = vmul.f32 0.0012755102, %v1475_v2 }
 0x2c0   :  { %v4671_v33 = vmul.f32 %v2667_v60, %v1577_v11  ;;  %v1484_v54 = vpop.xlane.xlu1 %1483  ;;  %v4687_v60 = vld [vmem:[%s5676_s6 + $0x30] sm:$0xff] }
 0x2c1   :  { %v2669_v1 = vpop.eup %2668  ;;  %v1566_v32 = vmax.f32 %v1551_v29, 0.0  ;;  %v1552_v21 = vsub.f32 %v1522_v50, %v1537_v19  ;;  %v1579_v50 = vld [vmem:[%s5675_s5 + $0x38] sm:$0xff] }
 0x2c2   :  { %v4680_v45 = vmul.f32 %v4671_v33, %v4576_v5  ;;  %v4682_v13 = vmul.f32 %v2669_v1, %v1578_v35  ;;  %v1229_v12 = vpop.xlane.xlu0 %1228  ;;  %v1523_v5 = vmul.f32 0.0012755102, %v1484_v54  ;;  %v1580_v54 = vld [vmem:[%s5675_s5 + $0x40] sm:$0xff] }
 0x2c3   :  { %v1596_v2 = vadd.f32 1e-05, %v1566_v32  ;;  %v1567_v11 = vmax.f32 %v1552_v21, 0.0  ;;  %v4689_v26 = vmul.f32 0.0012755102, %v1229_v12 }
 0x2c4   :  { %v4695_v19 = vmul.f32 %v4682_v13, %v4583_v10  ;;  %v1238_v35 = vpop.xlane.xlu1 %1237 }
 0x2c5   :  { %2674 = vrsqrt.f32 %v1596_v2  ;;  %v1597_v1 = vadd.f32 1e-05, %v1567_v11  ;;  %v1538_v32 = vmul.f32 %v4689_v26, %v4689_v26  ;;  %v4702_v21 = vmul.f32 0.0012755102, %v1238_v35  ;;  %v4716_v35 = vld [vmem:[%s5676_s6 + $0x38] sm:$0xff] }
 0x2c6   :  { %v1493_v29 = vpop.xlane.xlu0 %1492 }
 0x2c7   :  { %v2671_v37 = vpop.eup %2670  ;;  %2676 = vrsqrt.f32 %v1597_v1  ;;  %v1553_v10 = vsub.f32 %v1523_v5, %v1538_v32  ;;  %v1539_v2 = vmul.f32 %v4702_v21, %v4702_v21  ;;  %v1524_v11 = vmul.f32 0.0012755102, %v1493_v29 }
 0x2c8   :  { %v4711_v49 = vmul.f32 %v2671_v37, %v1579_v50  ;;  %v4727_v37 = vld [vmem:[%s5676_s6 + $0x40] sm:$0xff] }
 0x2c9   :  { %v2673_v38 = vpop.eup %2672  ;;  %v1568_v12 = vmax.f32 %v1553_v10, 0.0  ;;  %v1554_v59 = vsub.f32 %v1524_v11, %v1539_v2  ;;  %v1582_v10 = vld [vmem:[%s5675_s5 + $0x50] sm:$0xff] }
 0x2ca   :  { %v1256_v52 = vpop.xlane.xlu1 %1255  ;;  %v4720_v6 = vmul.f32 %v4711_v49, %v4611_v7  ;;  %v4722_v5 = vmul.f32 %v2673_v38, %v1580_v54  ;;  %v1247_v1 = vpop.xlane.xlu0 %1246  ;;  %v1581_v38 = vld [vmem:[%s5675_s5 + $0x48] sm:$0xff] }
 0x2cb   :  { %v1271_v32 = vmul.f32 0.0012755102, %v1256_v52  ;;  %v1598_v29 = vadd.f32 1e-05, %v1568_v12  ;;  %v1569_v50 = vmax.f32 %v1554_v59, 0.0 }
 0x2cc   :  { %v1270_v0 = vmul.f32 0.0012755102, %v1247_v1  ;;  %v4733_v2 = vmul.f32 %v4722_v5, %v4622_v9 }
 0x2cd   :  { %2678 = vrsqrt.f32 %v1598_v29  ;;  %v1599_v52 = vadd.f32 1e-05, %v1569_v50  ;;  %v1541_v9 = vmul.f32 %v1271_v32, %v1271_v32  ;;  %v4746_v29 = vld [vmem:[%s5676_s6 + $0x48] sm:$0xff] }
 0x2ce   :  { %v1502_v7 = vpop.xlane.xlu1 %1501  ;;  %v1540_v12 = vmul.f32 %v1270_v0, %v1270_v0  ;;  %v1511_v59 = vpop.xlane.xlu0 %1510 }
 0x2cf   :  { %v1525_v11 = vmul.f32 0.0012755102, %v1502_v7  ;;  %v2675_v1 = vpop.eup %2674  ;;  %2680 = vrsqrt.f32 %v1599_v52  ;;  %v1526_v46 = vmul.f32 0.0012755102, %v1511_v59  ;;  %v1642_v52 = vld [vmem:[%s5676_s6 + $0x50] sm:$0xff] }
 0x2d0   :  { %v1626_v41 = vmul.f32 %v2675_v1, %v1581_v38 }
 0x2d1   :  { %v1555_v42 = vsub.f32 %v1525_v11, %v1540_v12  ;;  %v2677_v51 = vpop.eup %2676  ;;  %v1556_v50 = vsub.f32 %v1526_v46, %v1541_v9  ;;  %v1583_v46 = vld [vmem:[%s5675_s5 + $0x58] sm:$0xff] }
 0x2d2   :  { %v4749_v54 = vmul.f32 %v1626_v41, %v4649_v25  ;;  %v1627_v7 = vmul.f32 %v2677_v51, %v1582_v10 }
 0x2d3   :  { %v1570_v43 = vmax.f32 %v1555_v42, 0.0  ;;  %v1571_v30 = vmax.f32 %v1556_v50, 0.0  ;;  %v1584_v42 = vld [vmem:[%s5675_s5 + $0x60] sm:$0xff] }
 0x2d4   :  { %v1671_v38 = vsub.f32 %v4746_v29, %v4749_v54  ;;  %v1657_v12 = vmul.f32 %v1627_v7, %v4662_v8  ;;  %v1643_v8 = vld [vmem:[%s5676_s6 + $0x58] sm:$0xff] }
 0x2d5   :  { %v1600_v59 = vadd.f32 1e-05, %v1570_v43  ;;  %v1601_v11 = vadd.f32 1e-05, %v1571_v30  ;;  %v1644_v30 = vld [vmem:[%s5676_s6 + $0x60] sm:$0xff] }
 0x2d6   :  { %v1672_v25 = vsub.f32 %v1642_v52, %v1657_v12  ;;  %v1585_v52 = vld [vmem:[%s5675_s5 + $0x68] sm:$0xff]  ;;  %v1586_v12 = vld [vmem:[%s5675_s5 + $0x70] sm:$0xff] }
 0x2d7   :  { %2682 = vrsqrt.f32 %v1600_v59  ;;  %v2679_v51 = vpop.eup %2678 }
 0x2d8   :  { %2684 = vrsqrt.f32 %v1601_v11  ;;  %v1628_v10 = vmul.f32 %v2679_v51, %v1583_v46  ;;  %v1645_v51 = vld [vmem:[%s5676_s6 + $0x68] sm:$0xff] }
 0x2d9   :  { %v2681_v1 = vpop.eup %2680 }
 0x2da   :  { %v1658_v43 = vmul.f32 %v1628_v10, %v4689_v26  ;;  %v1629_v54 = vmul.f32 %v2681_v1, %v1584_v42 }
 0x2dc   :  { %v1673_v9 = vsub.f32 %v1643_v8, %v1658_v43  ;;  %v1659_v29 = vmul.f32 %v1629_v54, %v4702_v21  ;;  %v1646_v21 = vld [vmem:[%s5676_s6 + $0x70] sm:$0xff] }
 0x2de   :  { %v1674_v50 = vsub.f32 %v1644_v30, %v1659_v29  ;;  %v5976_v30 = vmov 0  }
 0x2df   :  { %2687 = vset.pattern.permute.xlu1 %v5976_v30  ;;  %2686 = vset.pattern.permute.xlu0 %v5976_v30 }
 0x2e1   :  { %v2683_v59 = vpop.eup %2682 }
 0x2e2   :  { %v2685_v46 = vpop.eup %2684  ;;  %v1630_v26 = vmul.f32 %v2683_v59, %v1585_v52 }
 0x2e3   :  { %v1631_v11 = vmul.f32 %v2685_v46, %v1586_v12 }
 0x2e4   :  { %v1660_v42 = vmul.f32 %v1630_v26, %v1270_v0 }
 0x2e5   :  { %v1661_v1 = vmul.f32 %v1631_v11, %v1271_v32 }
 0x2e6   :  { %v1675_v8 = vsub.f32 %v1645_v51, %v1660_v42 }
 0x2e7   :  { %v1676_v43 = vsub.f32 %v1646_v21, %v1661_v1 }
 0x2e8   :  { %2688 = dma.done.wait [#allocation3], 13440 }
 0x2e9   :  { %2689 = vsyncadd [#allocation3], 4294953856  ;;  %1693 = vperm.xlu1 %2687, %v4604_v39   ;;  %1683 = vperm.xlu0 %2686, %v4571_v31   ;;  %v5977_v0 = vsub.f32 %v4569_v24, %v4579_v14  ;;  %v5982_v39 = vsub.f32 %v4687_v60, %v4695_v19  ;;  %v5983_v24 = vsub.f32 %v4676_v4, %v4680_v45  ;;  %v5992_v32 = vld [vmem:[#allocation169_spill] sm:$0xff]  ;;  %v5998_v12 = vld [vmem:[#allocation164_spill] sm:$0xff] }
 0x2ea   :  { %v5984_v31 = vsub.f32 %v4727_v37, %v4733_v2  ;;  %v5985_v14 = vsub.f32 %v4716_v35, %v4720_v6  ;;  %v5993_v2 = vld [vmem:[#allocation168_spill] sm:$0xff]  ;;  %v5999_v46 = vld [vmem:[#allocation166_spill] sm:$0xff]  ;;  %v6001_v21 = vld [vmem:[#allocation123_spill] sm:$0xff] }
 0x2eb   :  { %v6002_v1 = vld [vmem:[#allocation125_spill] sm:$0xff] }
 0x2ed   :  { %1698 = vperm.xlu1 %2687, %v4631_v23   ;;  %1688 = vperm.xlu0 %2686, %v4587_v34   ;;  %v5981_v23 = vsub.f32 %v4636_v3, %v4640_v27 }
 0x2f1   :  { %1708 = vperm.xlu1 %2687, %v4671_v33   ;;  %1703 = vperm.xlu0 %2686, %v4642_v17   ;;  %v5978_v33 = vsub.f32 %v4609_v22, %v4615_v15 }
 0x2f5   :  { %1718 = vperm.xlu1 %2687, %v4711_v49   ;;  %1713 = vperm.xlu0 %2686, %v4682_v13   ;;  %v5979_v49 = vsub.f32 %v4592_v47, %v4600_v57 }
 0x2f9   :  { %1728 = vperm.xlu1 %2687, %v1626_v41   ;;  %1723 = vperm.xlu0 %2686, %v4722_v5   ;;  %v5980_v41 = vsub.f32 %v4647_v28, %v4655_v63  ;;  %v5991_v5 = vld [vmem:[#allocation167_spill] sm:$0xff] }
 0x2fd   :  { %1738 = vperm.xlu1 %2687, %v1628_v10   ;;  %1733 = vperm.xlu0 %2686, %v1627_v7   ;;  %v5995_v10 = vld [vmem:[#allocation113_spill] sm:$0xff] }
 0x301   :  { %1748 = vperm.xlu1 %2687, %v1630_v26   ;;  %1743 = vperm.xlu0 %2686, %v1629_v54  }
 0x305   :  { %1863 = vperm.xlu1 %2687, %v5977_v0   ;;  %1753 = vperm.xlu0 %2686, %v1631_v11   ;;  %v6000_v11 = vld [vmem:[#allocation165_spill] sm:$0xff]  ;;  %v6005_v0 = vld [vmem:[#allocation126_spill] sm:$0xff] }
 0x309   :  { %1873 = vperm.xlu1 %2687, %v5978_v33   ;;  %1868 = vperm.xlu0 %2686, %v5979_v49   ;;  %v6007_v49 = vld [vmem:[#allocation173_spill] sm:$0xff] }
 0x30d   :  { %1883 = vperm.xlu1 %2687, %v5980_v41   ;;  %1878 = vperm.xlu0 %2686, %v5981_v23   ;;  %v6009_v23 = vld [vmem:[#allocation175_spill] sm:$0xff] }
 0x311   :  { %1893 = vperm.xlu1 %2687, %v5982_v39   ;;  %1888 = vperm.xlu0 %2686, %v5983_v24  }
 0x315   :  { %1903 = vperm.xlu1 %2687, %v5984_v31   ;;  %1898 = vperm.xlu0 %2686, %v5985_v14   ;;  %v6011_v14 = vld [vmem:[#allocation174_spill] sm:$0xff] }
 0x319   :  { %1913 = vperm.xlu1 %2687, %v1672_v25   ;;  %1908 = vperm.xlu0 %2686, %v1671_v38   ;;  %v5994_v38 = vld [vmem:[#allocation111_spill] sm:$0xff] }
 0x31d   :  { %1923 = vperm.xlu1 %2687, %v1674_v50   ;;  %1918 = vperm.xlu0 %2686, %v1673_v9   ;;  %v5996_v9 = vld [vmem:[#allocation112_spill] sm:$0xff]  ;;  %v5997_v50 = vld [vmem:[#allocation114_spill] sm:$0xff] }
 0x321   :  { %1933 = vperm.xlu1 %2687, %v1676_v43   ;;  %1928 = vperm.xlu0 %2686, %v1675_v8   ;;  %v6003_v43 = vld [vmem:[#allocation124_spill] sm:$0xff] }
 0x368   :  { %v1694_v27 = vpop.permute.xlu1 %1693  ;;  %v1684_v34 = vpop.permute.xlu0 %1683 }
 0x369   :  { %v4822_v47 = vmul.f32 %v1694_v27, %v3947_v36  ;;  %v4825_v45 = vmul.f32 %v1694_v27, %v3955_v61  ;;  %v4828_v15 = vmul.f32 %v1694_v27, %v3949_v56  ;;  %v4831_v6 = vmul.f32 %v1694_v27, %v3957_v48 }
 0x36a   :  { %v4834_v3 = vmul.f32 %v1694_v27, %v4301_v62  ;;  %v4837_v17 = vmul.f32 %v1694_v27, %v4311_v20  ;;  %v4840_v36 = vmul.f32 %v1694_v27, %v4303_v18  ;;  %v4843_v61 = vmul.f32 %v1684_v34, %v3906_v58  ;;  %v5986_v18 = vld [vmem:[#allocation163_spill] sm:$0xff] }
 0x36b   :  { %v4846_v28 = vmul.f32 %v1684_v34, %v3912_v55  ;;  %v4849_v56 = vmul.f32 %v1684_v34, %v3908_v53  ;;  %v4852_v48 = vmul.f32 %v1684_v34, %v3914_v40  ;;  %v4855_v62 = vmul.f32 %v1684_v34, %v4259_v44  ;;  %v5987_v58 = vld [vmem:[#allocation115_spill] sm:$0xff]  ;;  %v5988_v55 = vld [vmem:[#allocation117_spill] sm:$0xff]  ;;  %v5989_v53 = vld [vmem:[#allocation116_spill] sm:$0xff] }
 0x36c   :  { %v1699_v57 = vpop.permute.xlu1 %1698  ;;  %v1689_v22 = vpop.permute.xlu0 %1688  ;;  %v4858_v20 = vmul.f32 %v1684_v34, %v4267_v16  ;;  %v4861_v63 = vmul.f32 %v1684_v34, %v5986_v18  ;;  %v5990_v40 = vld [vmem:[#allocation118_spill] sm:$0xff]  ;;  %v6013_v34 = vld [vmem:[#allocation119_spill] sm:$0xff] }
 0x36d   :  { %v4864_v4 = vmul.f32 %v1699_v57, %v5987_v58  ;;  %v4867_v13 = vmul.f32 %v1699_v57, %v5988_v55  ;;  %v4870_v60 = vmul.f32 %v1699_v57, %v5989_v53  ;;  %v4873_v19 = vmul.f32 %v1699_v57, %v5990_v40  ;;  %v6015_v58 = vld [vmem:[#allocation120_spill] sm:$0xff]  ;;  %v6016_v53 = vld [vmem:[#allocation122_spill] sm:$0xff] }
 0x36e   :  { %v4876_v16 = vmul.f32 %v1699_v57, %v5991_v5  ;;  %v4879_v37 = vmul.f32 %v1699_v57, %v5992_v32  ;;  %v4882_v7 = vmul.f32 %v1699_v57, %v5993_v2  ;;  %v4885_v25 = vmul.f32 %v1689_v22, %v5994_v38  ;;  %v6017_v5 = vld [vmem:[#allocation170_spill] sm:$0xff]  ;;  %v6018_v2 = vld [vmem:[#allocation172_spill] sm:$0xff] }
 0x36f   :  { %v4888_v54 = vmul.f32 %v1689_v22, %v5995_v10  ;;  %v4891_v29 = vmul.f32 %v1689_v22, %v5996_v9  ;;  %v4894_v52 = vmul.f32 %v1689_v22, %v5997_v50  ;;  %v4897_v59 = vmul.f32 %v1689_v22, %v5998_v12  ;;  %v6020_v9 = vld [vmem:[#allocation131_spill] sm:$0xff]  ;;  %v6022_v12 = vld [vmem:[#allocation133_spill] sm:$0xff] }
 0x370   :  { %v1709_v44 = vpop.permute.xlu1 %1708  ;;  %v1704_v35 = vpop.permute.xlu0 %1703  ;;  %v4900_v26 = vmul.f32 %v1689_v22, %v5999_v46  ;;  %v4903_v51 = vmul.f32 %v1689_v22, %v6000_v11  ;;  %v6014_v22 = vld [vmem:[#allocation121_spill] sm:$0xff]  ;;  %v6024_v11 = vld [vmem:[#allocation132_spill] sm:$0xff] }
 0x371   :  { %v4906_v42 = vmul.f32 %v1709_v44, %v6001_v21  ;;  %v4909_v8 = vmul.f32 %v1709_v44, %v6002_v1  ;;  %v4912_v30 = vmul.f32 %v1709_v44, %v6003_v43  ;;  %v4915_v33 = vmul.f32 %v1709_v44, %v6005_v0  ;;  %v6026_v1 = vld [vmem:[#allocation134_spill] sm:$0xff]  ;;  %v6028_v0 = vld [vmem:[#allocation179_spill] sm:$0xff] }
 0x372   :  { %v4918_v41 = vmul.f32 %v1709_v44, %v6007_v49  ;;  %v4921_v39 = vmul.f32 %v1709_v44, %v6009_v23  ;;  %v4924_v27 = vmul.f32 %v1709_v44, %v6011_v14  ;;  %v4927_v57 = vmul.f32 %v1704_v35, %v6013_v34  ;;  %v6019_v44 = vld [vmem:[#allocation171_spill] sm:$0xff]  ;;  %v6030_v23 = vld [vmem:[#allocation181_spill] sm:$0xff] }
 0x373   :  { %6004 = vst [vmem:[#allocation163_spill] sm:$0xff] %v4912_v30  ;;  %6006 = vst [vmem:[#allocation115_spill] sm:$0xff] %v4915_v33  ;;  %v4930_v18 = vmul.f32 %v1704_v35, %v6014_v22  ;;  %v4933_v55 = vmul.f32 %v1704_v35, %v6015_v58  ;;  %v4936_v40 = vmul.f32 %v1704_v35, %v6016_v53  ;;  %v6034_v22 = vld [vmem:[#allocation127_spill] sm:$0xff]  ;;  %v6132_v33 = vld [vmem:[#allocation12_spill] sm:$0xff] }
 0x374   :  { %6008 = vst [vmem:[#allocation117_spill] sm:$0xff] %v4918_v41  ;;  %6010 = vst [vmem:[#allocation116_spill] sm:$0xff] %v4921_v39  ;;  %v1719_v24 = vpop.permute.xlu1 %1718  ;;  %v1714_v31 = vpop.permute.xlu0 %1713  ;;  %v4939_v32 = vmul.f32 %v1704_v35, %v6017_v5  ;;  %v4942_v38 = vmul.f32 %v1704_v35, %v6018_v2  ;;  %v4945_v10 = vmul.f32 %v1704_v35, %v6019_v44  ;;  %v6032_v35 = vld [vmem:[#allocation180_spill] sm:$0xff]  ;;  %v6035_v2 = vld [vmem:[#allocation129_spill] sm:$0xff] }
 0x375   :  { %6012 = vst [vmem:[#allocation118_spill] sm:$0xff] %v4924_v27  ;;  %v4948_v50 = vmul.f32 %v1719_v24, %v6020_v9  ;;  %v4951_v46 = vmul.f32 %v1719_v24, %v6022_v12  ;;  %v4954_v21 = vmul.f32 %v1719_v24, %v6024_v11  ;;  %v4957_v43 = vmul.f32 %v1719_v24, %v6026_v1  ;;  %v6036_v9 = vld [vmem:[#allocation128_spill] sm:$0xff]  ;;  %v6037_v11 = vld [vmem:[#allocation130_spill] sm:$0xff]  ;;  %v6131_v41 = vld [vmem:[#allocation11_spill] sm:$0xff] }
 0x376   :  { %v4960_v49 = vmul.f32 %v1719_v24, %v6028_v0  ;;  %v4963_v14 = vmul.f32 %v1719_v24, %v6030_v23  ;;  %v4966_v34 = vmul.f32 %v1719_v24, %v6032_v35  ;;  %v4969_v58 = vmul.f32 %v1714_v31, %v6034_v22  ;;  %v6038_v0 = vld [vmem:[#allocation176_spill] sm:$0xff]  ;;  %v6040_v35 = vld [vmem:[#allocation177_spill] sm:$0xff]  ;;  %v6061_v39 = vld [vmem:[#allocation138_spill] sm:$0xff] }
 0x377   :  { %6021 = vst [vmem:[#allocation167_spill] sm:$0xff] %v4948_v50  ;;  %6023 = vst [vmem:[#allocation169_spill] sm:$0xff] %v4951_v46  ;;  %v4972_v44 = vmul.f32 %v1714_v31, %v6035_v2  ;;  %v4975_v12 = vmul.f32 %v1714_v31, %v6036_v9  ;;  %v4978_v1 = vmul.f32 %v1714_v31, %v6037_v11  ;;  %v6043_v2 = vld [vmem:[#allocation141_spill] sm:$0xff]  ;;  %v6045_v9 = vld [vmem:[#allocation140_spill] sm:$0xff] }
 0x378   :  { %6025 = vst [vmem:[#allocation168_spill] sm:$0xff] %v4954_v21  ;;  %6027 = vst [vmem:[#allocation111_spill] sm:$0xff] %v4957_v43  ;;  %v1729_v53 = vpop.permute.xlu1 %1728  ;;  %v1724_v5 = vpop.permute.xlu0 %1723  ;;  %v4981_v23 = vmul.f32 %v1714_v31, %v6038_v0  ;;  %v4987_v22 = vmul.f32 %v1714_v31, %v6040_v35  ;;  %v6047_v11 = vld [vmem:[#allocation142_spill] sm:$0xff]  ;;  %v6049_v0 = vld [vmem:[#allocation185_spill] sm:$0xff] }
 0x379   :  { %6029 = vst [vmem:[#allocation113_spill] sm:$0xff] %v4960_v49  ;;  %6031 = vst [vmem:[#allocation112_spill] sm:$0xff] %v4963_v14  ;;  %v6039_v14 = vld [vmem:[#allocation178_spill] sm:$0xff]  ;;  %v4993_v43 = vmul.f32 %v1729_v53, %v6043_v2  ;;  %v4996_v21 = vmul.f32 %v1729_v53, %v6045_v9  ;;  %v4999_v46 = vmul.f32 %v1729_v53, %v6047_v11  ;;  %v6057_v2 = vld [vmem:[#allocation137_spill] sm:$0xff] }
 0x37a   :  { %6033 = vst [vmem:[#allocation114_spill] sm:$0xff] %v4966_v34  ;;  %v4984_v24 = vmul.f32 %v1714_v31, %v6039_v14  ;;  %v6041_v34 = vld [vmem:[#allocation139_spill] sm:$0xff]  ;;  %v5002_v50 = vmul.f32 %v1729_v53, %v6049_v0  ;;  %v6053_v31 = vld [vmem:[#allocation186_spill] sm:$0xff]  ;;  %v6059_v9 = vld [vmem:[#allocation136_spill] sm:$0xff]  ;;  %v5020_v0 = vmul.f32 %v1724_v5, %v6061_v39 }
 0x37b   :  { %v4990_v49 = vmul.f32 %v1729_v53, %v6041_v34  ;;  %6044 = vst [vmem:[#allocation166_spill] sm:$0xff] %v4993_v43  ;;  %6046 = vst [vmem:[#allocation165_spill] sm:$0xff] %v4996_v21  ;;  %v6051_v14 = vld [vmem:[#allocation187_spill] sm:$0xff]  ;;  %v5008_v35 = vmul.f32 %v1729_v53, %v6053_v31  ;;  %v5014_v43 = vmul.f32 %v1724_v5, %v6057_v2  ;;  %v6075_v39 = vld [vmem:[#allocation150_spill] sm:$0xff] }
 0x37c   :  { %6048 = vst [vmem:[#allocation123_spill] sm:$0xff] %v4999_v46  ;;  %6050 = vst [vmem:[#allocation125_spill] sm:$0xff] %v5002_v50  ;;  %v5005_v27 = vmul.f32 %v1729_v53, %v6051_v14  ;;  %v6055_v34 = vld [vmem:[#allocation135_spill] sm:$0xff]  ;;  %v5017_v21 = vmul.f32 %v1724_v5, %v6059_v9  ;;  %v1739_v11 = vpop.permute.xlu1 %1738  ;;  %v1734_v46 = vpop.permute.xlu0 %1733  ;;  %v6063_v50 = vld [vmem:[#allocation182_spill] sm:$0xff] }
 0x37d   :  { %6042 = vst [vmem:[#allocation164_spill] sm:$0xff] %v4990_v49  ;;  %6054 = vst [vmem:[#allocation126_spill] sm:$0xff] %v5008_v35  ;;  %v5011_v49 = vmul.f32 %v1724_v5, %v6055_v34  ;;  %v5023_v14 = vmul.f32 %v1724_v5, %v6063_v50  ;;  %v6067_v31 = vld [vmem:[#allocation183_spill] sm:$0xff] }
 0x37e   :  { %6052 = vst [vmem:[#allocation124_spill] sm:$0xff] %v5005_v27  ;;  %6058 = vst [vmem:[#allocation175_spill] sm:$0xff] %v5014_v43  ;;  %v6065_v27 = vld [vmem:[#allocation184_spill] sm:$0xff]  ;;  %v5029_v34 = vmul.f32 %v1724_v5, %v6067_v31  ;;  %v6069_v35 = vld [vmem:[#allocation147_spill] sm:$0xff] }
 0x37f   :  { %6056 = vst [vmem:[#allocation173_spill] sm:$0xff] %v5011_v49  ;;  %6060 = vst [vmem:[#allocation174_spill] sm:$0xff] %v5017_v21  ;;  %v5026_v53 = vmul.f32 %v1724_v5, %v6065_v27  ;;  %v5032_v2 = vmul.f32 %v1739_v11, %v6069_v35  ;;  %v6071_v43 = vld [vmem:[#allocation149_spill] sm:$0xff]  ;;  %v6073_v21 = vld [vmem:[#allocation148_spill] sm:$0xff] }
 0x380   :  { %6062 = vst [vmem:[#allocation119_spill] sm:$0xff] %v5020_v0  ;;  %6064 = vst [vmem:[#allocation121_spill] sm:$0xff] %v5023_v14  ;;  %v5035_v9 = vmul.f32 %v1739_v11, %v6071_v43  ;;  %v5038_v49 = vmul.f32 %v1739_v11, %v6073_v21  ;;  %v5041_v0 = vmul.f32 %v1739_v11, %v6075_v39  ;;  %v6077_v50 = vld [vmem:[#allocation191_spill] sm:$0xff]  ;;  %v6079_v27 = vld [vmem:[#allocation193_spill] sm:$0xff] }
 0x381   :  { %6066 = vst [vmem:[#allocation120_spill] sm:$0xff] %v5026_v53  ;;  %6068 = vst [vmem:[#allocation122_spill] sm:$0xff] %v5029_v34  ;;  %v5044_v14 = vmul.f32 %v1739_v11, %v6077_v50  ;;  %v5047_v53 = vmul.f32 %v1739_v11, %v6079_v27  ;;  %v6081_v5 = vld [vmem:[#allocation192_spill] sm:$0xff]  ;;  %v6083_v35 = vld [vmem:[#allocation143_spill] sm:$0xff]  ;;  %v1749_v27 = vpop.permute.xlu1 %1748 }
 0x382   :  { %6070 = vst [vmem:[#allocation170_spill] sm:$0xff] %v5032_v2  ;;  %6072 = vst [vmem:[#allocation172_spill] sm:$0xff] %v5035_v9  ;;  %v5050_v31 = vmul.f32 %v1739_v11, %v6081_v5  ;;  %v5053_v2 = vmul.f32 %v1734_v46, %v6083_v35  ;;  %v6085_v43 = vld [vmem:[#allocation145_spill] sm:$0xff]  ;;  %v6087_v21 = vld [vmem:[#allocation144_spill] sm:$0xff] }
 0x383   :  { %6074 = vst [vmem:[#allocation171_spill] sm:$0xff] %v5038_v49  ;;  %6076 = vst [vmem:[#allocation131_spill] sm:$0xff] %v5041_v0  ;;  %v5056_v9 = vmul.f32 %v1734_v46, %v6085_v43  ;;  %v5059_v49 = vmul.f32 %v1734_v46, %v6087_v21  ;;  %v6089_v39 = vld [vmem:[#allocation146_spill] sm:$0xff]  ;;  %v6091_v50 = vld [vmem:[#allocation188_spill] sm:$0xff] }
 0x384   :  { %6078 = vst [vmem:[#allocation133_spill] sm:$0xff] %v5044_v14  ;;  %6080 = vst [vmem:[#allocation132_spill] sm:$0xff] %v5047_v53  ;;  %v5062_v0 = vmul.f32 %v1734_v46, %v6089_v39  ;;  %v5065_v14 = vmul.f32 %v1734_v46, %v6091_v50  ;;  %v1744_v53 = vpop.permute.xlu0 %1743  ;;  %v6093_v34 = vld [vmem:[#allocation190_spill] sm:$0xff]  ;;  %v6095_v5 = vld [vmem:[#allocation189_spill] sm:$0xff] }
 0x385   :  { %6082 = vst [vmem:[#allocation134_spill] sm:$0xff] %v5050_v31  ;;  %6084 = vst [vmem:[#allocation179_spill] sm:$0xff] %v5053_v2  ;;  %v5068_v11 = vmul.f32 %v1734_v46, %v6093_v34  ;;  %v5071_v35 = vmul.f32 %v1734_v46, %v6095_v5  ;;  %v6097_v31 = vld [vmem:[#allocation151_spill] sm:$0xff]  ;;  %v6107_v34 = vld [vmem:[#allocation196_spill] sm:$0xff] }
 0x386   :  { %6086 = vst [vmem:[#allocation181_spill] sm:$0xff] %v5056_v9  ;;  %6088 = vst [vmem:[#allocation180_spill] sm:$0xff] %v5059_v49  ;;  %v5074_v43 = vmul.f32 %v1744_v53, %v6097_v31  ;;  %v6099_v9 = vld [vmem:[#allocation153_spill] sm:$0xff]  ;;  %v6101_v49 = vld [vmem:[#allocation152_spill] sm:$0xff] }
 0x387   :  { %6090 = vst [vmem:[#allocation127_spill] sm:$0xff] %v5062_v0  ;;  %6092 = vst [vmem:[#allocation129_spill] sm:$0xff] %v5065_v14  ;;  %v5077_v21 = vmul.f32 %v1744_v53, %v6099_v9  ;;  %v5080_v39 = vmul.f32 %v1744_v53, %v6101_v49  ;;  %v6103_v0 = vld [vmem:[#allocation154_spill] sm:$0xff]  ;;  %v6109_v46 = vld [vmem:[#allocation195_spill] sm:$0xff] }
 0x388   :  { %6094 = vst [vmem:[#allocation128_spill] sm:$0xff] %v5068_v11  ;;  %6096 = vst [vmem:[#allocation130_spill] sm:$0xff] %v5071_v35  ;;  %v5083_v50 = vmul.f32 %v1744_v53, %v6103_v0  ;;  %v6105_v14 = vld [vmem:[#allocation194_spill] sm:$0xff]  ;;  %v5089_v11 = vmul.f32 %v1744_v53, %v6107_v34  ;;  %v5092_v5 = vmul.f32 %v1744_v53, %v6109_v46  ;;  %v6111_v31 = vld [vmem:[#allocation155_spill] sm:$0xff]  ;;  %v1864_v0 = vpop.permute.xlu1 %1863 }
 0x389   :  { %6098 = vst [vmem:[#allocation176_spill] sm:$0xff] %v5074_v43  ;;  %6100 = vst [vmem:[#allocation178_spill] sm:$0xff] %v5077_v21  ;;  %v5086_v2 = vmul.f32 %v1744_v53, %v6105_v14  ;;  %v5095_v43 = vmul.f32 %v1749_v27, %v6111_v31  ;;  %v6113_v9 = vld [vmem:[#allocation157_spill] sm:$0xff]  ;;  %v6115_v49 = vld [vmem:[#allocation156_spill] sm:$0xff] }
 0x38a   :  { %6102 = vst [vmem:[#allocation177_spill] sm:$0xff] %v5080_v39  ;;  %6104 = vst [vmem:[#allocation139_spill] sm:$0xff] %v5083_v50  ;;  %v5098_v21 = vmul.f32 %v1749_v27, %v6113_v9  ;;  %v5101_v39 = vmul.f32 %v1749_v27, %v6115_v49  ;;  %v5103_v50 = vpop.permute.xlu0 %1753  ;;  %v6117_v14 = vld [vmem:[#allocation158_spill] sm:$0xff]  ;;  %v6119_v34 = vld [vmem:[#allocation197_spill] sm:$0xff]  ;;  %v1936_v9 = vadd.f32 %v1864_v0, %v4843_v61 }
 0x38b   :  { %6106 = vst [vmem:[#allocation141_spill] sm:$0xff] %v5086_v2  ;;  %6108 = vst [vmem:[#allocation140_spill] sm:$0xff] %v5089_v11  ;;  %v5106_v2 = vmul.f32 %v1749_v27, %v6117_v14  ;;  %v5109_v11 = vmul.f32 %v1749_v27, %v6119_v34  ;;  %v6121_v53 = vld [vmem:[#allocation199_spill] sm:$0xff]  ;;  %v6123_v31 = vld [vmem:[#allocation198_spill] sm:$0xff]  ;;  %v1937_v49 = vadd.f32 %v1864_v0, %v4846_v28 }
 0x38c   :  { %6110 = vst [vmem:[#allocation142_spill] sm:$0xff] %v5092_v5  ;;  %6112 = vst [vmem:[#allocation185_spill] sm:$0xff] %v5095_v43  ;;  %v5112_v46 = vmul.f32 %v1749_v27, %v6121_v53  ;;  %v5115_v43 = vmul.f32 %v1749_v27, %v6123_v31  ;;  %v1940_v14 = vadd.f32 %v1864_v0, %v4855_v62  ;;  %v6126_v27 = vld [vmem:[#allocation6_spill] sm:$0xff]  ;;  %v6129_v5 = vld [vmem:[#allocation9_spill] sm:$0xff]  ;;  %v1874_v30 = vpop.permute.xlu1 %1873 }
 0x38d   :  { %6114 = vst [vmem:[#allocation187_spill] sm:$0xff] %v5098_v21  ;;  %6116 = vst [vmem:[#allocation186_spill] sm:$0xff] %v5101_v39  ;;  %v1938_v39 = vadd.f32 %v1864_v0, %v4849_v56  ;;  %v1939_v21 = vadd.f32 %v1864_v0, %v4852_v48  ;;  %v1942_v34 = vadd.f32 %v1864_v0, %v4861_v63  ;;  %v6130_v35 = vld [vmem:[#allocation10_spill] sm:$0xff] }
 0x38e   :  { %6118 = vst [vmem:[#allocation135_spill] sm:$0xff] %v5106_v2  ;;  %6120 = vst [vmem:[#allocation137_spill] sm:$0xff] %v5109_v11  ;;  %v1941_v2 = vadd.f32 %v1864_v0, %v4858_v20  ;;  %v6125_v11 = vld [vmem:[#allocation159_spill] sm:$0xff]  ;;  %v2146_v31 = vadd.f32 %v1936_v9, %v6126_v27  ;;  %v2150_v48 = vadd.f32 %v1940_v14, %v6130_v35  ;;  %v1869_v63 = vpop.permute.xlu0 %1868  ;;  %v6133_v0 = vld [vmem:[#allocation161_spill] sm:$0xff] }
 0x38f   :  { %6122 = vst [vmem:[#allocation136_spill] sm:$0xff] %v5112_v46  ;;  %6124 = vst [vmem:[#allocation138_spill] sm:$0xff] %v5115_v43  ;;  %v5126_v53 = vmul.f32 %v5103_v50, %v6125_v11  ;;  %v6127_v43 = vld [vmem:[#allocation7_spill] sm:$0xff]  ;;  %v6128_v46 = vld [vmem:[#allocation8_spill] sm:$0xff]  ;;  %v2149_v56 = vadd.f32 %v1939_v21, %v6129_v5  ;;  %v2152_v20 = vadd.f32 %v1942_v34, %v6132_v33 }
 0x390   :  { %v2147_v61 = vadd.f32 %v1937_v49, %v6127_v43  ;;  %v2148_v28 = vadd.f32 %v1938_v39, %v6128_v46  ;;  %v2151_v62 = vadd.f32 %v1941_v2, %v6131_v41  ;;  %v5137_v11 = vmul.f32 %v5103_v50, %v6133_v0  ;;  %2251 = vst [vmem:[%s5678_s8] sm:$0xff] %v2146_v31  ;;  %v6138_v35 = vld [vmem:[#allocation24_spill] sm:$0xff]  ;;  %v6139_v46 = vld [vmem:[#allocation25_spill] sm:$0xff]  ;;  %v6140_v14 = vld [vmem:[#allocation26_spill] sm:$0xff]  ;;  %v1884_v31 = vpop.permute.xlu1 %1883 }
 0x391   :  { %v1950_v9 = vadd.f32 %v1874_v30, %v4822_v47  ;;  %v1951_v43 = vadd.f32 %v1874_v30, %v4825_v45  ;;  %v1952_v39 = vadd.f32 %v1874_v30, %v4828_v15  ;;  %v1953_v21 = vadd.f32 %v1874_v30, %v4831_v6  ;;  %2254 = vst [vmem:[%s5678_s8 + $0x18] sm:$0xff] %v2149_v56 }
 0x392   :  { %2252 = vst [vmem:[%s5678_s8 + $0x8] sm:$0xff] %v2147_v61  ;;  %2253 = vst [vmem:[%s5678_s8 + $0x10] sm:$0xff] %v2148_v28  ;;  %v1954_v47 = vadd.f32 %v1874_v30, %v4834_v3  ;;  %v1955_v45 = vadd.f32 %v1874_v30, %v4837_v17  ;;  %v1956_v15 = vadd.f32 %v1874_v30, %v4840_v36  ;;  %v6134_v3 = vld [vmem:[#allocation20_spill] sm:$0xff]  ;;  %v6135_v17 = vld [vmem:[#allocation21_spill] sm:$0xff] }
 0x393   :  { %v1943_v6 = vadd.f32 %v1869_v63, %v4885_v25  ;;  %2255 = vst [vmem:[%s5678_s8 + $0x20] sm:$0xff] %v2150_v48  ;;  %2256 = vst [vmem:[%s5678_s8 + $0x28] sm:$0xff] %v2151_v62  ;;  %v2160_v33 = vadd.f32 %v1950_v9, %v6134_v3  ;;  %v2161_v41 = vadd.f32 %v1951_v43, %v6135_v17  ;;  %v6136_v36 = vld [vmem:[#allocation22_spill] sm:$0xff]  ;;  %v6137_v25 = vld [vmem:[#allocation23_spill] sm:$0xff] }
 0x394   :  { %2257 = vst.msk [vmem:[%s5678_s8 + $0x30] sm:$0xff] %vm1126_vm3, %v2152_v20  ;;  %v2162_v30 = vadd.f32 %v1952_v39, %v6136_v36  ;;  %v2163_v2 = vadd.f32 %v1953_v21, %v6137_v25  ;;  %v2164_v5 = vadd.f32 %v1954_v47, %v6138_v35  ;;  %v2165_v49 = vadd.f32 %v1955_v45, %v6139_v46  ;;  %v6145_v9 = vld [vmem:[#allocation17_spill] sm:$0xff]  ;;  %v6146_v39 = vld [vmem:[#allocation18_spill] sm:$0xff]  ;;  %v1879_v47 = vpop.permute.xlu0 %1878  ;;  %v6147_v45 = vld [vmem:[#allocation19_spill] sm:$0xff] }
 0x395   :  { %v2166_v34 = vadd.f32 %v1956_v15, %v6140_v14  ;;  %v1944_v27 = vadd.f32 %v1869_v63, %v4888_v54  ;;  %v1945_v61 = vadd.f32 %v1869_v63, %v4891_v29  ;;  %v1946_v28 = vadd.f32 %v1869_v63, %v4894_v52  ;;  %2265 = vst [vmem:[%s5678_s8 + $0x70] sm:$0xff] %v2160_v33  ;;  %v6141_v29 = vld [vmem:[#allocation13_spill] sm:$0xff]  ;;  %v6148_v33 = vld [vmem:[#allocation34_spill] sm:$0xff]  ;;  %v6154_v14 = vld [vmem:[#allocation40_spill] sm:$0xff] }
 0x396   :  { %v1947_v56 = vadd.f32 %v1869_v63, %v4897_v59  ;;  %v1948_v48 = vadd.f32 %v1869_v63, %v4900_v26  ;;  %2266 = vst [vmem:[%s5678_s8 + $0x78] sm:$0xff] %v2161_v41  ;;  %2267 = vst [vmem:[%s5678_s8 + $0x80] sm:$0xff] %v2162_v30  ;;  %v1949_v54 = vadd.f32 %v1869_v63, %v4903_v51  ;;  %v6142_v59 = vld [vmem:[#allocation14_spill] sm:$0xff]  ;;  %v6143_v51 = vld [vmem:[#allocation15_spill] sm:$0xff] }
 0x397   :  { %2268 = vst [vmem:[%s5678_s8 + $0x88] sm:$0xff] %v2163_v2  ;;  %v2153_v52 = vadd.f32 %v1943_v6, %v6141_v29  ;;  %v2154_v26 = vadd.f32 %v1944_v27, %v6142_v59  ;;  %2269 = vst [vmem:[%s5678_s8 + $0x90] sm:$0xff] %v2164_v5  ;;  %v1964_v62 = vadd.f32 %v1884_v31, %v4927_v57  ;;  %v6144_v63 = vld [vmem:[#allocation16_spill] sm:$0xff]  ;;  %v6149_v41 = vld [vmem:[#allocation35_spill] sm:$0xff] }
 0x398   :  { %2270 = vst [vmem:[%s5678_s8 + $0x98] sm:$0xff] %v2165_v49  ;;  %2271 = vst.msk [vmem:[%s5678_s8 + $0xa0] sm:$0xff] %vm1126_vm3, %v2166_v34  ;;  %v2155_v20 = vadd.f32 %v1945_v61, %v6143_v51  ;;  %v2156_v0 = vadd.f32 %v1946_v28, %v6144_v63  ;;  %v2157_v43 = vadd.f32 %v1947_v56, %v6145_v9  ;;  %v6150_v30 = vld [vmem:[#allocation36_spill] sm:$0xff]  ;;  %v6151_v2 = vld [vmem:[#allocation37_spill] sm:$0xff] }
 0x399   :  { %v2158_v21 = vadd.f32 %v1948_v48, %v6146_v39  ;;  %v2159_v15 = vadd.f32 %v1949_v54, %v6147_v45  ;;  %2258 = vst [vmem:[%s5678_s8 + $0x38] sm:$0xff] %v2153_v52  ;;  %2259 = vst [vmem:[%s5678_s8 + $0x40] sm:$0xff] %v2154_v26  ;;  %v1965_v57 = vadd.f32 %v1884_v31, %v4930_v18  ;;  %v6152_v46 = vld [vmem:[#allocation38_spill] sm:$0xff]  ;;  %v6153_v49 = vld [vmem:[#allocation39_spill] sm:$0xff] }
 0x39a   :  { %v1966_v6 = vadd.f32 %v1884_v31, %v4933_v55  ;;  %v1967_v3 = vadd.f32 %v1884_v31, %v4936_v40  ;;  %2260 = vst [vmem:[%s5678_s8 + $0x48] sm:$0xff] %v2155_v20  ;;  %2261 = vst [vmem:[%s5678_s8 + $0x50] sm:$0xff] %v2156_v0  ;;  %v1968_v18 = vadd.f32 %v1884_v31, %v4939_v32  ;;  %v1894_v32 = vpop.permute.xlu1 %1893  ;;  %v6157_v48 = vld [vmem:[#allocation29_spill] sm:$0xff]  ;;  %v6158_v29 = vld [vmem:[#allocation30_spill] sm:$0xff]  ;;  %v1889_v20 = vpop.permute.xlu0 %1888 }
 0x39b   :  { %2262 = vst [vmem:[%s5678_s8 + $0x58] sm:$0xff] %v2157_v43  ;;  %2263 = vst [vmem:[%s5678_s8 + $0x60] sm:$0xff] %v2158_v21  ;;  %v1969_v55 = vadd.f32 %v1884_v31, %v4942_v38  ;;  %v1970_v40 = vadd.f32 %v1884_v31, %v4945_v10  ;;  %v2174_v17 = vadd.f32 %v1964_v62, %v6148_v33  ;;  %v6159_v59 = vld [vmem:[#allocation31_spill] sm:$0xff]  ;;  %v6160_v62 = vld [vmem:[#allocation32_spill] sm:$0xff] }
 0x39c   :  { %2264 = vst.msk [vmem:[%s5678_s8 + $0x68] sm:$0xff] %vm1126_vm3, %v2159_v15  ;;  %v2175_v36 = vadd.f32 %v1965_v57, %v6149_v41  ;;  %v2176_v25 = vadd.f32 %v1966_v6, %v6150_v30  ;;  %v2177_v35 = vadd.f32 %v1967_v3, %v6151_v2  ;;  %v1957_v5 = vadd.f32 %v1879_v47, %v4864_v4  ;;  %v6161_v63 = vld [vmem:[#allocation33_spill] sm:$0xff]  ;;  %v6162_v43 = vld [vmem:[#allocation48_spill] sm:$0xff]  ;;  %v6164_v45 = vld [vmem:[#allocation50_spill] sm:$0xff] }
 0x39d   :  { %v2178_v38 = vadd.f32 %v1968_v18, %v6152_v46  ;;  %v2179_v10 = vadd.f32 %v1969_v55, %v6153_v49  ;;  %v2180_v34 = vadd.f32 %v1970_v40, %v6154_v14  ;;  %2279 = vst [vmem:[%s5678_s8 + $0xe0] sm:$0xff] %v2174_v17  ;;  %v1958_v27 = vadd.f32 %v1879_v47, %v4867_v13  ;;  %v6163_v21 = vld [vmem:[#allocation49_spill] sm:$0xff]  ;;  %v6165_v57 = vld [vmem:[#allocation51_spill] sm:$0xff]  ;;  %v6166_v18 = vld [vmem:[#allocation52_spill] sm:$0xff] }
 0x39e   :  { %2280 = vst [vmem:[%s5678_s8 + $0xe8] sm:$0xff] %v2175_v36  ;;  %2281 = vst [vmem:[%s5678_s8 + $0xf0] sm:$0xff] %v2176_v25  ;;  %v1959_v4 = vadd.f32 %v1879_v47, %v4870_v60  ;;  %v1960_v31 = vadd.f32 %v1879_v47, %v4873_v19  ;;  %v1961_v61 = vadd.f32 %v1879_v47, %v4876_v16  ;;  %v6155_v19 = vld [vmem:[#allocation27_spill] sm:$0xff]  ;;  %v6156_v16 = vld [vmem:[#allocation28_spill] sm:$0xff] }
 0x39f   :  { %2282 = vst [vmem:[%s5678_s8 + $0xf8] sm:$0xff] %v2177_v35  ;;  %v1962_v13 = vadd.f32 %v1879_v47, %v4879_v37  ;;  %2283 = vst [vmem:[%s5678_s8 + $0x100] sm:$0xff] %v2178_v38  ;;  %v1963_v60 = vadd.f32 %v1879_v47, %v4882_v7  ;;  %v2167_v28 = vadd.f32 %v1957_v5, %v6155_v19  ;;  %v6167_v55 = vld [vmem:[#allocation53_spill] sm:$0xff]  ;;  %v6168_v40 = vld [vmem:[#allocation54_spill] sm:$0xff] }
 0x3a0   :  { %2284 = vst [vmem:[%s5678_s8 + $0x108] sm:$0xff] %v2179_v10  ;;  %2285 = vst.msk [vmem:[%s5678_s8 + $0x110] sm:$0xff] %vm1126_vm3, %v2180_v34  ;;  %v2168_v56 = vadd.f32 %v1958_v27, %v6156_v16  ;;  %v1978_v37 = vadd.f32 %v1894_v32, %v4969_v58  ;;  %v2169_v54 = vadd.f32 %v1959_v4, %v6157_v48  ;;  %v6170_v36 = vld [vmem:[#allocation115_spill] sm:$0xff]  ;;  %v6171_v25 = vld [vmem:[#allocation117_spill] sm:$0xff]  ;;  %v1899_v16 = vpop.permute.xlu0 %1898 }
 0x3a1   :  { %v2170_v52 = vadd.f32 %v1960_v31, %v6158_v29  ;;  %v2171_v26 = vadd.f32 %v1961_v61, %v6159_v59  ;;  %v2172_v51 = vadd.f32 %v1962_v13, %v6160_v62  ;;  %v2173_v0 = vadd.f32 %v1963_v60, %v6161_v63  ;;  %2272 = vst [vmem:[%s5678_s8 + $0xa8] sm:$0xff] %v2167_v28  ;;  %v6172_v35 = vld [vmem:[#allocation116_spill] sm:$0xff]  ;;  %v6173_v5 = vld [vmem:[#allocation118_spill] sm:$0xff]  ;;  %v6174_v46 = vld [vmem:[#allocation41_spill] sm:$0xff] }
 0x3a2   :  { %2273 = vst [vmem:[%s5678_s8 + $0xb0] sm:$0xff] %v2168_v56  ;;  %v1979_v7 = vadd.f32 %v1894_v32, %v4972_v44  ;;  %v1980_v58 = vadd.f32 %v1894_v32, %v4975_v12  ;;  %v1981_v9 = vadd.f32 %v1894_v32, %v4978_v1  ;;  %2274 = vst [vmem:[%s5678_s8 + $0xb8] sm:$0xff] %v2169_v54  ;;  %v6175_v49 = vld [vmem:[#allocation42_spill] sm:$0xff]  ;;  %v6176_v14 = vld [vmem:[#allocation173_spill] sm:$0xff] }
 0x3a3   :  { %2275 = vst [vmem:[%s5678_s8 + $0xc0] sm:$0xff] %v2170_v52  ;;  %2276 = vst [vmem:[%s5678_s8 + $0xc8] sm:$0xff] %v2171_v26  ;;  %v1982_v44 = vadd.f32 %v1894_v32, %v4981_v23  ;;  %v1983_v12 = vadd.f32 %v1894_v32, %v4984_v24  ;;  %v1984_v1 = vadd.f32 %v1894_v32, %v4987_v22  ;;  %v1904_v23 = vpop.permute.xlu1 %1903  ;;  %v6177_v27 = vld [vmem:[#allocation43_spill] sm:$0xff]  ;;  %v6178_v31 = vld [vmem:[#allocation44_spill] sm:$0xff] }
 0x3a4   :  { %2277 = vst [vmem:[%s5678_s8 + $0xd0] sm:$0xff] %v2172_v51  ;;  %v2188_v39 = vadd.f32 %v1978_v37, %v6162_v43  ;;  %2278 = vst.msk [vmem:[%s5678_s8 + $0xd8] sm:$0xff] %vm1126_vm3, %v2173_v0  ;;  %v2189_v47 = vadd.f32 %v1979_v7, %v6163_v21  ;;  %v2190_v15 = vadd.f32 %v1980_v58, %v6164_v45  ;;  %v6179_v13 = vld [vmem:[#allocation45_spill] sm:$0xff]  ;;  %v6180_v19 = vld [vmem:[#allocation46_spill] sm:$0xff] }
 0x3a5   :  { %v2191_v6 = vadd.f32 %v1981_v9, %v6165_v57  ;;  %v1971_v3 = vadd.f32 %v1889_v20, %v4906_v42  ;;  %v2192_v24 = vadd.f32 %v1982_v44, %v6166_v18  ;;  %v2193_v22 = vadd.f32 %v1983_v12, %v6167_v55  ;;  %v6169_v42 = vld [vmem:[#allocation163_spill] sm:$0xff]  ;;  %v6183_v29 = vld [vmem:[#allocation174_spill] sm:$0xff]  ;;  %v6185_v62 = vld [vmem:[#allocation121_spill] sm:$0xff] }
 0x3a6   :  { %v2194_v33 = vadd.f32 %v1984_v1, %v6168_v40  ;;  %2293 = vst [vmem:[%s5678_s8 + $0x150] sm:$0xff] %v2188_v39  ;;  %v1972_v17 = vadd.f32 %v1889_v20, %v4909_v8  ;;  %2294 = vst [vmem:[%s5678_s8 + $0x158] sm:$0xff] %v2189_v47  ;;  %v1973_v41 = vadd.f32 %v1889_v20, %v6169_v42  ;;  %v6181_v56 = vld [vmem:[#allocation47_spill] sm:$0xff]  ;;  %v6187_v0 = vld [vmem:[#allocation122_spill] sm:$0xff] }
 0x3a7   :  { %2295 = vst [vmem:[%s5678_s8 + $0x160] sm:$0xff] %v2190_v15  ;;  %2296 = vst [vmem:[%s5678_s8 + $0x168] sm:$0xff] %v2191_v6  ;;  %v1974_v30 = vadd.f32 %v1889_v20, %v6170_v36  ;;  %v1975_v2 = vadd.f32 %v1889_v20, %v6171_v25  ;;  %v1976_v8 = vadd.f32 %v1889_v20, %v6172_v35  ;;  %v6182_v48 = vld [vmem:[#allocation175_spill] sm:$0xff]  ;;  %v6188_v58 = vld [vmem:[#allocation62_spill] sm:$0xff]  ;;  %v1914_v15 = vpop.permute.xlu1 %1913 }
 0x3a8   :  { %2297 = vst [vmem:[%s5678_s8 + $0x170] sm:$0xff] %v2192_v24  ;;  %2298 = vst [vmem:[%s5678_s8 + $0x178] sm:$0xff] %v2193_v22  ;;  %v1977_v32 = vadd.f32 %v1889_v20, %v6173_v5  ;;  %v2181_v38 = vadd.f32 %v1971_v3, %v6174_v46  ;;  %v2182_v10 = vadd.f32 %v1972_v17, %v6175_v49  ;;  %v6184_v59 = vld [vmem:[#allocation119_spill] sm:$0xff]  ;;  %v6186_v20 = vld [vmem:[#allocation120_spill] sm:$0xff] }
 0x3a9   :  { %2299 = vst.msk [vmem:[%s5678_s8 + $0x180] sm:$0xff] %vm1126_vm3, %v2194_v33  ;;  %v1992_v34 = vadd.f32 %v1904_v23, %v6176_v14  ;;  %v2183_v4 = vadd.f32 %v1973_v41, %v6177_v27  ;;  %v2184_v61 = vadd.f32 %v1974_v30, %v6178_v31  ;;  %v2185_v60 = vadd.f32 %v1975_v2, %v6179_v13  ;;  %v6189_v44 = vld [vmem:[#allocation63_spill] sm:$0xff]  ;;  %v6190_v1 = vld [vmem:[#allocation64_spill] sm:$0xff]  ;;  %v6191_v39 = vld [vmem:[#allocation65_spill] sm:$0xff] }
 0x3aa   :  { %v2186_v28 = vadd.f32 %v1976_v8, %v6180_v19  ;;  %v2187_v37 = vadd.f32 %v1977_v32, %v6181_v56  ;;  %2286 = vst [vmem:[%s5678_s8 + $0x118] sm:$0xff] %v2181_v38  ;;  %2287 = vst [vmem:[%s5678_s8 + $0x120] sm:$0xff] %v2182_v10  ;;  %v1993_v54 = vadd.f32 %v1904_v23, %v6182_v48  ;;  %v6192_v47 = vld [vmem:[#allocation167_spill] sm:$0xff]  ;;  %v6193_v57 = vld [vmem:[#allocation66_spill] sm:$0xff] }
 0x3ab   :  { %v1994_v52 = vadd.f32 %v1904_v23, %v6183_v29  ;;  %v1995_v26 = vadd.f32 %v1904_v23, %v6184_v59  ;;  %2288 = vst [vmem:[%s5678_s8 + $0x128] sm:$0xff] %v2183_v4  ;;  %2289 = vst [vmem:[%s5678_s8 + $0x130] sm:$0xff] %v2184_v61  ;;  %v1996_v51 = vadd.f32 %v1904_v23, %v6185_v62  ;;  %v6194_v3 = vld [vmem:[#allocation67_spill] sm:$0xff]  ;;  %v6195_v18 = vld [vmem:[#allocation68_spill] sm:$0xff] }
 0x3ac   :  { %2290 = vst [vmem:[%s5678_s8 + $0x138] sm:$0xff] %v2185_v60  ;;  %2291 = vst [vmem:[%s5678_s8 + $0x140] sm:$0xff] %v2186_v28  ;;  %v1997_v63 = vadd.f32 %v1904_v23, %v6186_v20  ;;  %v1998_v7 = vadd.f32 %v1904_v23, %v6187_v0  ;;  %v2202_v9 = vadd.f32 %v1992_v34, %v6188_v58  ;;  %v6196_v55 = vld [vmem:[#allocation169_spill] sm:$0xff]  ;;  %v6197_v40 = vld [vmem:[#allocation168_spill] sm:$0xff]  ;;  %v1909_v60 = vpop.permute.xlu0 %1908 }
 0x3ad   :  { %2292 = vst.msk [vmem:[%s5678_s8 + $0x148] sm:$0xff] %vm1126_vm3, %v2187_v37  ;;  %v2203_v12 = vadd.f32 %v1993_v54, %v6189_v44  ;;  %v2204_v43 = vadd.f32 %v1994_v52, %v6190_v1  ;;  %v2205_v21 = vadd.f32 %v1995_v26, %v6191_v39  ;;  %v1985_v45 = vadd.f32 %v1899_v16, %v6192_v47  ;;  %v6198_v17 = vld [vmem:[#allocation111_spill] sm:$0xff]  ;;  %v6199_v41 = vld [vmem:[#allocation113_spill] sm:$0xff]  ;;  %v6200_v30 = vld [vmem:[#allocation112_spill] sm:$0xff] }
 0x3ae   :  { %v2206_v6 = vadd.f32 %v1996_v51, %v6193_v57  ;;  %v2207_v23 = vadd.f32 %v1997_v63, %v6194_v3  ;;  %v2208_v24 = vadd.f32 %v1998_v7, %v6195_v18  ;;  %2307 = vst [vmem:[%s5678_s8 + $0x1c0] sm:$0xff] %v2202_v9  ;;  %v1986_v22 = vadd.f32 %v1899_v16, %v6196_v55  ;;  %v6201_v2 = vld [vmem:[#allocation114_spill] sm:$0xff]  ;;  %v6202_v8 = vld [vmem:[#allocation55_spill] sm:$0xff]  ;;  %v6203_v32 = vld [vmem:[#allocation56_spill] sm:$0xff] }
 0x3af   :  { %2308 = vst [vmem:[%s5678_s8 + $0x1c8] sm:$0xff] %v2203_v12  ;;  %2309 = vst [vmem:[%s5678_s8 + $0x1d0] sm:$0xff] %v2204_v43  ;;  %v1987_v33 = vadd.f32 %v1899_v16, %v6197_v40  ;;  %v1988_v42 = vadd.f32 %v1899_v16, %v6198_v17  ;;  %v1989_v36 = vadd.f32 %v1899_v16, %v6199_v41  ;;  %v6204_v38 = vld [vmem:[#allocation179_spill] sm:$0xff]  ;;  %v6205_v10 = vld [vmem:[#allocation57_spill] sm:$0xff] }
 0x3b0   :  { %2310 = vst [vmem:[%s5678_s8 + $0x1d8] sm:$0xff] %v2205_v21  ;;  %v1990_v25 = vadd.f32 %v1899_v16, %v6200_v30  ;;  %2311 = vst [vmem:[%s5678_s8 + $0x1e0] sm:$0xff] %v2206_v6  ;;  %v1991_v35 = vadd.f32 %v1899_v16, %v6201_v2  ;;  %v2195_v5 = vadd.f32 %v1985_v45, %v6202_v8  ;;  %v6206_v34 = vld [vmem:[#allocation58_spill] sm:$0xff]  ;;  %v6207_v4 = vld [vmem:[#allocation59_spill] sm:$0xff]  ;;  %v1924_v21 = vpop.permute.xlu1 %1923 }
 0x3b1   :  { %2312 = vst [vmem:[%s5678_s8 + $0x1e8] sm:$0xff] %v2207_v23  ;;  %2313 = vst.msk [vmem:[%s5678_s8 + $0x1f0] sm:$0xff] %vm1126_vm3, %v2208_v24  ;;  %v2196_v46 = vadd.f32 %v1986_v22, %v6203_v32  ;;  %v2006_v49 = vadd.f32 %v1914_v15, %v6204_v38  ;;  %v2197_v14 = vadd.f32 %v1987_v33, %v6205_v10  ;;  %v6208_v61 = vld [vmem:[#allocation60_spill] sm:$0xff]  ;;  %v6209_v19 = vld [vmem:[#allocation61_spill] sm:$0xff] }
 0x3b2   :  { %v2198_v27 = vadd.f32 %v1988_v42, %v6206_v34  ;;  %v2199_v31 = vadd.f32 %v1989_v36, %v6207_v4  ;;  %v2200_v13 = vadd.f32 %v1990_v25, %v6208_v61  ;;  %v2201_v28 = vadd.f32 %v1991_v35, %v6209_v19  ;;  %2300 = vst [vmem:[%s5678_s8 + $0x188] sm:$0xff] %v2195_v5  ;;  %v6210_v16 = vld [vmem:[#allocation181_spill] sm:$0xff]  ;;  %v6211_v37 = vld [vmem:[#allocation180_spill] sm:$0xff]  ;;  %v6212_v54 = vld [vmem:[#allocation127_spill] sm:$0xff] }
 0x3b3   :  { %2301 = vst [vmem:[%s5678_s8 + $0x190] sm:$0xff] %v2196_v46  ;;  %v2007_v56 = vadd.f32 %v1914_v15, %v6210_v16  ;;  %v2008_v48 = vadd.f32 %v1914_v15, %v6211_v37  ;;  %v2009_v29 = vadd.f32 %v1914_v15, %v6212_v54  ;;  %2302 = vst [vmem:[%s5678_s8 + $0x198] sm:$0xff] %v2197_v14  ;;  %v6213_v52 = vld [vmem:[#allocation129_spill] sm:$0xff]  ;;  %v6214_v26 = vld [vmem:[#allocation128_spill] sm:$0xff] }
 0x3b4   :  { %2303 = vst [vmem:[%s5678_s8 + $0x1a0] sm:$0xff] %v2198_v27  ;;  %2304 = vst [vmem:[%s5678_s8 + $0x1a8] sm:$0xff] %v2199_v31  ;;  %v2010_v59 = vadd.f32 %v1914_v15, %v6213_v52  ;;  %v2011_v62 = vadd.f32 %v1914_v15, %v6214_v26  ;;  %v6215_v51 = vld [vmem:[#allocation130_spill] sm:$0xff]  ;;  %v6216_v63 = vld [vmem:[#allocation76_spill] sm:$0xff]  ;;  %v1919_v31 = vpop.permute.xlu0 %1918 }
 0x3b5   :  { %2305 = vst [vmem:[%s5678_s8 + $0x1b0] sm:$0xff] %v2200_v13  ;;  %v2012_v20 = vadd.f32 %v1914_v15, %v6215_v51  ;;  %v2216_v0 = vadd.f32 %v2006_v49, %v6216_v63  ;;  %2306 = vst.msk [vmem:[%s5678_s8 + $0x1b8] sm:$0xff] %vm1126_vm3, %v2201_v28  ;;  %v6217_v7 = vld [vmem:[#allocation77_spill] sm:$0xff]  ;;  %v6218_v9 = vld [vmem:[#allocation78_spill] sm:$0xff] }
 0x3b6   :  { %v2217_v58 = vadd.f32 %v2007_v56, %v6217_v7  ;;  %v2218_v44 = vadd.f32 %v2008_v48, %v6218_v9  ;;  %v6219_v12 = vld [vmem:[#allocation79_spill] sm:$0xff]  ;;  %v6220_v43 = vld [vmem:[#allocation164_spill] sm:$0xff]  ;;  %v6222_v57 = vld [vmem:[#allocation81_spill] sm:$0xff] }
 0x3b7   :  { %v2219_v1 = vadd.f32 %v2009_v29, %v6219_v12  ;;  %v1999_v39 = vadd.f32 %v1909_v60, %v6220_v43  ;;  %v6221_v47 = vld [vmem:[#allocation80_spill] sm:$0xff]  ;;  %v2221_v15 = vadd.f32 %v2011_v62, %v6222_v57  ;;  %v6223_v6 = vld [vmem:[#allocation82_spill] sm:$0xff]  ;;  %2321 = vst [vmem:[%s5678_s8 + $0x230] sm:$0xff] %v2216_v0  ;;  %v6225_v24 = vld [vmem:[#allocation165_spill] sm:$0xff] }
 0x3b8   :  { %v2220_v45 = vadd.f32 %v2010_v59, %v6221_v47  ;;  %v2222_v3 = vadd.f32 %v2012_v20, %v6223_v6  ;;  %v6224_v23 = vld [vmem:[#allocation166_spill] sm:$0xff]  ;;  %2322 = vst [vmem:[%s5678_s8 + $0x238] sm:$0xff] %v2217_v58  ;;  %2323 = vst [vmem:[%s5678_s8 + $0x240] sm:$0xff] %v2218_v44  ;;  %v2001_v55 = vadd.f32 %v1909_v60, %v6225_v24  ;;  %v6226_v22 = vld [vmem:[#allocation123_spill] sm:$0xff] }
 0x3b9   :  { %v2000_v18 = vadd.f32 %v1909_v60, %v6224_v23  ;;  %2324 = vst [vmem:[%s5678_s8 + $0x248] sm:$0xff] %v2219_v1  ;;  %v2002_v40 = vadd.f32 %v1909_v60, %v6226_v22  ;;  %v6227_v33 = vld [vmem:[#allocation125_spill] sm:$0xff]  ;;  %v6228_v42 = vld [vmem:[#allocation124_spill] sm:$0xff]  ;;  %2326 = vst [vmem:[%s5678_s8 + $0x258] sm:$0xff] %v2221_v15 }
 0x3ba   :  { %v2003_v17 = vadd.f32 %v1909_v60, %v6227_v33  ;;  %v2004_v41 = vadd.f32 %v1909_v60, %v6228_v42  ;;  %2325 = vst [vmem:[%s5678_s8 + $0x250] sm:$0xff] %v2220_v45  ;;  %2327 = vst.msk [vmem:[%s5678_s8 + $0x260] sm:$0xff] %vm1126_vm3, %v2222_v3  ;;  %v6229_v36 = vld [vmem:[#allocation126_spill] sm:$0xff]  ;;  %v6230_v25 = vld [vmem:[#allocation69_spill] sm:$0xff] }
 0x3bb   :  { %v2005_v30 = vadd.f32 %v1909_v60, %v6229_v36  ;;  %v2209_v2 = vadd.f32 %v1999_v39, %v6230_v25  ;;  %v6231_v35 = vld [vmem:[#allocation70_spill] sm:$0xff]  ;;  %v6232_v5 = vld [vmem:[#allocation176_spill] sm:$0xff]  ;;  %v6233_v46 = vld [vmem:[#allocation71_spill] sm:$0xff]  ;;  %v1934_v25 = vpop.permute.xlu1 %1933 }
 0x3bc   :  { %v2210_v8 = vadd.f32 %v2000_v18, %v6231_v35  ;;  %v2020_v32 = vadd.f32 %v1924_v21, %v6232_v5  ;;  %v2211_v38 = vadd.f32 %v2001_v55, %v6233_v46  ;;  %v6234_v49 = vld [vmem:[#allocation72_spill] sm:$0xff]  ;;  %v6235_v14 = vld [vmem:[#allocation73_spill] sm:$0xff]  ;;  %v6236_v27 = vld [vmem:[#allocation74_spill] sm:$0xff] }
 0x3bd   :  { %v2212_v10 = vadd.f32 %v2002_v40, %v6234_v49  ;;  %v2213_v34 = vadd.f32 %v2003_v17, %v6235_v14  ;;  %v2214_v4 = vadd.f32 %v2004_v41, %v6236_v27  ;;  %v6237_v61 = vld [vmem:[#allocation75_spill] sm:$0xff]  ;;  %2314 = vst [vmem:[%s5678_s8 + $0x1f8] sm:$0xff] %v2209_v2  ;;  %v6238_v60 = vld [vmem:[#allocation178_spill] sm:$0xff]  ;;  %v6239_v28 = vld [vmem:[#allocation177_spill] sm:$0xff] }
 0x3be   :  { %v2215_v13 = vadd.f32 %v2005_v30, %v6237_v61  ;;  %2315 = vst [vmem:[%s5678_s8 + $0x200] sm:$0xff] %v2210_v8  ;;  %v2021_v19 = vadd.f32 %v1924_v21, %v6238_v60  ;;  %v2022_v16 = vadd.f32 %v1924_v21, %v6239_v28  ;;  %v6240_v56 = vld [vmem:[#allocation139_spill] sm:$0xff]  ;;  %2316 = vst [vmem:[%s5678_s8 + $0x208] sm:$0xff] %v2211_v38  ;;  %v6241_v48 = vld [vmem:[#allocation141_spill] sm:$0xff] }
 0x3bf   :  { %v2023_v37 = vadd.f32 %v1924_v21, %v6240_v56  ;;  %2317 = vst [vmem:[%s5678_s8 + $0x210] sm:$0xff] %v2212_v10  ;;  %2318 = vst [vmem:[%s5678_s8 + $0x218] sm:$0xff] %v2213_v34  ;;  %v2024_v54 = vadd.f32 %v1924_v21, %v6241_v48  ;;  %v6242_v29 = vld [vmem:[#allocation140_spill] sm:$0xff]  ;;  %v6243_v59 = vld [vmem:[#allocation142_spill] sm:$0xff]  ;;  %v1929_v34 = vpop.permute.xlu0 %1928  ;;  %v2035_v48 = vadd.f32 %v1934_v25, %v5137_v11 }
 0x3c0   :  { %2319 = vst [vmem:[%s5678_s8 + $0x220] sm:$0xff] %v2214_v4  ;;  %v2025_v52 = vadd.f32 %v1924_v21, %v6242_v29  ;;  %v2026_v26 = vadd.f32 %v1924_v21, %v6243_v59  ;;  %v6244_v62 = vld [vmem:[#allocation90_spill] sm:$0xff]  ;;  %2320 = vst.msk [vmem:[%s5678_s8 + $0x228] sm:$0xff] %vm1126_vm3, %v2215_v13  ;;  %v6245_v20 = vld [vmem:[#allocation91_spill] sm:$0xff] }
 0x3c1   :  { %v2230_v51 = vadd.f32 %v2020_v32, %v6244_v62  ;;  %v2231_v63 = vadd.f32 %v2021_v19, %v6245_v20  ;;  %v6246_v0 = vld [vmem:[#allocation92_spill] sm:$0xff]  ;;  %v6247_v58 = vld [vmem:[#allocation93_spill] sm:$0xff]  ;;  %v6248_v44 = vld [vmem:[#allocation170_spill] sm:$0xff] }
 0x3c2   :  { %v2232_v7 = vadd.f32 %v2022_v16, %v6246_v0  ;;  %v2233_v9 = vadd.f32 %v2023_v37, %v6247_v58  ;;  %v2013_v12 = vadd.f32 %v1919_v31, %v6248_v44  ;;  %v6249_v1 = vld [vmem:[#allocation94_spill] sm:$0xff]  ;;  %v6250_v39 = vld [vmem:[#allocation95_spill] sm:$0xff]  ;;  %v6251_v21 = vld [vmem:[#allocation96_spill] sm:$0xff]  ;;  %v2034_v37 = vadd.f32 %v1934_v25, %v5126_v53 }
 0x3c3   :  { %v2234_v43 = vadd.f32 %v2024_v54, %v6249_v1  ;;  %v2235_v47 = vadd.f32 %v2025_v52, %v6250_v39  ;;  %v2236_v45 = vadd.f32 %v2026_v26, %v6251_v21  ;;  %2335 = vst [vmem:[%s5678_s8 + $0x2a0] sm:$0xff] %v2230_v51  ;;  %v6252_v57 = vld [vmem:[#allocation172_spill] sm:$0xff]  ;;  %2336 = vst [vmem:[%s5678_s8 + $0x2a8] sm:$0xff] %v2231_v63  ;;  %v6253_v6 = vld [vmem:[#allocation171_spill] sm:$0xff] }
 0x3c4   :  { %v2014_v15 = vadd.f32 %v1919_v31, %v6252_v57  ;;  %2337 = vst [vmem:[%s5678_s8 + $0x2b0] sm:$0xff] %v2232_v7  ;;  %2338 = vst [vmem:[%s5678_s8 + $0x2b8] sm:$0xff] %v2233_v9  ;;  %v2015_v3 = vadd.f32 %v1919_v31, %v6253_v6  ;;  %v6254_v23 = vld [vmem:[#allocation131_spill] sm:$0xff]  ;;  %v6255_v24 = vld [vmem:[#allocation133_spill] sm:$0xff] }
 0x3c5   :  { %v2016_v18 = vadd.f32 %v1919_v31, %v6254_v23  ;;  %v2017_v55 = vadd.f32 %v1919_v31, %v6255_v24  ;;  %v6256_v22 = vld [vmem:[#allocation132_spill] sm:$0xff]  ;;  %2339 = vst [vmem:[%s5678_s8 + $0x2c0] sm:$0xff] %v2234_v43  ;;  %2340 = vst [vmem:[%s5678_s8 + $0x2c8] sm:$0xff] %v2235_v47  ;;  %v6257_v33 = vld [vmem:[#allocation134_spill] sm:$0xff] }
 0x3c6   :  { %v2018_v40 = vadd.f32 %v1919_v31, %v6256_v22  ;;  %2341 = vst.msk [vmem:[%s5678_s8 + $0x2d0] sm:$0xff] %vm1126_vm3, %v2236_v45  ;;  %v2019_v17 = vadd.f32 %v1919_v31, %v6257_v33  ;;  %v6258_v42 = vld [vmem:[#allocation83_spill] sm:$0xff]  ;;  %v6259_v36 = vld [vmem:[#allocation84_spill] sm:$0xff]  ;;  %v6261_v8 = vld [vmem:[#allocation85_spill] sm:$0xff] }
 0x3c7   :  { %v2223_v41 = vadd.f32 %v2013_v12, %v6258_v42  ;;  %v2224_v30 = vadd.f32 %v2014_v15, %v6259_v36  ;;  %v6260_v2 = vld [vmem:[#allocation160_spill] sm:$0xff]  ;;  %v2225_v5 = vadd.f32 %v2015_v3, %v6261_v8  ;;  %v6262_v32 = vld [vmem:[#allocation86_spill] sm:$0xff]  ;;  %v6263_v38 = vld [vmem:[#allocation87_spill] sm:$0xff] }
 0x3c8   :  { %v1856_v35 = vmul.f32 %v5103_v50, %v6260_v2  ;;  %v2226_v46 = vadd.f32 %v2016_v18, %v6262_v32  ;;  %v2227_v49 = vadd.f32 %v2017_v55, %v6263_v38  ;;  %v6264_v10 = vld [vmem:[#allocation88_spill] sm:$0xff]  ;;  %v6265_v27 = vld [vmem:[#allocation89_spill] sm:$0xff]  ;;  %v6266_v31 = vld [vmem:[#allocation162_spill] sm:$0xff] }
 0x3c9   :  { %v2228_v14 = vadd.f32 %v2018_v40, %v6264_v10  ;;  %v2229_v4 = vadd.f32 %v2019_v17, %v6265_v27  ;;  %2328 = vst [vmem:[%s5678_s8 + $0x268] sm:$0xff] %v2223_v41  ;;  %2329 = vst [vmem:[%s5678_s8 + $0x270] sm:$0xff] %v2224_v30  ;;  %v1857_v61 = vmul.f32 %v5103_v50, %v6266_v31  ;;  %v6267_v13 = vld [vmem:[#allocation200_spill] sm:$0xff]  ;;  %v6268_v19 = vld [vmem:[#allocation202_spill] sm:$0xff] }
 0x3ca   :  { %v1858_v60 = vmul.f32 %v5103_v50, %v6267_v13  ;;  %v1859_v28 = vmul.f32 %v5103_v50, %v6268_v19  ;;  %2330 = vst [vmem:[%s5678_s8 + $0x278] sm:$0xff] %v2225_v5  ;;  %2331 = vst [vmem:[%s5678_s8 + $0x280] sm:$0xff] %v2226_v46  ;;  %v6269_v16 = vld [vmem:[#allocation201_spill] sm:$0xff]  ;;  %v2036_v54 = vadd.f32 %v1934_v25, %v1856_v35  ;;  %v6271_v20 = vld [vmem:[#allocation104_spill] sm:$0xff] }
 0x3cb   :  { %2332 = vst [vmem:[%s5678_s8 + $0x288] sm:$0xff] %v2227_v49  ;;  %2333 = vst [vmem:[%s5678_s8 + $0x290] sm:$0xff] %v2228_v14  ;;  %v1860_v56 = vmul.f32 %v5103_v50, %v6269_v16  ;;  %v2037_v29 = vadd.f32 %v1934_v25, %v1857_v61  ;;  %v6270_v26 = vld [vmem:[#allocation185_spill] sm:$0xff]  ;;  %v2244_v63 = vadd.f32 %v2034_v37, %v6271_v20  ;;  %v6273_v7 = vld [vmem:[#allocation106_spill] sm:$0xff] }
 0x3cc   :  { %2334 = vst.msk [vmem:[%s5678_s8 + $0x298] sm:$0xff] %vm1126_vm3, %v2229_v4  ;;  %v2038_v52 = vadd.f32 %v1934_v25, %v1858_v60  ;;  %v2039_v59 = vadd.f32 %v1934_v25, %v1859_v28  ;;  %v2027_v62 = vadd.f32 %v1929_v34, %v6270_v26  ;;  %v6272_v0 = vld [vmem:[#allocation105_spill] sm:$0xff]  ;;  %v2246_v53 = vadd.f32 %v2036_v54, %v6273_v7  ;;  %v6274_v58 = vld [vmem:[#allocation107_spill] sm:$0xff]  ;;  %v6275_v9 = vld [vmem:[#allocation108_spill] sm:$0xff] }
 0x3cd   :  { %v2040_v51 = vadd.f32 %v1934_v25, %v1860_v56  ;;  %v2245_v50 = vadd.f32 %v2035_v48, %v6272_v0  ;;  %v2247_v11 = vadd.f32 %v2037_v29, %v6274_v58  ;;  %v6276_v12 = vld [vmem:[#allocation109_spill] sm:$0xff]  ;;  %v6277_v43 = vld [vmem:[#allocation187_spill] sm:$0xff]  ;;  %v6278_v47 = vld [vmem:[#allocation110_spill] sm:$0xff]  ;;  %2349 = vst [vmem:[%s5678_s8 + $0x310] sm:$0xff] %v2244_v63 }
 0x3ce   :  { %v2248_v44 = vadd.f32 %v2038_v52, %v6275_v9  ;;  %v2249_v1 = vadd.f32 %v2039_v59, %v6276_v12  ;;  %v2028_v39 = vadd.f32 %v1929_v34, %v6277_v43  ;;  %2351 = vst [vmem:[%s5678_s8 + $0x320] sm:$0xff] %v2246_v53  ;;  %v6279_v45 = vld [vmem:[#allocation186_spill] sm:$0xff]  ;;  %v6280_v15 = vld [vmem:[#allocation135_spill] sm:$0xff]  ;;  %v6281_v3 = vld [vmem:[#allocation137_spill] sm:$0xff] }
 0x3cf   :  { %v2250_v21 = vadd.f32 %v2040_v51, %v6278_v47  ;;  %2350 = vst [vmem:[%s5678_s8 + $0x318] sm:$0xff] %v2245_v50  ;;  %v2029_v57 = vadd.f32 %v1929_v34, %v6279_v45  ;;  %v2030_v6 = vadd.f32 %v1929_v34, %v6280_v15  ;;  %v2031_v23 = vadd.f32 %v1929_v34, %v6281_v3  ;;  %v6282_v18 = vld [vmem:[#allocation136_spill] sm:$0xff]  ;;  %v6283_v55 = vld [vmem:[#allocation138_spill] sm:$0xff]  ;;  %v6284_v40 = vld [vmem:[#allocation97_spill] sm:$0xff] }
 0x3d0   :  { %2352 = vst [vmem:[%s5678_s8 + $0x328] sm:$0xff] %v2247_v11  ;;  %2353 = vst [vmem:[%s5678_s8 + $0x330] sm:$0xff] %v2248_v44  ;;  %v2032_v24 = vadd.f32 %v1929_v34, %v6282_v18  ;;  %v2033_v22 = vadd.f32 %v1929_v34, %v6283_v55  ;;  %v2237_v33 = vadd.f32 %v2027_v62, %v6284_v40  ;;  %v6285_v17 = vld [vmem:[#allocation98_spill] sm:$0xff]  ;;  %v6286_v41 = vld [vmem:[#allocation99_spill] sm:$0xff] }
 0x3d1   :  { %2354 = vst [vmem:[%s5678_s8 + $0x338] sm:$0xff] %v2249_v1  ;;  %v2238_v42 = vadd.f32 %v2028_v39, %v6285_v17  ;;  %2355 = vst.msk [vmem:[%s5678_s8 + $0x340] sm:$0xff] %vm1126_vm3, %v2250_v21  ;;  %v2239_v36 = vadd.f32 %v2029_v57, %v6286_v41  ;;  %v6287_v30 = vld [vmem:[#allocation100_spill] sm:$0xff]  ;;  %v6288_v2 = vld [vmem:[#allocation101_spill] sm:$0xff] }
 0x3d2   :  { %v2240_v25 = vadd.f32 %v2030_v6, %v6287_v30  ;;  %v2241_v35 = vadd.f32 %v2031_v23, %v6288_v2  ;;  %v6289_v8 = vld [vmem:[#allocation102_spill] sm:$0xff]  ;;  %v6290_v32 = vld [vmem:[#allocation103_spill] sm:$0xff]  ;;  %2342 = vst [vmem:[%s5678_s8 + $0x2d8] sm:$0xff] %v2237_v33 }
 0x3d3   :  { %v2242_v5 = vadd.f32 %v2032_v24, %v6289_v8  ;;  %v2243_v46 = vadd.f32 %v2033_v22, %v6290_v32  ;;  %2343 = vst [vmem:[%s5678_s8 + $0x2e0] sm:$0xff] %v2238_v42  ;;  %2344 = vst [vmem:[%s5678_s8 + $0x2e8] sm:$0xff] %v2239_v36 }
 0x3d4   :  { %2345 = vst [vmem:[%s5678_s8 + $0x2f0] sm:$0xff] %v2240_v25  ;;  %2346 = vst [vmem:[%s5678_s8 + $0x2f8] sm:$0xff] %v2241_v35 }
 0x3d5   :  { %2347 = vst [vmem:[%s5678_s8 + $0x300] sm:$0xff] %v2242_v5  ;;  %2348 = vst.msk [vmem:[%s5678_s8 + $0x308] sm:$0xff] %vm1126_vm3, %v2243_v46 }
 0x3d6   :  { %2360 = vsyncmov [#allocation3] }
 0x3d9   :  { %s2361_s5 = vpop.sfrf %2360 }
 0x3da   :  { %p2435_p0 = scmp.ne.s32.totalorder %s2361_s5, 0 }
 0x3dc   :  { %2365 = shalt.err (%p2435_p0)  }

</bundles_post_ra>
